<compile_context>
chip_gen: v6e
topology: v6e:2x2x1
jax: 0.10.0
libtpu: 0.0.40
codegen_flags: <defaults>
</compile_context>

<pallas_src>
import jax
import jax.numpy as jnp
from jax.experimental import pallas as pl
from jax.experimental.pallas import tpu as pltpu

# ----------------------------- config -----------------------------
IMG = 16
PATCH = 8
CHANNELS = 3
GRID = IMG // PATCH            # 2
NUM_PATCHES = GRID * GRID      # 4
SEQ = NUM_PATCHES + 1          # 5 (class token prepended)
HIDDEN = 32
HEADS = 4
HEAD_DIM = HIDDEN // HEADS     # 8
MLP_HIDDEN = 64
LAYERS = 2
PROJ_HIDDEN = 64
PROJ_OUT = 48
EPS = 1e-5
BATCH = 2


def _ln(x, g, b):
    mu = jnp.mean(x, axis=-1, keepdims=True)
    var = jnp.mean((x - mu) ** 2, axis=-1, keepdims=True)
    return (x - mu) * jax.lax.rsqrt(var + EPS) * g + b


def _heads(x2d, row0):
    # rows [row0, row0+SEQ) of a (B*SEQ, HIDDEN) value -> (HEADS, SEQ, HEAD_DIM)
    return jnp.stack(
        [x2d[row0:row0 + SEQ, h * HEAD_DIM:(h + 1) * HEAD_DIM] for h in range(HEADS)],
        axis=0,
    )


# ----------------------------- fused kernel -----------------------------
def vision_model_kernel(
    # encoder front-end
    patches_ref, patch_w_ref, patch_b_ref, cls_ref, pos_ref, lnp_g_ref, lnp_b_ref,
    # transformer layers (leading LAYERS axis on every tensor)
    ln1_g_ref, ln1_b_ref, wq_ref, bq_ref, wk_ref, bk_ref, wv_ref, bv_ref,
    wo_ref, bo_ref, ln2_g_ref, ln2_b_ref, w1_ref, b1_ref, w2_ref, b2_ref,
    # MLP multimodal projector
    pw1_ref, pb1_ref, pw2_ref, pb2_ref,
    # output + scratch
    o_ref, tok_ref,
):
    B = patches_ref.shape[0] // NUM_PATCHES
    scale = 1.0 / (HEAD_DIM ** 0.5)

    # --- patch embedding: Conv2d(stride==patch) == unfolded patches @ W ------
    emb = (jnp.dot(patches_ref[...], patch_w_ref[...],
                   preferred_element_type=jnp.float32) + patch_b_ref[...])

    # --- class token + position embedding, assembled in a VMEM scratch -------
    pos = pos_ref[...]
    cls_tok = cls_ref[...] + pos[0:1, :]
    for b in range(B):
        r0 = b * SEQ
        tok_ref[r0:r0 + 1, :] = cls_tok
        tok_ref[r0 + 1:r0 + SEQ, :] = (
            emb[b * NUM_PATCHES:(b + 1) * NUM_PATCHES, :] + pos[1:SEQ, :]
        )
    x = tok_ref[...]                                        # (B*SEQ, HIDDEN)

    # --- pre layernorm --------------------------------------------------------
    x = _ln(x, lnp_g_ref[...], lnp_b_ref[...])

    # --- transformer layers (static unroll over stacked weights) -------------
    for l in range(LAYERS):
        # attention sub-block (pre-LN), heads batched
        h = _ln(x, ln1_g_ref[l], ln1_b_ref[l])
        q = jnp.dot(h, wq_ref[l], preferred_element_type=jnp.float32) + bq_ref[l]
        k = jnp.dot(h, wk_ref[l], preferred_element_type=jnp.float32) + bk_ref[l]
        v = jnp.dot(h, wv_ref[l], preferred_element_type=jnp.float32) + bv_ref[l]
        wo_l = wo_ref[l]                                    # (HEADS, HEAD_DIM, HIDDEN)
        bo_l = bo_ref[l]
        for b in range(B):
            r0 = b * SEQ
            qh, kh, vh = _heads(q, r0), _heads(k, r0), _heads(v, r0)
            s = jnp.einsum("hqd,hkd->hqk", qh, kh,
                           preferred_element_type=jnp.float32) * scale
            s = s - jnp.max(s, axis=-1, keepdims=True)
            p = jnp.exp(s)
            p = p * pl.reciprocal(jnp.sum(p, axis=-1, keepdims=True), approx=True)
            ctx = jnp.einsum("hqk,hkd->hqd", p, vh,
                             preferred_element_type=jnp.float32)
            # per-head output projection (== concat(heads) @ Wo), then sum heads
            oh = jnp.einsum("hqd,hdo->hqo", ctx, wo_l,
                            preferred_element_type=jnp.float32)
            ob = oh[0]
            for hh in range(1, HEADS):
                ob = ob + oh[hh]
            tok_ref[r0:r0 + SEQ, :] = ob + bo_l
        x = x + tok_ref[...]

        # MLP sub-block (pre-LN)
        h2 = _ln(x, ln2_g_ref[l], ln2_b_ref[l])
        m = jnp.dot(h2, w1_ref[l], preferred_element_type=jnp.float32) + b1_ref[l]
        # TODO(synk): PyTorch nn.GELU defaults to exact erf (CLIP towers often
        # use QuickGELU); tanh approximation is used here.
        m = jax.nn.gelu(m, approximate=True)
        m = jnp.dot(m, w2_ref[l], preferred_element_type=jnp.float32) + b2_ref[l]
        x = x + m

    # --- MLP multimodal projector (fc1 -> gelu -> fc2) ------------------------
    ph = jnp.dot(x, pw1_ref[...], preferred_element_type=jnp.float32) + pb1_ref[...]
    ph = jax.nn.gelu(ph, approximate=True)
    o_ref[...] = (jnp.dot(ph, pw2_ref[...], preferred_element_type=jnp.float32)
                  + pb2_ref[...])
    # TODO(synk): drop_vision_class_token handling lives outside
    # VisionModel.forward in the reference code path, so all SEQ tokens are kept.


# ----------------------------- wrapper -----------------------------
_PARAM_ORDER = (
    "patch_w", "patch_b", "cls", "pos", "ln_pre_g", "ln_pre_b",
    "ln1_g", "ln1_b", "wq", "bq", "wk", "bk", "wv", "bv", "wo", "bo",
    "ln2_g", "ln2_b", "w1", "b1", "w2", "b2",
    "proj_w1", "proj_b1", "proj_w2", "proj_b2",
)


@jax.jit
def vision_model_forward(images, params):
    B, C, H, W = images.shape

    # patch unfold (single XLA op feeding the fused kernel): NCHW ->
    # (B*num_patches, C*ph*pw), channel-major per patch to match the Conv2d
    # weight flattening order (C, ph, pw).
    patches = images.reshape(B, C, GRID, PATCH, GRID, PATCH)
    patches = patches.transpose(0, 2, 4, 1, 3, 5)
    patches = patches.reshape(B * NUM_PATCHES, C * PATCH * PATCH)

    weights = [params[k] for k in _PARAM_ORDER]
    n_in = 1 + len(weights)

    y = pl.pallas_call(
        vision_model_kernel,
        out_shape=jax.ShapeDtypeStruct((B * SEQ, PROJ_OUT), jnp.float32),
        in_specs=[pl.BlockSpec(memory_space=pltpu.MemorySpace.VMEM)
                  for _ in range(n_in)],
        out_specs=pl.BlockSpec(memory_space=pltpu.MemorySpace.VMEM),
        scratch_shapes=[pltpu.VMEM((B * SEQ, HIDDEN), jnp.float32)],
    )(patches, *weights)
    return y.reshape(B, SEQ, PROJ_OUT)


# ----------------------------- params -----------------------------
def init_params(key):
    keys = jax.random.split(key, 12)
    ki = iter(keys)
    s = 0.02
    return {
        # patch embedding == Conv2d(C, HIDDEN, kernel=PATCH, stride=PATCH);
        # conv weight (HIDDEN, C, ph, pw) stored as (C*ph*pw, HIDDEN)
        "patch_w": jax.random.normal(next(ki), (CHANNELS * PATCH * PATCH, HIDDEN)) * s,
        "patch_b": jnp.zeros((1, HIDDEN), jnp.float32),
        "cls": jax.random.normal(next(ki), (1, HIDDEN)) * s,
        "pos": jax.random.normal(next(ki), (SEQ, HIDDEN)) * s,
        "ln_pre_g": jnp.ones((1, HIDDEN), jnp.float32),
        "ln_pre_b": jnp.zeros((1, HIDDEN), jnp.float32),
        # transformer layers, stacked along a leading LAYERS axis
        "ln1_g": jnp.ones((LAYERS, 1, HIDDEN), jnp.float32),
        "ln1_b": jnp.zeros((LAYERS, 1, HIDDEN), jnp.float32),
        "wq": jax.random.normal(next(ki), (LAYERS, HIDDEN, HIDDEN)) * s,
        "bq": jnp.zeros((LAYERS, 1, HIDDEN), jnp.float32),
        "wk": jax.random.normal(next(ki), (LAYERS, HIDDEN, HIDDEN)) * s,
        "bk": jnp.zeros((LAYERS, 1, HIDDEN), jnp.float32),
        "wv": jax.random.normal(next(ki), (LAYERS, HIDDEN, HIDDEN)) * s,
        "bv": jnp.zeros((LAYERS, 1, HIDDEN), jnp.float32),
        # output projection stored per-head: (HIDDEN_in, HIDDEN_out) with the
        # 'in' axis split into (HEADS, HEAD_DIM) -> equivalent to concat @ Wo.
        "wo": jax.random.normal(next(ki), (LAYERS, HEADS, HEAD_DIM, HIDDEN)) * s,
        "bo": jnp.zeros((LAYERS, 1, HIDDEN), jnp.float32),
        "ln2_g": jnp.ones((LAYERS, 1, HIDDEN), jnp.float32),
        "ln2_b": jnp.zeros((LAYERS, 1, HIDDEN), jnp.float32),
        "w1": jax.random.normal(next(ki), (LAYERS, HIDDEN, MLP_HIDDEN)) * s,
        "b1": jnp.zeros((LAYERS, 1, MLP_HIDDEN), jnp.float32),
        "w2": jax.random.normal(next(ki), (LAYERS, MLP_HIDDEN, HIDDEN)) * s,
        "b2": jnp.zeros((LAYERS, 1, HIDDEN), jnp.float32),
        # MLP multimodal projector
        "proj_w1": jax.random.normal(next(ki), (HIDDEN, PROJ_HIDDEN)) * s,
        "proj_b1": jnp.zeros((1, PROJ_HIDDEN), jnp.float32),
        "proj_w2": jax.random.normal(next(ki), (PROJ_HIDDEN, PROJ_OUT)) * s,
        "proj_b2": jnp.zeros((1, PROJ_OUT), jnp.float32),
    }


if __name__ == "__main__":
    key = jax.random.PRNGKey(0)
    k_img, k_par = jax.random.split(key)
    images = jax.random.normal(k_img, (BATCH, CHANNELS, IMG, IMG), dtype=jnp.float32)
    params = init_params(k_par)

    out = vision_model_forward(images, params)
    jax.block_until_ready(out)
    assert out.shape == (BATCH, SEQ, PROJ_OUT), out.shape
    assert bool(jnp.isfinite(out).all())
    print("KERNEL_OK")
</pallas_src>

<mosaic_0001>
module attributes {stable_mosaic.version = 11 : i64} {
  func.func @vision_model_kernel(%arg0: memref<8x192xf32, #tpu.memory_space<vmem>>, %arg1: memref<192x32xf32, #tpu.memory_space<vmem>>, %arg2: memref<1x32xf32, #tpu.memory_space<vmem>>, %arg3: memref<1x32xf32, #tpu.memory_space<vmem>>, %arg4: memref<5x32xf32, #tpu.memory_space<vmem>>, %arg5: memref<1x32xf32, #tpu.memory_space<vmem>>, %arg6: memref<1x32xf32, #tpu.memory_space<vmem>>, %arg7: memref<2x1x32xf32, #tpu.memory_space<vmem>>, %arg8: memref<2x1x32xf32, #tpu.memory_space<vmem>>, %arg9: memref<2x32x32xf32, #tpu.memory_space<vmem>>, %arg10: memref<2x1x32xf32, #tpu.memory_space<vmem>>, %arg11: memref<2x32x32xf32, #tpu.memory_space<vmem>>, %arg12: memref<2x1x32xf32, #tpu.memory_space<vmem>>, %arg13: memref<2x32x32xf32, #tpu.memory_space<vmem>>, %arg14: memref<2x1x32xf32, #tpu.memory_space<vmem>>, %arg15: memref<2x4x8x32xf32, #tpu.memory_space<vmem>>, %arg16: memref<2x1x32xf32, #tpu.memory_space<vmem>>, %arg17: memref<2x1x32xf32, #tpu.memory_space<vmem>>, %arg18: memref<2x1x32xf32, #tpu.memory_space<vmem>>, %arg19: memref<2x32x64xf32, #tpu.memory_space<vmem>>, %arg20: memref<2x1x64xf32, #tpu.memory_space<vmem>>, %arg21: memref<2x64x32xf32, #tpu.memory_space<vmem>>, %arg22: memref<2x1x32xf32, #tpu.memory_space<vmem>>, %arg23: memref<32x64xf32, #tpu.memory_space<vmem>>, %arg24: memref<1x64xf32, #tpu.memory_space<vmem>>, %arg25: memref<64x48xf32, #tpu.memory_space<vmem>>, %arg26: memref<1x48xf32, #tpu.memory_space<vmem>>, %arg27: memref<10x48xf32, #tpu.memory_space<vmem>>, %arg28: memref<10x32xf32, #tpu.memory_space<vmem>>) attributes {dimension_semantics = [], scalar_prefetch = 0 : i64, scratch_operands = 1 : i64, tpu.core_type = #tpu.core_type<tc>} {
    %c0 = arith.constant 0 : index
    %c0_0 = arith.constant 0 : index
    %0 = vector.load %arg0[%c0, %c0_0] : memref<8x192xf32, #tpu.memory_space<vmem>>, vector<8x192xf32>
    %c0_1 = arith.constant 0 : index
    %c0_2 = arith.constant 0 : index
    %1 = vector.load %arg1[%c0_1, %c0_2] : memref<192x32xf32, #tpu.memory_space<vmem>>, vector<192x32xf32>
    %cst = arith.constant dense<0.000000e+00> : vector<8x32xf32>
    %2 = tpu.matmul %0, %1, %cst {dimension_numbers = #tpu.dot_dimension_numbers<[1], [0], [0], [1], [0, 0, 1, 1], [], []>} : vector<8x192xf32>, vector<192x32xf32>, vector<8x32xf32> -> vector<8x32xf32>
    %c0_3 = arith.constant 0 : index
    %c0_4 = arith.constant 0 : index
    %3 = vector.load %arg2[%c0_3, %c0_4] : memref<1x32xf32, #tpu.memory_space<vmem>>, vector<1x32xf32>
    %4 = vector.broadcast %3 : vector<1x32xf32> to vector<8x32xf32>
    %5 = arith.addf %2, %4 : vector<8x32xf32>
    %c0_5 = arith.constant 0 : index
    %c0_6 = arith.constant 0 : index
    %6 = vector.load %arg4[%c0_5, %c0_6] : memref<5x32xf32, #tpu.memory_space<vmem>>, vector<5x32xf32>
    %c0_7 = arith.constant 0 : index
    %c0_8 = arith.constant 0 : index
    %7 = vector.load %arg3[%c0_7, %c0_8] : memref<1x32xf32, #tpu.memory_space<vmem>>, vector<1x32xf32>
    %8 = vector.extract_strided_slice %6 {offsets = [0, 0], sizes = [1, 32], strides = [1, 1]} : vector<5x32xf32> to vector<1x32xf32>
    %9 = arith.addf %7, %8 : vector<1x32xf32>
    %c0_9 = arith.constant 0 : index
    %c0_10 = arith.constant 0 : index
    %10 = vector.load %arg28[%c0_9, %c0_10] : memref<10x32xf32, #tpu.memory_space<vmem>>, vector<1x32xf32>
    tpu.vector_store %arg28[%c0_9, %c0_10], %9 {strides = array<i32>} : memref<10x32xf32, #tpu.memory_space<vmem>>, vector<1x32xf32>,
    %11 = vector.extract_strided_slice %5 {offsets = [0, 0], sizes = [4, 32], strides = [1, 1]} : vector<8x32xf32> to vector<4x32xf32>
    %12 = vector.extract_strided_slice %6 {offsets = [1, 0], sizes = [4, 32], strides = [1, 1]} : vector<5x32xf32> to vector<4x32xf32>
    %13 = arith.addf %11, %12 : vector<4x32xf32>
    %c1 = arith.constant 1 : index
    %c0_11 = arith.constant 0 : index
    %14 = vector.load %arg28[%c1, %c0_11] : memref<10x32xf32, #tpu.memory_space<vmem>>, vector<4x32xf32>
    tpu.vector_store %arg28[%c1, %c0_11], %13 {strides = array<i32>} : memref<10x32xf32, #tpu.memory_space<vmem>>, vector<4x32xf32>,
    %c5 = arith.constant 5 : index
    %c0_12 = arith.constant 0 : index
    %15 = vector.load %arg28[%c5, %c0_12] : memref<10x32xf32, #tpu.memory_space<vmem>>, vector<1x32xf32>
    tpu.vector_store %arg28[%c5, %c0_12], %9 {strides = array<i32>} : memref<10x32xf32, #tpu.memory_space<vmem>>, vector<1x32xf32>,
    %16 = vector.extract_strided_slice %5 {offsets = [4, 0], sizes = [4, 32], strides = [1, 1]} : vector<8x32xf32> to vector<4x32xf32>
    %17 = vector.extract_strided_slice %6 {offsets = [1, 0], sizes = [4, 32], strides = [1, 1]} : vector<5x32xf32> to vector<4x32xf32>
    %18 = arith.addf %16, %17 : vector<4x32xf32>
    %c6 = arith.constant 6 : index
    %c0_13 = arith.constant 0 : index
    %19 = vector.load %arg28[%c6, %c0_13] : memref<10x32xf32, #tpu.memory_space<vmem>>, vector<4x32xf32>
    tpu.vector_store %arg28[%c6, %c0_13], %18 {strides = array<i32>} : memref<10x32xf32, #tpu.memory_space<vmem>>, vector<4x32xf32>,
    %c0_14 = arith.constant 0 : index
    %c0_15 = arith.constant 0 : index
    %20 = vector.load %arg28[%c0_14, %c0_15] : memref<10x32xf32, #tpu.memory_space<vmem>>, vector<10x32xf32>
    %c0_16 = arith.constant 0 : index
    %c0_17 = arith.constant 0 : index
    %21 = vector.load %arg5[%c0_16, %c0_17] : memref<1x32xf32, #tpu.memory_space<vmem>>, vector<1x32xf32>
    %c0_18 = arith.constant 0 : index
    %c0_19 = arith.constant 0 : index
    %22 = vector.load %arg6[%c0_18, %c0_19] : memref<1x32xf32, #tpu.memory_space<vmem>>, vector<1x32xf32>
    %cst_20 = arith.constant dense<0.000000e+00> : vector<10xf32>
    %23 = vector.multi_reduction <add>, %20, %cst_20 [1] : vector<10x32xf32> to vector<10xf32>
    %24 = vector.shape_cast %23 : vector<10xf32> to vector<10x1xf32>
    %cst_21 = arith.constant 3.200000e+01 : f32
    %25 = vector.broadcast %cst_21 : f32 to vector<10x1xf32>
    %26 = arith.divf %24, %25 : vector<10x1xf32>
    %27 = vector.broadcast %26 : vector<10x1xf32> to vector<10x32xf32>
    %28 = arith.subf %20, %27 : vector<10x32xf32>
    %29 = arith.mulf %28, %28 : vector<10x32xf32>
    %cst_22 = arith.constant dense<0.000000e+00> : vector<10xf32>
    %30 = vector.multi_reduction <add>, %29, %cst_22 [1] : vector<10x32xf32> to vector<10xf32>
    %31 = vector.shape_cast %30 : vector<10xf32> to vector<10x1xf32>
    %cst_23 = arith.constant 3.200000e+01 : f32
    %32 = vector.broadcast %cst_23 : f32 to vector<10x1xf32>
    %33 = arith.divf %31, %32 : vector<10x1xf32>
    %34 = vector.broadcast %26 : vector<10x1xf32> to vector<10x32xf32>
    %35 = arith.subf %20, %34 : vector<10x32xf32>
    %cst_24 = arith.constant 9.99999974E-6 : f32
    %36 = vector.broadcast %cst_24 : f32 to vector<10x1xf32>
    %37 = arith.addf %33, %36 : vector<10x1xf32>
    %38 = math.rsqrt %37 : vector<10x1xf32>
    %39 = vector.broadcast %38 : vector<10x1xf32> to vector<10x32xf32>
    %40 = arith.mulf %35, %39 : vector<10x32xf32>
    %41 = vector.broadcast %21 : vector<1x32xf32> to vector<10x32xf32>
    %42 = arith.mulf %40, %41 : vector<10x32xf32>
    %43 = vector.broadcast %22 : vector<1x32xf32> to vector<10x32xf32>
    %44 = arith.addf %42, %43 : vector<10x32xf32>
    %c0_25 = arith.constant 0 : index
    %c0_26 = arith.constant 0 : index
    %c0_27 = arith.constant 0 : index
    %45 = vector.load %arg7[%c0_25, %c0_26, %c0_27] : memref<2x1x32xf32, #tpu.memory_space<vmem>>, vector<1x1x32xf32>
    %46 = vector.shape_cast %45 : vector<1x1x32xf32> to vector<1x32xf32>
    %c0_28 = arith.constant 0 : index
    %c0_29 = arith.constant 0 : index
    %c0_30 = arith.constant 0 : index
    %47 = vector.load %arg8[%c0_28, %c0_29, %c0_30] : memref<2x1x32xf32, #tpu.memory_space<vmem>>, vector<1x1x32xf32>
    %48 = vector.shape_cast %47 : vector<1x1x32xf32> to vector<1x32xf32>
    %cst_31 = arith.constant dense<0.000000e+00> : vector<10xf32>
    %49 = vector.multi_reduction <add>, %44, %cst_31 [1] : vector<10x32xf32> to vector<10xf32>
    %50 = vector.shape_cast %49 : vector<10xf32> to vector<10x1xf32>
    %cst_32 = arith.constant 3.200000e+01 : f32
    %51 = vector.broadcast %cst_32 : f32 to vector<10x1xf32>
    %52 = arith.divf %50, %51 : vector<10x1xf32>
    %53 = vector.broadcast %52 : vector<10x1xf32> to vector<10x32xf32>
    %54 = arith.subf %44, %53 : vector<10x32xf32>
    %55 = arith.mulf %54, %54 : vector<10x32xf32>
    %cst_33 = arith.constant dense<0.000000e+00> : vector<10xf32>
    %56 = vector.multi_reduction <add>, %55, %cst_33 [1] : vector<10x32xf32> to vector<10xf32>
    %57 = vector.shape_cast %56 : vector<10xf32> to vector<10x1xf32>
    %cst_34 = arith.constant 3.200000e+01 : f32
    %58 = vector.broadcast %cst_34 : f32 to vector<10x1xf32>
    %59 = arith.divf %57, %58 : vector<10x1xf32>
    %60 = vector.broadcast %52 : vector<10x1xf32> to vector<10x32xf32>
    %61 = arith.subf %44, %60 : vector<10x32xf32>
    %cst_35 = arith.constant 9.99999974E-6 : f32
    %62 = vector.broadcast %cst_35 : f32 to vector<10x1xf32>
    %63 = arith.addf %59, %62 : vector<10x1xf32>
    %64 = math.rsqrt %63 : vector<10x1xf32>
    %65 = vector.broadcast %64 : vector<10x1xf32> to vector<10x32xf32>
    %66 = arith.mulf %61, %65 : vector<10x32xf32>
    %67 = vector.broadcast %46 : vector<1x32xf32> to vector<10x32xf32>
    %68 = arith.mulf %66, %67 : vector<10x32xf32>
    %69 = vector.broadcast %48 : vector<1x32xf32> to vector<10x32xf32>
    %70 = arith.addf %68, %69 : vector<10x32xf32>
    %c0_36 = arith.constant 0 : index
    %c0_37 = arith.constant 0 : index
    %c0_38 = arith.constant 0 : index
    %71 = vector.load %arg9[%c0_36, %c0_37, %c0_38] : memref<2x32x32xf32, #tpu.memory_space<vmem>>, vector<1x32x32xf32>
    %72 = vector.shape_cast %71 : vector<1x32x32xf32> to vector<32x32xf32>
    %cst_39 = arith.constant dense<0.000000e+00> : vector<10x32xf32>
    %73 = tpu.matmul %70, %72, %cst_39 {dimension_numbers = #tpu.dot_dimension_numbers<[1], [0], [0], [1], [0, 0, 1, 1], [], []>} : vector<10x32xf32>, vector<32x32xf32>, vector<10x32xf32> -> vector<10x32xf32>
    %c0_40 = arith.constant 0 : index
    %c0_41 = arith.constant 0 : index
    %c0_42 = arith.constant 0 : index
    %74 = vector.load %arg10[%c0_40, %c0_41, %c0_42] : memref<2x1x32xf32, #tpu.memory_space<vmem>>, vector<1x1x32xf32>
    %75 = vector.shape_cast %74 : vector<1x1x32xf32> to vector<1x32xf32>
    %76 = vector.broadcast %75 : vector<1x32xf32> to vector<10x32xf32>
    %77 = arith.addf %73, %76 : vector<10x32xf32>
    %c0_43 = arith.constant 0 : index
    %c0_44 = arith.constant 0 : index
    %c0_45 = arith.constant 0 : index
    %78 = vector.load %arg11[%c0_43, %c0_44, %c0_45] : memref<2x32x32xf32, #tpu.memory_space<vmem>>, vector<1x32x32xf32>
    %79 = vector.shape_cast %78 : vector<1x32x32xf32> to vector<32x32xf32>
    %cst_46 = arith.constant dense<0.000000e+00> : vector<10x32xf32>
    %80 = tpu.matmul %70, %79, %cst_46 {dimension_numbers = #tpu.dot_dimension_numbers<[1], [0], [0], [1], [0, 0, 1, 1], [], []>} : vector<10x32xf32>, vector<32x32xf32>, vector<10x32xf32> -> vector<10x32xf32>
    %c0_47 = arith.constant 0 : index
    %c0_48 = arith.constant 0 : index
    %c0_49 = arith.constant 0 : index
    %81 = vector.load %arg12[%c0_47, %c0_48, %c0_49] : memref<2x1x32xf32, #tpu.memory_space<vmem>>, vector<1x1x32xf32>
    %82 = vector.shape_cast %81 : vector<1x1x32xf32> to vector<1x32xf32>
    %83 = vector.broadcast %82 : vector<1x32xf32> to vector<10x32xf32>
    %84 = arith.addf %80, %83 : vector<10x32xf32>
    %c0_50 = arith.constant 0 : index
    %c0_51 = arith.constant 0 : index
    %c0_52 = arith.constant 0 : index
    %85 = vector.load %arg13[%c0_50, %c0_51, %c0_52] : memref<2x32x32xf32, #tpu.memory_space<vmem>>, vector<1x32x32xf32>
    %86 = vector.shape_cast %85 : vector<1x32x32xf32> to vector<32x32xf32>
    %cst_53 = arith.constant dense<0.000000e+00> : vector<10x32xf32>
    %87 = tpu.matmul %70, %86, %cst_53 {dimension_numbers = #tpu.dot_dimension_numbers<[1], [0], [0], [1], [0, 0, 1, 1], [], []>} : vector<10x32xf32>, vector<32x32xf32>, vector<10x32xf32> -> vector<10x32xf32>
    %c0_54 = arith.constant 0 : index
    %c0_55 = arith.constant 0 : index
    %c0_56 = arith.constant 0 : index
    %88 = vector.load %arg14[%c0_54, %c0_55, %c0_56] : memref<2x1x32xf32, #tpu.memory_space<vmem>>, vector<1x1x32xf32>
    %89 = vector.shape_cast %88 : vector<1x1x32xf32> to vector<1x32xf32>
    %90 = vector.broadcast %89 : vector<1x32xf32> to vector<10x32xf32>
    %91 = arith.addf %87, %90 : vector<10x32xf32>
    %c0_57 = arith.constant 0 : index
    %c0_58 = arith.constant 0 : index
    %c0_59 = arith.constant 0 : index
    %c0_60 = arith.constant 0 : index
    %92 = vector.load %arg15[%c0_57, %c0_58, %c0_59, %c0_60] : memref<2x4x8x32xf32, #tpu.memory_space<vmem>>, vector<1x4x8x32xf32>
    %93 = vector.shape_cast %92 : vector<1x4x8x32xf32> to vector<4x8x32xf32>
    %c0_61 = arith.constant 0 : index
    %c0_62 = arith.constant 0 : index
    %c0_63 = arith.constant 0 : index
    %94 = vector.load %arg16[%c0_61, %c0_62, %c0_63] : memref<2x1x32xf32, #tpu.memory_space<vmem>>, vector<1x1x32xf32>
    %95 = vector.shape_cast %94 : vector<1x1x32xf32> to vector<1x32xf32>
    %96 = vector.extract_strided_slice %77 {offsets = [0, 0], sizes = [5, 8], strides = [1, 1]} : vector<10x32xf32> to vector<5x8xf32>
    %97 = vector.extract_strided_slice %77 {offsets = [0, 8], sizes = [5, 8], strides = [1, 1]} : vector<10x32xf32> to vector<5x8xf32>
    %98 = vector.extract_strided_slice %77 {offsets = [0, 16], sizes = [5, 8], strides = [1, 1]} : vector<10x32xf32> to vector<5x8xf32>
    %99 = vector.extract_strided_slice %77 {offsets = [0, 24], sizes = [5, 8], strides = [1, 1]} : vector<10x32xf32> to vector<5x8xf32>
    %100 = vector.shape_cast %96 : vector<5x8xf32> to vector<1x5x8xf32>
    %101 = vector.shape_cast %97 : vector<5x8xf32> to vector<1x5x8xf32>
    %102 = vector.shape_cast %98 : vector<5x8xf32> to vector<1x5x8xf32>
    %103 = vector.shape_cast %99 : vector<5x8xf32> to vector<1x5x8xf32>
    %104 = tpu.concatenate %100, %101, %102, %103 in 0 : vector<1x5x8xf32>, vector<1x5x8xf32>, vector<1x5x8xf32>, vector<1x5x8xf32> -> vector<4x5x8xf32>
    %105 = vector.extract_strided_slice %84 {offsets = [0, 0], sizes = [5, 8], strides = [1, 1]} : vector<10x32xf32> to vector<5x8xf32>
    %106 = vector.extract_strided_slice %84 {offsets = [0, 8], sizes = [5, 8], strides = [1, 1]} : vector<10x32xf32> to vector<5x8xf32>
    %107 = vector.extract_strided_slice %84 {offsets = [0, 16], sizes = [5, 8], strides = [1, 1]} : vector<10x32xf32> to vector<5x8xf32>
    %108 = vector.extract_strided_slice %84 {offsets = [0, 24], sizes = [5, 8], strides = [1, 1]} : vector<10x32xf32> to vector<5x8xf32>
    %109 = vector.shape_cast %105 : vector<5x8xf32> to vector<1x5x8xf32>
    %110 = vector.shape_cast %106 : vector<5x8xf32> to vector<1x5x8xf32>
    %111 = vector.shape_cast %107 : vector<5x8xf32> to vector<1x5x8xf32>
    %112 = vector.shape_cast %108 : vector<5x8xf32> to vector<1x5x8xf32>
    %113 = tpu.concatenate %109, %110, %111, %112 in 0 : vector<1x5x8xf32>, vector<1x5x8xf32>, vector<1x5x8xf32>, vector<1x5x8xf32> -> vector<4x5x8xf32>
    %114 = vector.extract_strided_slice %91 {offsets = [0, 0], sizes = [5, 8], strides = [1, 1]} : vector<10x32xf32> to vector<5x8xf32>
    %115 = vector.extract_strided_slice %91 {offsets = [0, 8], sizes = [5, 8], strides = [1, 1]} : vector<10x32xf32> to vector<5x8xf32>
    %116 = vector.extract_strided_slice %91 {offsets = [0, 16], sizes = [5, 8], strides = [1, 1]} : vector<10x32xf32> to vector<5x8xf32>
    %117 = vector.extract_strided_slice %91 {offsets = [0, 24], sizes = [5, 8], strides = [1, 1]} : vector<10x32xf32> to vector<5x8xf32>
    %118 = vector.shape_cast %114 : vector<5x8xf32> to vector<1x5x8xf32>
    %119 = vector.shape_cast %115 : vector<5x8xf32> to vector<1x5x8xf32>
    %120 = vector.shape_cast %116 : vector<5x8xf32> to vector<1x5x8xf32>
    %121 = vector.shape_cast %117 : vector<5x8xf32> to vector<1x5x8xf32>
    %122 = tpu.concatenate %118, %119, %120, %121 in 0 : vector<1x5x8xf32>, vector<1x5x8xf32>, vector<1x5x8xf32>, vector<1x5x8xf32> -> vector<4x5x8xf32>
    "tpu.trace_start"() <{level = 10 : i32, message = "hqd,hkd->hqk"}> : () -> ()
    %cst_64 = arith.constant dense<0.000000e+00> : vector<4x5x5xf32>
    %123 = tpu.matmul %104, %113, %cst_64 {dimension_numbers = #tpu.dot_dimension_numbers<[2], [2], [1], [1], [0, 0, 0, 1, 1, 1], [0], [0]>} : vector<4x5x8xf32>, vector<4x5x8xf32>, vector<4x5x5xf32> -> vector<4x5x5xf32>
    "tpu.trace_stop"() : () -> ()
    %cst_65 = arith.constant 0.353553385 : f32
    %124 = vector.broadcast %cst_65 : f32 to vector<4x5x5xf32>
    %125 = arith.mulf %123, %124 : vector<4x5x5xf32>
    %cst_66 = arith.constant dense<0xFF800000> : vector<4x5xf32>
    %126 = vector.multi_reduction <maximumf>, %125, %cst_66 [2] : vector<4x5x5xf32> to vector<4x5xf32>
    %127 = vector.shape_cast %126 : vector<4x5xf32> to vector<4x5x1xf32>
    %128 = vector.broadcast %127 : vector<4x5x1xf32> to vector<4x5x5xf32>
    %129 = arith.subf %125, %128 : vector<4x5x5xf32>
    %130 = math.exp %129 : vector<4x5x5xf32>
    %cst_67 = arith.constant dense<0.000000e+00> : vector<4x5xf32>
    %131 = vector.multi_reduction <add>, %130, %cst_67 [2] : vector<4x5x5xf32> to vector<4x5xf32>
    %132 = vector.shape_cast %131 : vector<4x5xf32> to vector<4x5x1xf32>
    %133 = tpu.reciprocal %132 {approx = true} : vector<4x5x1xf32> -> vector<4x5x1xf32>
    %134 = vector.broadcast %133 : vector<4x5x1xf32> to vector<4x5x5xf32>
    %135 = arith.mulf %130, %134 : vector<4x5x5xf32>
    "tpu.trace_start"() <{level = 10 : i32, message = "hqk,hkd->hqd"}> : () -> ()
    %cst_68 = arith.constant dense<0.000000e+00> : vector<4x5x8xf32>
    %136 = tpu.matmul %135, %122, %cst_68 {dimension_numbers = #tpu.dot_dimension_numbers<[2], [1], [1], [2], [0, 0, 0, 1, 1, 2], [0], [0]>} : vector<4x5x5xf32>, vector<4x5x8xf32>, vector<4x5x8xf32> -> vector<4x5x8xf32>
    "tpu.trace_stop"() : () -> ()
    "tpu.trace_start"() <{level = 10 : i32, message = "hqd,hdo->hqo"}> : () -> ()
    %cst_69 = arith.constant dense<0.000000e+00> : vector<4x5x32xf32>
    %137 = tpu.matmul %136, %93, %cst_69 {dimension_numbers = #tpu.dot_dimension_numbers<[2], [1], [1], [2], [0, 0, 0, 1, 1, 2], [0], [0]>} : vector<4x5x8xf32>, vector<4x8x32xf32>, vector<4x5x32xf32> -> vector<4x5x32xf32>
    "tpu.trace_stop"() : () -> ()
    %138 = vector.extract_strided_slice %137 {offsets = [0, 0, 0], sizes = [1, 5, 32], strides = [1, 1, 1]} : vector<4x5x32xf32> to vector<1x5x32xf32>
    %139 = vector.shape_cast %138 : vector<1x5x32xf32> to vector<5x32xf32>
    %140 = vector.extract_strided_slice %137 {offsets = [1, 0, 0], sizes = [1, 5, 32], strides = [1, 1, 1]} : vector<4x5x32xf32> to vector<1x5x32xf32>
    %141 = vector.shape_cast %140 : vector<1x5x32xf32> to vector<5x32xf32>
    %142 = arith.addf %139, %141 : vector<5x32xf32>
    %143 = vector.extract_strided_slice %137 {offsets = [2, 0, 0], sizes = [1, 5, 32], strides = [1, 1, 1]} : vector<4x5x32xf32> to vector<1x5x32xf32>
    %144 = vector.shape_cast %143 : vector<1x5x32xf32> to vector<5x32xf32>
    %145 = arith.addf %142, %144 : vector<5x32xf32>
    %146 = vector.extract_strided_slice %137 {offsets = [3, 0, 0], sizes = [1, 5, 32], strides = [1, 1, 1]} : vector<4x5x32xf32> to vector<1x5x32xf32>
    %147 = vector.shape_cast %146 : vector<1x5x32xf32> to vector<5x32xf32>
    %148 = arith.addf %145, %147 : vector<5x32xf32>
    %149 = vector.broadcast %95 : vector<1x32xf32> to vector<5x32xf32>
    %150 = arith.addf %148, %149 : vector<5x32xf32>
    %c0_70 = arith.constant 0 : index
    %c0_71 = arith.constant 0 : index
    %151 = vector.load %arg28[%c0_70, %c0_71] : memref<10x32xf32, #tpu.memory_space<vmem>>, vector<5x32xf32>
    tpu.vector_store %arg28[%c0_70, %c0_71], %150 {strides = array<i32>} : memref<10x32xf32, #tpu.memory_space<vmem>>, vector<5x32xf32>,
    %152 = vector.extract_strided_slice %77 {offsets = [5, 0], sizes = [5, 8], strides = [1, 1]} : vector<10x32xf32> to vector<5x8xf32>
    %153 = vector.extract_strided_slice %77 {offsets = [5, 8], sizes = [5, 8], strides = [1, 1]} : vector<10x32xf32> to vector<5x8xf32>
    %154 = vector.extract_strided_slice %77 {offsets = [5, 16], sizes = [5, 8], strides = [1, 1]} : vector<10x32xf32> to vector<5x8xf32>
    %155 = vector.extract_strided_slice %77 {offsets = [5, 24], sizes = [5, 8], strides = [1, 1]} : vector<10x32xf32> to vector<5x8xf32>
    %156 = vector.shape_cast %152 : vector<5x8xf32> to vector<1x5x8xf32>
    %157 = vector.shape_cast %153 : vector<5x8xf32> to vector<1x5x8xf32>
    %158 = vector.shape_cast %154 : vector<5x8xf32> to vector<1x5x8xf32>
    %159 = vector.shape_cast %155 : vector<5x8xf32> to vector<1x5x8xf32>
    %160 = tpu.concatenate %156, %157, %158, %159 in 0 : vector<1x5x8xf32>, vector<1x5x8xf32>, vector<1x5x8xf32>, vector<1x5x8xf32> -> vector<4x5x8xf32>
    %161 = vector.extract_strided_slice %84 {offsets = [5, 0], sizes = [5, 8], strides = [1, 1]} : vector<10x32xf32> to vector<5x8xf32>
    %162 = vector.extract_strided_slice %84 {offsets = [5, 8], sizes = [5, 8], strides = [1, 1]} : vector<10x32xf32> to vector<5x8xf32>
    %163 = vector.extract_strided_slice %84 {offsets = [5, 16], sizes = [5, 8], strides = [1, 1]} : vector<10x32xf32> to vector<5x8xf32>
    %164 = vector.extract_strided_slice %84 {offsets = [5, 24], sizes = [5, 8], strides = [1, 1]} : vector<10x32xf32> to vector<5x8xf32>
    %165 = vector.shape_cast %161 : vector<5x8xf32> to vector<1x5x8xf32>
    %166 = vector.shape_cast %162 : vector<5x8xf32> to vector<1x5x8xf32>
    %167 = vector.shape_cast %163 : vector<5x8xf32> to vector<1x5x8xf32>
    %168 = vector.shape_cast %164 : vector<5x8xf32> to vector<1x5x8xf32>
    %169 = tpu.concatenate %165, %166, %167, %168 in 0 : vector<1x5x8xf32>, vector<1x5x8xf32>, vector<1x5x8xf32>, vector<1x5x8xf32> -> vector<4x5x8xf32>
    %170 = vector.extract_strided_slice %91 {offsets = [5, 0], sizes = [5, 8], strides = [1, 1]} : vector<10x32xf32> to vector<5x8xf32>
    %171 = vector.extract_strided_slice %91 {offsets = [5, 8], sizes = [5, 8], strides = [1, 1]} : vector<10x32xf32> to vector<5x8xf32>
    %172 = vector.extract_strided_slice %91 {offsets = [5, 16], sizes = [5, 8], strides = [1, 1]} : vector<10x32xf32> to vector<5x8xf32>
    %173 = vector.extract_strided_slice %91 {offsets = [5, 24], sizes = [5, 8], strides = [1, 1]} : vector<10x32xf32> to vector<5x8xf32>
    %174 = vector.shape_cast %170 : vector<5x8xf32> to vector<1x5x8xf32>
    %175 = vector.shape_cast %171 : vector<5x8xf32> to vector<1x5x8xf32>
    %176 = vector.shape_cast %172 : vector<5x8xf32> to vector<1x5x8xf32>
    %177 = vector.shape_cast %173 : vector<5x8xf32> to vector<1x5x8xf32>
    %178 = tpu.concatenate %174, %175, %176, %177 in 0 : vector<1x5x8xf32>, vector<1x5x8xf32>, vector<1x5x8xf32>, vector<1x5x8xf32> -> vector<4x5x8xf32>
    "tpu.trace_start"() <{level = 10 : i32, message = "hqd,hkd->hqk"}> : () -> ()
    %cst_72 = arith.constant dense<0.000000e+00> : vector<4x5x5xf32>
    %179 = tpu.matmul %160, %169, %cst_72 {dimension_numbers = #tpu.dot_dimension_numbers<[2], [2], [1], [1], [0, 0, 0, 1, 1, 1], [0], [0]>} : vector<4x5x8xf32>, vector<4x5x8xf32>, vector<4x5x5xf32> -> vector<4x5x5xf32>
    "tpu.trace_stop"() : () -> ()
    %cst_73 = arith.constant 0.353553385 : f32
    %180 = vector.broadcast %cst_73 : f32 to vector<4x5x5xf32>
    %181 = arith.mulf %179, %180 : vector<4x5x5xf32>
    %cst_74 = arith.constant dense<0xFF800000> : vector<4x5xf32>
    %182 = vector.multi_reduction <maximumf>, %181, %cst_74 [2] : vector<4x5x5xf32> to vector<4x5xf32>
    %183 = vector.shape_cast %182 : vector<4x5xf32> to vector<4x5x1xf32>
    %184 = vector.broadcast %183 : vector<4x5x1xf32> to vector<4x5x5xf32>
    %185 = arith.subf %181, %184 : vector<4x5x5xf32>
    %186 = math.exp %185 : vector<4x5x5xf32>
    %cst_75 = arith.constant dense<0.000000e+00> : vector<4x5xf32>
    %187 = vector.multi_reduction <add>, %186, %cst_75 [2] : vector<4x5x5xf32> to vector<4x5xf32>
    %188 = vector.shape_cast %187 : vector<4x5xf32> to vector<4x5x1xf32>
    %189 = tpu.reciprocal %188 {approx = true} : vector<4x5x1xf32> -> vector<4x5x1xf32>
    %190 = vector.broadcast %189 : vector<4x5x1xf32> to vector<4x5x5xf32>
    %191 = arith.mulf %186, %190 : vector<4x5x5xf32>
    "tpu.trace_start"() <{level = 10 : i32, message = "hqk,hkd->hqd"}> : () -> ()
    %cst_76 = arith.constant dense<0.000000e+00> : vector<4x5x8xf32>
    %192 = tpu.matmul %191, %178, %cst_76 {dimension_numbers = #tpu.dot_dimension_numbers<[2], [1], [1], [2], [0, 0, 0, 1, 1, 2], [0], [0]>} : vector<4x5x5xf32>, vector<4x5x8xf32>, vector<4x5x8xf32> -> vector<4x5x8xf32>
    "tpu.trace_stop"() : () -> ()
    "tpu.trace_start"() <{level = 10 : i32, message = "hqd,hdo->hqo"}> : () -> ()
    %cst_77 = arith.constant dense<0.000000e+00> : vector<4x5x32xf32>
    %193 = tpu.matmul %192, %93, %cst_77 {dimension_numbers = #tpu.dot_dimension_numbers<[2], [1], [1], [2], [0, 0, 0, 1, 1, 2], [0], [0]>} : vector<4x5x8xf32>, vector<4x8x32xf32>, vector<4x5x32xf32> -> vector<4x5x32xf32>
    "tpu.trace_stop"() : () -> ()
    %194 = vector.extract_strided_slice %193 {offsets = [0, 0, 0], sizes = [1, 5, 32], strides = [1, 1, 1]} : vector<4x5x32xf32> to vector<1x5x32xf32>
    %195 = vector.shape_cast %194 : vector<1x5x32xf32> to vector<5x32xf32>
    %196 = vector.extract_strided_slice %193 {offsets = [1, 0, 0], sizes = [1, 5, 32], strides = [1, 1, 1]} : vector<4x5x32xf32> to vector<1x5x32xf32>
    %197 = vector.shape_cast %196 : vector<1x5x32xf32> to vector<5x32xf32>
    %198 = arith.addf %195, %197 : vector<5x32xf32>
    %199 = vector.extract_strided_slice %193 {offsets = [2, 0, 0], sizes = [1, 5, 32], strides = [1, 1, 1]} : vector<4x5x32xf32> to vector<1x5x32xf32>
    %200 = vector.shape_cast %199 : vector<1x5x32xf32> to vector<5x32xf32>
    %201 = arith.addf %198, %200 : vector<5x32xf32>
    %202 = vector.extract_strided_slice %193 {offsets = [3, 0, 0], sizes = [1, 5, 32], strides = [1, 1, 1]} : vector<4x5x32xf32> to vector<1x5x32xf32>
    %203 = vector.shape_cast %202 : vector<1x5x32xf32> to vector<5x32xf32>
    %204 = arith.addf %201, %203 : vector<5x32xf32>
    %205 = vector.broadcast %95 : vector<1x32xf32> to vector<5x32xf32>
    %206 = arith.addf %204, %205 : vector<5x32xf32>
    %c5_78 = arith.constant 5 : index
    %c0_79 = arith.constant 0 : index
    %207 = vector.load %arg28[%c5_78, %c0_79] : memref<10x32xf32, #tpu.memory_space<vmem>>, vector<5x32xf32>
    tpu.vector_store %arg28[%c5_78, %c0_79], %206 {strides = array<i32>} : memref<10x32xf32, #tpu.memory_space<vmem>>, vector<5x32xf32>,
    %c0_80 = arith.constant 0 : index
    %c0_81 = arith.constant 0 : index
    %208 = vector.load %arg28[%c0_80, %c0_81] : memref<10x32xf32, #tpu.memory_space<vmem>>, vector<10x32xf32>
    %209 = arith.addf %44, %208 : vector<10x32xf32>
    %c0_82 = arith.constant 0 : index
    %c0_83 = arith.constant 0 : index
    %c0_84 = arith.constant 0 : index
    %210 = vector.load %arg17[%c0_82, %c0_83, %c0_84] : memref<2x1x32xf32, #tpu.memory_space<vmem>>, vector<1x1x32xf32>
    %211 = vector.shape_cast %210 : vector<1x1x32xf32> to vector<1x32xf32>
    %c0_85 = arith.constant 0 : index
    %c0_86 = arith.constant 0 : index
    %c0_87 = arith.constant 0 : index
    %212 = vector.load %arg18[%c0_85, %c0_86, %c0_87] : memref<2x1x32xf32, #tpu.memory_space<vmem>>, vector<1x1x32xf32>
    %213 = vector.shape_cast %212 : vector<1x1x32xf32> to vector<1x32xf32>
    %cst_88 = arith.constant dense<0.000000e+00> : vector<10xf32>
    %214 = vector.multi_reduction <add>, %209, %cst_88 [1] : vector<10x32xf32> to vector<10xf32>
    %215 = vector.shape_cast %214 : vector<10xf32> to vector<10x1xf32>
    %cst_89 = arith.constant 3.200000e+01 : f32
    %216 = vector.broadcast %cst_89 : f32 to vector<10x1xf32>
    %217 = arith.divf %215, %216 : vector<10x1xf32>
    %218 = vector.broadcast %217 : vector<10x1xf32> to vector<10x32xf32>
    %219 = arith.subf %209, %218 : vector<10x32xf32>
    %220 = arith.mulf %219, %219 : vector<10x32xf32>
    %cst_90 = arith.constant dense<0.000000e+00> : vector<10xf32>
    %221 = vector.multi_reduction <add>, %220, %cst_90 [1] : vector<10x32xf32> to vector<10xf32>
    %222 = vector.shape_cast %221 : vector<10xf32> to vector<10x1xf32>
    %cst_91 = arith.constant 3.200000e+01 : f32
    %223 = vector.broadcast %cst_91 : f32 to vector<10x1xf32>
    %224 = arith.divf %222, %223 : vector<10x1xf32>
    %225 = vector.broadcast %217 : vector<10x1xf32> to vector<10x32xf32>
    %226 = arith.subf %209, %225 : vector<10x32xf32>
    %cst_92 = arith.constant 9.99999974E-6 : f32
    %227 = vector.broadcast %cst_92 : f32 to vector<10x1xf32>
    %228 = arith.addf %224, %227 : vector<10x1xf32>
    %229 = math.rsqrt %228 : vector<10x1xf32>
    %230 = vector.broadcast %229 : vector<10x1xf32> to vector<10x32xf32>
    %231 = arith.mulf %226, %230 : vector<10x32xf32>
    %232 = vector.broadcast %211 : vector<1x32xf32> to vector<10x32xf32>
    %233 = arith.mulf %231, %232 : vector<10x32xf32>
    %234 = vector.broadcast %213 : vector<1x32xf32> to vector<10x32xf32>
    %235 = arith.addf %233, %234 : vector<10x32xf32>
    %c0_93 = arith.constant 0 : index
    %c0_94 = arith.constant 0 : index
    %c0_95 = arith.constant 0 : index
    %236 = vector.load %arg19[%c0_93, %c0_94, %c0_95] : memref<2x32x64xf32, #tpu.memory_space<vmem>>, vector<1x32x64xf32>
    %237 = vector.shape_cast %236 : vector<1x32x64xf32> to vector<32x64xf32>
    %cst_96 = arith.constant dense<0.000000e+00> : vector<10x64xf32>
    %238 = tpu.matmul %235, %237, %cst_96 {dimension_numbers = #tpu.dot_dimension_numbers<[1], [0], [0], [1], [0, 0, 1, 1], [], []>} : vector<10x32xf32>, vector<32x64xf32>, vector<10x64xf32> -> vector<10x64xf32>
    %c0_97 = arith.constant 0 : index
    %c0_98 = arith.constant 0 : index
    %c0_99 = arith.constant 0 : index
    %239 = vector.load %arg20[%c0_97, %c0_98, %c0_99] : memref<2x1x64xf32, #tpu.memory_space<vmem>>, vector<1x1x64xf32>
    %240 = vector.shape_cast %239 : vector<1x1x64xf32> to vector<1x64xf32>
    %241 = vector.broadcast %240 : vector<1x64xf32> to vector<10x64xf32>
    %242 = arith.addf %238, %241 : vector<10x64xf32>
    %243 = arith.mulf %242, %242 : vector<10x64xf32>
    %244 = arith.mulf %242, %243 : vector<10x64xf32>
    %cst_100 = arith.constant 4.471500e-02 : f32
    %245 = vector.broadcast %cst_100 : f32 to vector<10x64xf32>
    %246 = arith.mulf %245, %244 : vector<10x64xf32>
    %247 = arith.addf %242, %246 : vector<10x64xf32>
    %cst_101 = arith.constant 0.797884583 : f32
    %248 = vector.broadcast %cst_101 : f32 to vector<10x64xf32>
    %249 = arith.mulf %248, %247 : vector<10x64xf32>
    %250 = math.tanh %249 : vector<10x64xf32>
    %cst_102 = arith.constant 1.000000e+00 : f32
    %251 = vector.broadcast %cst_102 : f32 to vector<10x64xf32>
    %252 = arith.addf %251, %250 : vector<10x64xf32>
    %cst_103 = arith.constant 5.000000e-01 : f32
    %253 = vector.broadcast %cst_103 : f32 to vector<10x64xf32>
    %254 = arith.mulf %253, %252 : vector<10x64xf32>
    %255 = arith.mulf %242, %254 : vector<10x64xf32>
    %c0_104 = arith.constant 0 : index
    %c0_105 = arith.constant 0 : index
    %c0_106 = arith.constant 0 : index
    %256 = vector.load %arg21[%c0_104, %c0_105, %c0_106] : memref<2x64x32xf32, #tpu.memory_space<vmem>>, vector<1x64x32xf32>
    %257 = vector.shape_cast %256 : vector<1x64x32xf32> to vector<64x32xf32>
    %cst_107 = arith.constant dense<0.000000e+00> : vector<10x32xf32>
    %258 = tpu.matmul %255, %257, %cst_107 {dimension_numbers = #tpu.dot_dimension_numbers<[1], [0], [0], [1], [0, 0, 1, 1], [], []>} : vector<10x64xf32>, vector<64x32xf32>, vector<10x32xf32> -> vector<10x32xf32>
    %c0_108 = arith.constant 0 : index
    %c0_109 = arith.constant 0 : index
    %c0_110 = arith.constant 0 : index
    %259 = vector.load %arg22[%c0_108, %c0_109, %c0_110] : memref<2x1x32xf32, #tpu.memory_space<vmem>>, vector<1x1x32xf32>
    %260 = vector.shape_cast %259 : vector<1x1x32xf32> to vector<1x32xf32>
    %261 = vector.broadcast %260 : vector<1x32xf32> to vector<10x32xf32>
    %262 = arith.addf %258, %261 : vector<10x32xf32>
    %263 = arith.addf %209, %262 : vector<10x32xf32>
    %c1_111 = arith.constant 1 : index
    %c0_112 = arith.constant 0 : index
    %c0_113 = arith.constant 0 : index
    %264 = vector.load %arg7[%c1_111, %c0_112, %c0_113] : memref<2x1x32xf32, #tpu.memory_space<vmem>>, vector<1x1x32xf32>
    %265 = vector.shape_cast %264 : vector<1x1x32xf32> to vector<1x32xf32>
    %c1_114 = arith.constant 1 : index
    %c0_115 = arith.constant 0 : index
    %c0_116 = arith.constant 0 : index
    %266 = vector.load %arg8[%c1_114, %c0_115, %c0_116] : memref<2x1x32xf32, #tpu.memory_space<vmem>>, vector<1x1x32xf32>
    %267 = vector.shape_cast %266 : vector<1x1x32xf32> to vector<1x32xf32>
    %cst_117 = arith.constant dense<0.000000e+00> : vector<10xf32>
    %268 = vector.multi_reduction <add>, %263, %cst_117 [1] : vector<10x32xf32> to vector<10xf32>
    %269 = vector.shape_cast %268 : vector<10xf32> to vector<10x1xf32>
    %cst_118 = arith.constant 3.200000e+01 : f32
    %270 = vector.broadcast %cst_118 : f32 to vector<10x1xf32>
    %271 = arith.divf %269, %270 : vector<10x1xf32>
    %272 = vector.broadcast %271 : vector<10x1xf32> to vector<10x32xf32>
    %273 = arith.subf %263, %272 : vector<10x32xf32>
    %274 = arith.mulf %273, %273 : vector<10x32xf32>
    %cst_119 = arith.constant dense<0.000000e+00> : vector<10xf32>
    %275 = vector.multi_reduction <add>, %274, %cst_119 [1] : vector<10x32xf32> to vector<10xf32>
    %276 = vector.shape_cast %275 : vector<10xf32> to vector<10x1xf32>
    %cst_120 = arith.constant 3.200000e+01 : f32
    %277 = vector.broadcast %cst_120 : f32 to vector<10x1xf32>
    %278 = arith.divf %276, %277 : vector<10x1xf32>
    %279 = vector.broadcast %271 : vector<10x1xf32> to vector<10x32xf32>
    %280 = arith.subf %263, %279 : vector<10x32xf32>
    %cst_121 = arith.constant 9.99999974E-6 : f32
    %281 = vector.broadcast %cst_121 : f32 to vector<10x1xf32>
    %282 = arith.addf %278, %281 : vector<10x1xf32>
    %283 = math.rsqrt %282 : vector<10x1xf32>
    %284 = vector.broadcast %283 : vector<10x1xf32> to vector<10x32xf32>
    %285 = arith.mulf %280, %284 : vector<10x32xf32>
    %286 = vector.broadcast %265 : vector<1x32xf32> to vector<10x32xf32>
    %287 = arith.mulf %285, %286 : vector<10x32xf32>
    %288 = vector.broadcast %267 : vector<1x32xf32> to vector<10x32xf32>
    %289 = arith.addf %287, %288 : vector<10x32xf32>
    %c1_122 = arith.constant 1 : index
    %c0_123 = arith.constant 0 : index
    %c0_124 = arith.constant 0 : index
    %290 = vector.load %arg9[%c1_122, %c0_123, %c0_124] : memref<2x32x32xf32, #tpu.memory_space<vmem>>, vector<1x32x32xf32>
    %291 = vector.shape_cast %290 : vector<1x32x32xf32> to vector<32x32xf32>
    %cst_125 = arith.constant dense<0.000000e+00> : vector<10x32xf32>
    %292 = tpu.matmul %289, %291, %cst_125 {dimension_numbers = #tpu.dot_dimension_numbers<[1], [0], [0], [1], [0, 0, 1, 1], [], []>} : vector<10x32xf32>, vector<32x32xf32>, vector<10x32xf32> -> vector<10x32xf32>
    %c1_126 = arith.constant 1 : index
    %c0_127 = arith.constant 0 : index
    %c0_128 = arith.constant 0 : index
    %293 = vector.load %arg10[%c1_126, %c0_127, %c0_128] : memref<2x1x32xf32, #tpu.memory_space<vmem>>, vector<1x1x32xf32>
    %294 = vector.shape_cast %293 : vector<1x1x32xf32> to vector<1x32xf32>
    %295 = vector.broadcast %294 : vector<1x32xf32> to vector<10x32xf32>
    %296 = arith.addf %292, %295 : vector<10x32xf32>
    %c1_129 = arith.constant 1 : index
    %c0_130 = arith.constant 0 : index
    %c0_131 = arith.constant 0 : index
    %297 = vector.load %arg11[%c1_129, %c0_130, %c0_131] : memref<2x32x32xf32, #tpu.memory_space<vmem>>, vector<1x32x32xf32>
    %298 = vector.shape_cast %297 : vector<1x32x32xf32> to vector<32x32xf32>
    %cst_132 = arith.constant dense<0.000000e+00> : vector<10x32xf32>
    %299 = tpu.matmul %289, %298, %cst_132 {dimension_numbers = #tpu.dot_dimension_numbers<[1], [0], [0], [1], [0, 0, 1, 1], [], []>} : vector<10x32xf32>, vector<32x32xf32>, vector<10x32xf32> -> vector<10x32xf32>
    %c1_133 = arith.constant 1 : index
    %c0_134 = arith.constant 0 : index
    %c0_135 = arith.constant 0 : index
    %300 = vector.load %arg12[%c1_133, %c0_134, %c0_135] : memref<2x1x32xf32, #tpu.memory_space<vmem>>, vector<1x1x32xf32>
    %301 = vector.shape_cast %300 : vector<1x1x32xf32> to vector<1x32xf32>
    %302 = vector.broadcast %301 : vector<1x32xf32> to vector<10x32xf32>
    %303 = arith.addf %299, %302 : vector<10x32xf32>
    %c1_136 = arith.constant 1 : index
    %c0_137 = arith.constant 0 : index
    %c0_138 = arith.constant 0 : index
    %304 = vector.load %arg13[%c1_136, %c0_137, %c0_138] : memref<2x32x32xf32, #tpu.memory_space<vmem>>, vector<1x32x32xf32>
    %305 = vector.shape_cast %304 : vector<1x32x32xf32> to vector<32x32xf32>
    %cst_139 = arith.constant dense<0.000000e+00> : vector<10x32xf32>
    %306 = tpu.matmul %289, %305, %cst_139 {dimension_numbers = #tpu.dot_dimension_numbers<[1], [0], [0], [1], [0, 0, 1, 1], [], []>} : vector<10x32xf32>, vector<32x32xf32>, vector<10x32xf32> -> vector<10x32xf32>
    %c1_140 = arith.constant 1 : index
    %c0_141 = arith.constant 0 : index
    %c0_142 = arith.constant 0 : index
    %307 = vector.load %arg14[%c1_140, %c0_141, %c0_142] : memref<2x1x32xf32, #tpu.memory_space<vmem>>, vector<1x1x32xf32>
    %308 = vector.shape_cast %307 : vector<1x1x32xf32> to vector<1x32xf32>
    %309 = vector.broadcast %308 : vector<1x32xf32> to vector<10x32xf32>
    %310 = arith.addf %306, %309 : vector<10x32xf32>
    %c1_143 = arith.constant 1 : index
    %c0_144 = arith.constant 0 : index
    %c0_145 = arith.constant 0 : index
    %c0_146 = arith.constant 0 : index
    %311 = vector.load %arg15[%c1_143, %c0_144, %c0_145, %c0_146] : memref<2x4x8x32xf32, #tpu.memory_space<vmem>>, vector<1x4x8x32xf32>
    %312 = vector.shape_cast %311 : vector<1x4x8x32xf32> to vector<4x8x32xf32>
    %c1_147 = arith.constant 1 : index
    %c0_148 = arith.constant 0 : index
    %c0_149 = arith.constant 0 : index
    %313 = vector.load %arg16[%c1_147, %c0_148, %c0_149] : memref<2x1x32xf32, #tpu.memory_space<vmem>>, vector<1x1x32xf32>
    %314 = vector.shape_cast %313 : vector<1x1x32xf32> to vector<1x32xf32>
    %315 = vector.extract_strided_slice %296 {offsets = [0, 0], sizes = [5, 8], strides = [1, 1]} : vector<10x32xf32> to vector<5x8xf32>
    %316 = vector.extract_strided_slice %296 {offsets = [0, 8], sizes = [5, 8], strides = [1, 1]} : vector<10x32xf32> to vector<5x8xf32>
    %317 = vector.extract_strided_slice %296 {offsets = [0, 16], sizes = [5, 8], strides = [1, 1]} : vector<10x32xf32> to vector<5x8xf32>
    %318 = vector.extract_strided_slice %296 {offsets = [0, 24], sizes = [5, 8], strides = [1, 1]} : vector<10x32xf32> to vector<5x8xf32>
    %319 = vector.shape_cast %315 : vector<5x8xf32> to vector<1x5x8xf32>
    %320 = vector.shape_cast %316 : vector<5x8xf32> to vector<1x5x8xf32>
    %321 = vector.shape_cast %317 : vector<5x8xf32> to vector<1x5x8xf32>
    %322 = vector.shape_cast %318 : vector<5x8xf32> to vector<1x5x8xf32>
    %323 = tpu.concatenate %319, %320, %321, %322 in 0 : vector<1x5x8xf32>, vector<1x5x8xf32>, vector<1x5x8xf32>, vector<1x5x8xf32> -> vector<4x5x8xf32>
    %324 = vector.extract_strided_slice %303 {offsets = [0, 0], sizes = [5, 8], strides = [1, 1]} : vector<10x32xf32> to vector<5x8xf32>
    %325 = vector.extract_strided_slice %303 {offsets = [0, 8], sizes = [5, 8], strides = [1, 1]} : vector<10x32xf32> to vector<5x8xf32>
    %326 = vector.extract_strided_slice %303 {offsets = [0, 16], sizes = [5, 8], strides = [1, 1]} : vector<10x32xf32> to vector<5x8xf32>
    %327 = vector.extract_strided_slice %303 {offsets = [0, 24], sizes = [5, 8], strides = [1, 1]} : vector<10x32xf32> to vector<5x8xf32>
    %328 = vector.shape_cast %324 : vector<5x8xf32> to vector<1x5x8xf32>
    %329 = vector.shape_cast %325 : vector<5x8xf32> to vector<1x5x8xf32>
    %330 = vector.shape_cast %326 : vector<5x8xf32> to vector<1x5x8xf32>
    %331 = vector.shape_cast %327 : vector<5x8xf32> to vector<1x5x8xf32>
    %332 = tpu.concatenate %328, %329, %330, %331 in 0 : vector<1x5x8xf32>, vector<1x5x8xf32>, vector<1x5x8xf32>, vector<1x5x8xf32> -> vector<4x5x8xf32>
    %333 = vector.extract_strided_slice %310 {offsets = [0, 0], sizes = [5, 8], strides = [1, 1]} : vector<10x32xf32> to vector<5x8xf32>
    %334 = vector.extract_strided_slice %310 {offsets = [0, 8], sizes = [5, 8], strides = [1, 1]} : vector<10x32xf32> to vector<5x8xf32>
    %335 = vector.extract_strided_slice %310 {offsets = [0, 16], sizes = [5, 8], strides = [1, 1]} : vector<10x32xf32> to vector<5x8xf32>
    %336 = vector.extract_strided_slice %310 {offsets = [0, 24], sizes = [5, 8], strides = [1, 1]} : vector<10x32xf32> to vector<5x8xf32>
    %337 = vector.shape_cast %333 : vector<5x8xf32> to vector<1x5x8xf32>
    %338 = vector.shape_cast %334 : vector<5x8xf32> to vector<1x5x8xf32>
    %339 = vector.shape_cast %335 : vector<5x8xf32> to vector<1x5x8xf32>
    %340 = vector.shape_cast %336 : vector<5x8xf32> to vector<1x5x8xf32>
    %341 = tpu.concatenate %337, %338, %339, %340 in 0 : vector<1x5x8xf32>, vector<1x5x8xf32>, vector<1x5x8xf32>, vector<1x5x8xf32> -> vector<4x5x8xf32>
    "tpu.trace_start"() <{level = 10 : i32, message = "hqd,hkd->hqk"}> : () -> ()
    %cst_150 = arith.constant dense<0.000000e+00> : vector<4x5x5xf32>
    %342 = tpu.matmul %323, %332, %cst_150 {dimension_numbers = #tpu.dot_dimension_numbers<[2], [2], [1], [1], [0, 0, 0, 1, 1, 1], [0], [0]>} : vector<4x5x8xf32>, vector<4x5x8xf32>, vector<4x5x5xf32> -> vector<4x5x5xf32>
    "tpu.trace_stop"() : () -> ()
    %cst_151 = arith.constant 0.353553385 : f32
    %343 = vector.broadcast %cst_151 : f32 to vector<4x5x5xf32>
    %344 = arith.mulf %342, %343 : vector<4x5x5xf32>
    %cst_152 = arith.constant dense<0xFF800000> : vector<4x5xf32>
    %345 = vector.multi_reduction <maximumf>, %344, %cst_152 [2] : vector<4x5x5xf32> to vector<4x5xf32>
    %346 = vector.shape_cast %345 : vector<4x5xf32> to vector<4x5x1xf32>
    %347 = vector.broadcast %346 : vector<4x5x1xf32> to vector<4x5x5xf32>
    %348 = arith.subf %344, %347 : vector<4x5x5xf32>
    %349 = math.exp %348 : vector<4x5x5xf32>
    %cst_153 = arith.constant dense<0.000000e+00> : vector<4x5xf32>
    %350 = vector.multi_reduction <add>, %349, %cst_153 [2] : vector<4x5x5xf32> to vector<4x5xf32>
    %351 = vector.shape_cast %350 : vector<4x5xf32> to vector<4x5x1xf32>
    %352 = tpu.reciprocal %351 {approx = true} : vector<4x5x1xf32> -> vector<4x5x1xf32>
    %353 = vector.broadcast %352 : vector<4x5x1xf32> to vector<4x5x5xf32>
    %354 = arith.mulf %349, %353 : vector<4x5x5xf32>
    "tpu.trace_start"() <{level = 10 : i32, message = "hqk,hkd->hqd"}> : () -> ()
    %cst_154 = arith.constant dense<0.000000e+00> : vector<4x5x8xf32>
    %355 = tpu.matmul %354, %341, %cst_154 {dimension_numbers = #tpu.dot_dimension_numbers<[2], [1], [1], [2], [0, 0, 0, 1, 1, 2], [0], [0]>} : vector<4x5x5xf32>, vector<4x5x8xf32>, vector<4x5x8xf32> -> vector<4x5x8xf32>
    "tpu.trace_stop"() : () -> ()
    "tpu.trace_start"() <{level = 10 : i32, message = "hqd,hdo->hqo"}> : () -> ()
    %cst_155 = arith.constant dense<0.000000e+00> : vector<4x5x32xf32>
    %356 = tpu.matmul %355, %312, %cst_155 {dimension_numbers = #tpu.dot_dimension_numbers<[2], [1], [1], [2], [0, 0, 0, 1, 1, 2], [0], [0]>} : vector<4x5x8xf32>, vector<4x8x32xf32>, vector<4x5x32xf32> -> vector<4x5x32xf32>
    "tpu.trace_stop"() : () -> ()
    %357 = vector.extract_strided_slice %356 {offsets = [0, 0, 0], sizes = [1, 5, 32], strides = [1, 1, 1]} : vector<4x5x32xf32> to vector<1x5x32xf32>
    %358 = vector.shape_cast %357 : vector<1x5x32xf32> to vector<5x32xf32>
    %359 = vector.extract_strided_slice %356 {offsets = [1, 0, 0], sizes = [1, 5, 32], strides = [1, 1, 1]} : vector<4x5x32xf32> to vector<1x5x32xf32>
    %360 = vector.shape_cast %359 : vector<1x5x32xf32> to vector<5x32xf32>
    %361 = arith.addf %358, %360 : vector<5x32xf32>
    %362 = vector.extract_strided_slice %356 {offsets = [2, 0, 0], sizes = [1, 5, 32], strides = [1, 1, 1]} : vector<4x5x32xf32> to vector<1x5x32xf32>
    %363 = vector.shape_cast %362 : vector<1x5x32xf32> to vector<5x32xf32>
    %364 = arith.addf %361, %363 : vector<5x32xf32>
    %365 = vector.extract_strided_slice %356 {offsets = [3, 0, 0], sizes = [1, 5, 32], strides = [1, 1, 1]} : vector<4x5x32xf32> to vector<1x5x32xf32>
    %366 = vector.shape_cast %365 : vector<1x5x32xf32> to vector<5x32xf32>
    %367 = arith.addf %364, %366 : vector<5x32xf32>
    %368 = vector.broadcast %314 : vector<1x32xf32> to vector<5x32xf32>
    %369 = arith.addf %367, %368 : vector<5x32xf32>
    %c0_156 = arith.constant 0 : index
    %c0_157 = arith.constant 0 : index
    %370 = vector.load %arg28[%c0_156, %c0_157] : memref<10x32xf32, #tpu.memory_space<vmem>>, vector<5x32xf32>
    tpu.vector_store %arg28[%c0_156, %c0_157], %369 {strides = array<i32>} : memref<10x32xf32, #tpu.memory_space<vmem>>, vector<5x32xf32>,
    %371 = vector.extract_strided_slice %296 {offsets = [5, 0], sizes = [5, 8], strides = [1, 1]} : vector<10x32xf32> to vector<5x8xf32>
    %372 = vector.extract_strided_slice %296 {offsets = [5, 8], sizes = [5, 8], strides = [1, 1]} : vector<10x32xf32> to vector<5x8xf32>
    %373 = vector.extract_strided_slice %296 {offsets = [5, 16], sizes = [5, 8], strides = [1, 1]} : vector<10x32xf32> to vector<5x8xf32>
    %374 = vector.extract_strided_slice %296 {offsets = [5, 24], sizes = [5, 8], strides = [1, 1]} : vector<10x32xf32> to vector<5x8xf32>
    %375 = vector.shape_cast %371 : vector<5x8xf32> to vector<1x5x8xf32>
    %376 = vector.shape_cast %372 : vector<5x8xf32> to vector<1x5x8xf32>
    %377 = vector.shape_cast %373 : vector<5x8xf32> to vector<1x5x8xf32>
    %378 = vector.shape_cast %374 : vector<5x8xf32> to vector<1x5x8xf32>
    %379 = tpu.concatenate %375, %376, %377, %378 in 0 : vector<1x5x8xf32>, vector<1x5x8xf32>, vector<1x5x8xf32>, vector<1x5x8xf32> -> vector<4x5x8xf32>
    %380 = vector.extract_strided_slice %303 {offsets = [5, 0], sizes = [5, 8], strides = [1, 1]} : vector<10x32xf32> to vector<5x8xf32>
    %381 = vector.extract_strided_slice %303 {offsets = [5, 8], sizes = [5, 8], strides = [1, 1]} : vector<10x32xf32> to vector<5x8xf32>
    %382 = vector.extract_strided_slice %303 {offsets = [5, 16], sizes = [5, 8], strides = [1, 1]} : vector<10x32xf32> to vector<5x8xf32>
    %383 = vector.extract_strided_slice %303 {offsets = [5, 24], sizes = [5, 8], strides = [1, 1]} : vector<10x32xf32> to vector<5x8xf32>
    %384 = vector.shape_cast %380 : vector<5x8xf32> to vector<1x5x8xf32>
    %385 = vector.shape_cast %381 : vector<5x8xf32> to vector<1x5x8xf32>
    %386 = vector.shape_cast %382 : vector<5x8xf32> to vector<1x5x8xf32>
    %387 = vector.shape_cast %383 : vector<5x8xf32> to vector<1x5x8xf32>
    %388 = tpu.concatenate %384, %385, %386, %387 in 0 : vector<1x5x8xf32>, vector<1x5x8xf32>, vector<1x5x8xf32>, vector<1x5x8xf32> -> vector<4x5x8xf32>
    %389 = vector.extract_strided_slice %310 {offsets = [5, 0], sizes = [5, 8], strides = [1, 1]} : vector<10x32xf32> to vector<5x8xf32>
    %390 = vector.extract_strided_slice %310 {offsets = [5, 8], sizes = [5, 8], strides = [1, 1]} : vector<10x32xf32> to vector<5x8xf32>
    %391 = vector.extract_strided_slice %310 {offsets = [5, 16], sizes = [5, 8], strides = [1, 1]} : vector<10x32xf32> to vector<5x8xf32>
    %392 = vector.extract_strided_slice %310 {offsets = [5, 24], sizes = [5, 8], strides = [1, 1]} : vector<10x32xf32> to vector<5x8xf32>
    %393 = vector.shape_cast %389 : vector<5x8xf32> to vector<1x5x8xf32>
    %394 = vector.shape_cast %390 : vector<5x8xf32> to vector<1x5x8xf32>
    %395 = vector.shape_cast %391 : vector<5x8xf32> to vector<1x5x8xf32>
    %396 = vector.shape_cast %392 : vector<5x8xf32> to vector<1x5x8xf32>
    %397 = tpu.concatenate %393, %394, %395, %396 in 0 : vector<1x5x8xf32>, vector<1x5x8xf32>, vector<1x5x8xf32>, vector<1x5x8xf32> -> vector<4x5x8xf32>
    "tpu.trace_start"() <{level = 10 : i32, message = "hqd,hkd->hqk"}> : () -> ()
    %cst_158 = arith.constant dense<0.000000e+00> : vector<4x5x5xf32>
    %398 = tpu.matmul %379, %388, %cst_158 {dimension_numbers = #tpu.dot_dimension_numbers<[2], [2], [1], [1], [0, 0, 0, 1, 1, 1], [0], [0]>} : vector<4x5x8xf32>, vector<4x5x8xf32>, vector<4x5x5xf32> -> vector<4x5x5xf32>
    "tpu.trace_stop"() : () -> ()
    %cst_159 = arith.constant 0.353553385 : f32
    %399 = vector.broadcast %cst_159 : f32 to vector<4x5x5xf32>
    %400 = arith.mulf %398, %399 : vector<4x5x5xf32>
    %cst_160 = arith.constant dense<0xFF800000> : vector<4x5xf32>
    %401 = vector.multi_reduction <maximumf>, %400, %cst_160 [2] : vector<4x5x5xf32> to vector<4x5xf32>
    %402 = vector.shape_cast %401 : vector<4x5xf32> to vector<4x5x1xf32>
    %403 = vector.broadcast %402 : vector<4x5x1xf32> to vector<4x5x5xf32>
    %404 = arith.subf %400, %403 : vector<4x5x5xf32>
    %405 = math.exp %404 : vector<4x5x5xf32>
    %cst_161 = arith.constant dense<0.000000e+00> : vector<4x5xf32>
    %406 = vector.multi_reduction <add>, %405, %cst_161 [2] : vector<4x5x5xf32> to vector<4x5xf32>
    %407 = vector.shape_cast %406 : vector<4x5xf32> to vector<4x5x1xf32>
    %408 = tpu.reciprocal %407 {approx = true} : vector<4x5x1xf32> -> vector<4x5x1xf32>
    %409 = vector.broadcast %408 : vector<4x5x1xf32> to vector<4x5x5xf32>
    %410 = arith.mulf %405, %409 : vector<4x5x5xf32>
    "tpu.trace_start"() <{level = 10 : i32, message = "hqk,hkd->hqd"}> : () -> ()
    %cst_162 = arith.constant dense<0.000000e+00> : vector<4x5x8xf32>
    %411 = tpu.matmul %410, %397, %cst_162 {dimension_numbers = #tpu.dot_dimension_numbers<[2], [1], [1], [2], [0, 0, 0, 1, 1, 2], [0], [0]>} : vector<4x5x5xf32>, vector<4x5x8xf32>, vector<4x5x8xf32> -> vector<4x5x8xf32>
    "tpu.trace_stop"() : () -> ()
    "tpu.trace_start"() <{level = 10 : i32, message = "hqd,hdo->hqo"}> : () -> ()
    %cst_163 = arith.constant dense<0.000000e+00> : vector<4x5x32xf32>
    %412 = tpu.matmul %411, %312, %cst_163 {dimension_numbers = #tpu.dot_dimension_numbers<[2], [1], [1], [2], [0, 0, 0, 1, 1, 2], [0], [0]>} : vector<4x5x8xf32>, vector<4x8x32xf32>, vector<4x5x32xf32> -> vector<4x5x32xf32>
    "tpu.trace_stop"() : () -> ()
    %413 = vector.extract_strided_slice %412 {offsets = [0, 0, 0], sizes = [1, 5, 32], strides = [1, 1, 1]} : vector<4x5x32xf32> to vector<1x5x32xf32>
    %414 = vector.shape_cast %413 : vector<1x5x32xf32> to vector<5x32xf32>
    %415 = vector.extract_strided_slice %412 {offsets = [1, 0, 0], sizes = [1, 5, 32], strides = [1, 1, 1]} : vector<4x5x32xf32> to vector<1x5x32xf32>
    %416 = vector.shape_cast %415 : vector<1x5x32xf32> to vector<5x32xf32>
    %417 = arith.addf %414, %416 : vector<5x32xf32>
    %418 = vector.extract_strided_slice %412 {offsets = [2, 0, 0], sizes = [1, 5, 32], strides = [1, 1, 1]} : vector<4x5x32xf32> to vector<1x5x32xf32>
    %419 = vector.shape_cast %418 : vector<1x5x32xf32> to vector<5x32xf32>
    %420 = arith.addf %417, %419 : vector<5x32xf32>
    %421 = vector.extract_strided_slice %412 {offsets = [3, 0, 0], sizes = [1, 5, 32], strides = [1, 1, 1]} : vector<4x5x32xf32> to vector<1x5x32xf32>
    %422 = vector.shape_cast %421 : vector<1x5x32xf32> to vector<5x32xf32>
    %423 = arith.addf %420, %422 : vector<5x32xf32>
    %424 = vector.broadcast %314 : vector<1x32xf32> to vector<5x32xf32>
    %425 = arith.addf %423, %424 : vector<5x32xf32>
    %c5_164 = arith.constant 5 : index
    %c0_165 = arith.constant 0 : index
    %426 = vector.load %arg28[%c5_164, %c0_165] : memref<10x32xf32, #tpu.memory_space<vmem>>, vector<5x32xf32>
    tpu.vector_store %arg28[%c5_164, %c0_165], %425 {strides = array<i32>} : memref<10x32xf32, #tpu.memory_space<vmem>>, vector<5x32xf32>,
    %c0_166 = arith.constant 0 : index
    %c0_167 = arith.constant 0 : index
    %427 = vector.load %arg28[%c0_166, %c0_167] : memref<10x32xf32, #tpu.memory_space<vmem>>, vector<10x32xf32>
    %428 = arith.addf %263, %427 : vector<10x32xf32>
    %c1_168 = arith.constant 1 : index
    %c0_169 = arith.constant 0 : index
    %c0_170 = arith.constant 0 : index
    %429 = vector.load %arg17[%c1_168, %c0_169, %c0_170] : memref<2x1x32xf32, #tpu.memory_space<vmem>>, vector<1x1x32xf32>
    %430 = vector.shape_cast %429 : vector<1x1x32xf32> to vector<1x32xf32>
    %c1_171 = arith.constant 1 : index
    %c0_172 = arith.constant 0 : index
    %c0_173 = arith.constant 0 : index
    %431 = vector.load %arg18[%c1_171, %c0_172, %c0_173] : memref<2x1x32xf32, #tpu.memory_space<vmem>>, vector<1x1x32xf32>
    %432 = vector.shape_cast %431 : vector<1x1x32xf32> to vector<1x32xf32>
    %cst_174 = arith.constant dense<0.000000e+00> : vector<10xf32>
    %433 = vector.multi_reduction <add>, %428, %cst_174 [1] : vector<10x32xf32> to vector<10xf32>
    %434 = vector.shape_cast %433 : vector<10xf32> to vector<10x1xf32>
    %cst_175 = arith.constant 3.200000e+01 : f32
    %435 = vector.broadcast %cst_175 : f32 to vector<10x1xf32>
    %436 = arith.divf %434, %435 : vector<10x1xf32>
    %437 = vector.broadcast %436 : vector<10x1xf32> to vector<10x32xf32>
    %438 = arith.subf %428, %437 : vector<10x32xf32>
    %439 = arith.mulf %438, %438 : vector<10x32xf32>
    %cst_176 = arith.constant dense<0.000000e+00> : vector<10xf32>
    %440 = vector.multi_reduction <add>, %439, %cst_176 [1] : vector<10x32xf32> to vector<10xf32>
    %441 = vector.shape_cast %440 : vector<10xf32> to vector<10x1xf32>
    %cst_177 = arith.constant 3.200000e+01 : f32
    %442 = vector.broadcast %cst_177 : f32 to vector<10x1xf32>
    %443 = arith.divf %441, %442 : vector<10x1xf32>
    %444 = vector.broadcast %436 : vector<10x1xf32> to vector<10x32xf32>
    %445 = arith.subf %428, %444 : vector<10x32xf32>
    %cst_178 = arith.constant 9.99999974E-6 : f32
    %446 = vector.broadcast %cst_178 : f32 to vector<10x1xf32>
    %447 = arith.addf %443, %446 : vector<10x1xf32>
    %448 = math.rsqrt %447 : vector<10x1xf32>
    %449 = vector.broadcast %448 : vector<10x1xf32> to vector<10x32xf32>
    %450 = arith.mulf %445, %449 : vector<10x32xf32>
    %451 = vector.broadcast %430 : vector<1x32xf32> to vector<10x32xf32>
    %452 = arith.mulf %450, %451 : vector<10x32xf32>
    %453 = vector.broadcast %432 : vector<1x32xf32> to vector<10x32xf32>
    %454 = arith.addf %452, %453 : vector<10x32xf32>
    %c1_179 = arith.constant 1 : index
    %c0_180 = arith.constant 0 : index
    %c0_181 = arith.constant 0 : index
    %455 = vector.load %arg19[%c1_179, %c0_180, %c0_181] : memref<2x32x64xf32, #tpu.memory_space<vmem>>, vector<1x32x64xf32>
    %456 = vector.shape_cast %455 : vector<1x32x64xf32> to vector<32x64xf32>
    %cst_182 = arith.constant dense<0.000000e+00> : vector<10x64xf32>
    %457 = tpu.matmul %454, %456, %cst_182 {dimension_numbers = #tpu.dot_dimension_numbers<[1], [0], [0], [1], [0, 0, 1, 1], [], []>} : vector<10x32xf32>, vector<32x64xf32>, vector<10x64xf32> -> vector<10x64xf32>
    %c1_183 = arith.constant 1 : index
    %c0_184 = arith.constant 0 : index
    %c0_185 = arith.constant 0 : index
    %458 = vector.load %arg20[%c1_183, %c0_184, %c0_185] : memref<2x1x64xf32, #tpu.memory_space<vmem>>, vector<1x1x64xf32>
    %459 = vector.shape_cast %458 : vector<1x1x64xf32> to vector<1x64xf32>
    %460 = vector.broadcast %459 : vector<1x64xf32> to vector<10x64xf32>
    %461 = arith.addf %457, %460 : vector<10x64xf32>
    %462 = arith.mulf %461, %461 : vector<10x64xf32>
    %463 = arith.mulf %461, %462 : vector<10x64xf32>
    %cst_186 = arith.constant 4.471500e-02 : f32
    %464 = vector.broadcast %cst_186 : f32 to vector<10x64xf32>
    %465 = arith.mulf %464, %463 : vector<10x64xf32>
    %466 = arith.addf %461, %465 : vector<10x64xf32>
    %cst_187 = arith.constant 0.797884583 : f32
    %467 = vector.broadcast %cst_187 : f32 to vector<10x64xf32>
    %468 = arith.mulf %467, %466 : vector<10x64xf32>
    %469 = math.tanh %468 : vector<10x64xf32>
    %cst_188 = arith.constant 1.000000e+00 : f32
    %470 = vector.broadcast %cst_188 : f32 to vector<10x64xf32>
    %471 = arith.addf %470, %469 : vector<10x64xf32>
    %cst_189 = arith.constant 5.000000e-01 : f32
    %472 = vector.broadcast %cst_189 : f32 to vector<10x64xf32>
    %473 = arith.mulf %472, %471 : vector<10x64xf32>
    %474 = arith.mulf %461, %473 : vector<10x64xf32>
    %c1_190 = arith.constant 1 : index
    %c0_191 = arith.constant 0 : index
    %c0_192 = arith.constant 0 : index
    %475 = vector.load %arg21[%c1_190, %c0_191, %c0_192] : memref<2x64x32xf32, #tpu.memory_space<vmem>>, vector<1x64x32xf32>
    %476 = vector.shape_cast %475 : vector<1x64x32xf32> to vector<64x32xf32>
    %cst_193 = arith.constant dense<0.000000e+00> : vector<10x32xf32>
    %477 = tpu.matmul %474, %476, %cst_193 {dimension_numbers = #tpu.dot_dimension_numbers<[1], [0], [0], [1], [0, 0, 1, 1], [], []>} : vector<10x64xf32>, vector<64x32xf32>, vector<10x32xf32> -> vector<10x32xf32>
    %c1_194 = arith.constant 1 : index
    %c0_195 = arith.constant 0 : index
    %c0_196 = arith.constant 0 : index
    %478 = vector.load %arg22[%c1_194, %c0_195, %c0_196] : memref<2x1x32xf32, #tpu.memory_space<vmem>>, vector<1x1x32xf32>
    %479 = vector.shape_cast %478 : vector<1x1x32xf32> to vector<1x32xf32>
    %480 = vector.broadcast %479 : vector<1x32xf32> to vector<10x32xf32>
    %481 = arith.addf %477, %480 : vector<10x32xf32>
    %482 = arith.addf %428, %481 : vector<10x32xf32>
    %c0_197 = arith.constant 0 : index
    %c0_198 = arith.constant 0 : index
    %483 = vector.load %arg23[%c0_197, %c0_198] : memref<32x64xf32, #tpu.memory_space<vmem>>, vector<32x64xf32>
    %cst_199 = arith.constant dense<0.000000e+00> : vector<10x64xf32>
    %484 = tpu.matmul %482, %483, %cst_199 {dimension_numbers = #tpu.dot_dimension_numbers<[1], [0], [0], [1], [0, 0, 1, 1], [], []>} : vector<10x32xf32>, vector<32x64xf32>, vector<10x64xf32> -> vector<10x64xf32>
    %c0_200 = arith.constant 0 : index
    %c0_201 = arith.constant 0 : index
    %485 = vector.load %arg24[%c0_200, %c0_201] : memref<1x64xf32, #tpu.memory_space<vmem>>, vector<1x64xf32>
    %486 = vector.broadcast %485 : vector<1x64xf32> to vector<10x64xf32>
    %487 = arith.addf %484, %486 : vector<10x64xf32>
    %488 = arith.mulf %487, %487 : vector<10x64xf32>
    %489 = arith.mulf %487, %488 : vector<10x64xf32>
    %cst_202 = arith.constant 4.471500e-02 : f32
    %490 = vector.broadcast %cst_202 : f32 to vector<10x64xf32>
    %491 = arith.mulf %490, %489 : vector<10x64xf32>
    %492 = arith.addf %487, %491 : vector<10x64xf32>
    %cst_203 = arith.constant 0.797884583 : f32
    %493 = vector.broadcast %cst_203 : f32 to vector<10x64xf32>
    %494 = arith.mulf %493, %492 : vector<10x64xf32>
    %495 = math.tanh %494 : vector<10x64xf32>
    %cst_204 = arith.constant 1.000000e+00 : f32
    %496 = vector.broadcast %cst_204 : f32 to vector<10x64xf32>
    %497 = arith.addf %496, %495 : vector<10x64xf32>
    %cst_205 = arith.constant 5.000000e-01 : f32
    %498 = vector.broadcast %cst_205 : f32 to vector<10x64xf32>
    %499 = arith.mulf %498, %497 : vector<10x64xf32>
    %500 = arith.mulf %487, %499 : vector<10x64xf32>
    %c0_206 = arith.constant 0 : index
    %c0_207 = arith.constant 0 : index
    %501 = vector.load %arg25[%c0_206, %c0_207] : memref<64x48xf32, #tpu.memory_space<vmem>>, vector<64x48xf32>
    %cst_208 = arith.constant dense<0.000000e+00> : vector<10x48xf32>
    %502 = tpu.matmul %500, %501, %cst_208 {dimension_numbers = #tpu.dot_dimension_numbers<[1], [0], [0], [1], [0, 0, 1, 1], [], []>} : vector<10x64xf32>, vector<64x48xf32>, vector<10x48xf32> -> vector<10x48xf32>
    %c0_209 = arith.constant 0 : index
    %c0_210 = arith.constant 0 : index
    %503 = vector.load %arg26[%c0_209, %c0_210] : memref<1x48xf32, #tpu.memory_space<vmem>>, vector<1x48xf32>
    %504 = vector.broadcast %503 : vector<1x48xf32> to vector<10x48xf32>
    %505 = arith.addf %502, %504 : vector<10x48xf32>
    %c0_211 = arith.constant 0 : index
    %c0_212 = arith.constant 0 : index
    %506 = vector.load %arg27[%c0_211, %c0_212] : memref<10x48xf32, #tpu.memory_space<vmem>>, vector<10x48xf32>
    tpu.vector_store %arg27[%c0_211, %c0_212], %505 {strides = array<i32>} : memref<10x48xf32, #tpu.memory_space<vmem>>, vector<10x48xf32>,
    return
  }
}

</mosaic_0001>

<bundles_post_ra>
// kernel: vision_model_forward.1
= control target key start
LH: loop header
LB: loop body
LE: loop exit
PB: predicated region body
PF: predicated region fallthrough
CT: control target
= control target key end

     0   :  { %v6410_v0 = vmov 0.0   ;;  %vm119_vm0 = vcmask 523264   ;;  %vm196_vm1 = vcmask 253952   ;;  %vm202_vm2 = vcmask 257024   ;;  %s7582_s29 = smov 120   ;;  %s7543_s1 = inlined_call_operand.vmem [shape: f32[192,32], index: 1, kind: input, shape index: {}]   ;;  %s7544_s0 = inlined_call_operand.vmem [shape: f32[8,192], index: 0, kind: input, shape index: {}]   ;;  %s7545_s3 = inlined_call_operand.vmem [shape: f32[1,32], index: 3, kind: input, shape index: {}]   ;;  %s7546_s4 = inlined_call_operand.vmem [shape: f32[5,32], index: 4, kind: input, shape index: {}]   ;;  %s7547_s2 = inlined_call_operand.vmem [shape: f32[1,32], index: 2, kind: input, shape index: {}]   ;;  %s7548_s5 = inlined_call_operand.vmem [shape: f32[1,32], index: 5, kind: input, shape index: {}]   ;;  %s7549_s6 = inlined_call_operand.vmem [shape: f32[1,32], index: 6, kind: input, shape index: {}]   ;;  %s7550_s9 = inlined_call_operand.vmem [shape: f32[2,32,32], index: 9, kind: input, shape index: {}]   ;;  %s7551_s11 = inlined_call_operand.vmem [shape: f32[2,32,32], index: 11, kind: input, shape index: {}]   ;;  %s7552_s7 = inlined_call_operand.vmem [shape: f32[2,1,32], index: 7, kind: input, shape index: {}]   ;;  %s7553_s8 = inlined_call_operand.vmem [shape: f32[2,1,32], index: 8, kind: input, shape index: {}]   ;;  %s7554_s13 = inlined_call_operand.vmem [shape: f32[2,32,32], index: 13, kind: input, shape index: {}]   ;;  %s7555_s10 = inlined_call_operand.vmem [shape: f32[2,1,32], index: 10, kind: input, shape index: {}]   ;;  %s7556_s12 = inlined_call_operand.vmem [shape: f32[2,1,32], index: 12, kind: input, shape index: {}]   ;;  %s7557_s14 = inlined_call_operand.vmem [shape: f32[2,1,32], index: 14, kind: input, shape index: {}]   ;;  %s7558_s15 = inlined_call_operand.vmem [shape: f32[2,4,8,32], index: 15, kind: input, shape index: {}]   ;;  %s7559_s16 = inlined_call_operand.vmem [shape: f32[2,1,32], index: 16, kind: input, shape index: {}]   ;;  %s7560_s19 = inlined_call_operand.vmem [shape: f32[2,32,64], index: 19, kind: input, shape index: {}]   ;;  %s7561_s17 = inlined_call_operand.vmem [shape: f32[2,1,32], index: 17, kind: input, shape index: {}]   ;;  %s7562_s18 = inlined_call_operand.vmem [shape: f32[2,1,32], index: 18, kind: input, shape index: {}]   ;;  %s7563_s21 = inlined_call_operand.vmem [shape: f32[2,64,32], index: 21, kind: input, shape index: {}]   ;;  %s7564_s20 = inlined_call_operand.vmem [shape: f32[2,1,64], index: 20, kind: input, shape index: {}]   ;;  %s7565_s22 = inlined_call_operand.vmem [shape: f32[2,1,32], index: 22, kind: input, shape index: {}]   ;;  %s7566_s23 = inlined_call_operand.vmem [shape: f32[32,64], index: 23, kind: input, shape index: {}]   ;;  %s7567_s25 = inlined_call_operand.vmem [shape: f32[64,48], index: 25, kind: input, shape index: {}]   ;;  %s7568_s24 = inlined_call_operand.vmem [shape: f32[1,64], index: 24, kind: input, shape index: {}]   ;;  %s7569_s26 = inlined_call_operand.vmem [shape: f32[1,48], index: 26, kind: input, shape index: {}]   ;;  %s7570_s27 = inlined_call_operand.vmem [shape: f32[10,48], index: 27, kind: output, shape index: {}]  }
   0x1   :  { %7584 = sst [smem:[#allocation3_spill]] %s7543_s1  ;;  %123 = vmatprep.subr.mxu0 %v6410_v0  ;;  %vm208_vm3 = vcmask 261124   ;;  %vm214_vm4 = vcmask 261120   ;;  %vm218_vm5 = vcmask 254976   ;;  %vm6411_vm6 = vmmov 0  }
   0x2   :  { %7585 = sst [smem:[#allocation4_spill]] %s7544_s0  ;;  %vm593_vm7 = vcmask 64512   ;;  %vm943_vm8 = vcmask 1044480   ;;  %vm894_vm9 = vcmask 36864   ;;  %vm939_vm10 = vcmask 39936  }
   0x3   :  { %7586 = sst [smem:[#allocation5_spill]] %s7545_s3  ;;  %s7580_s3 = smov 112   ;;  %vm1566_vm11 = vcmask 1042432   ;;  %vm1543_vm12 = vcmask 258048   ;;  %vm5559_vm13 = vcmask 386048   ;;  %vm5557_vm14 = vcmask 392192  }
   0x4   :  { %7587 = sst [smem:[#allocation6_spill]] %s7546_s4 }
   0x5   :  { %7588 = sst [smem:[#allocation7_spill]] %s7547_s2 }
   0x6   :  { %7589 = sst [smem:[#allocation8_spill]] %s7548_s5 }
   0x7   :  { %7590 = sst [smem:[#allocation9_spill]] %s7549_s6 }
   0x8   :  { %7591 = sst [smem:[#allocation10_spill]] %s7550_s9 }
   0x9   :  { %7592 = sst [smem:[#allocation11_spill]] %s7551_s11 }
   0xa   :  { %7593 = sst [smem:[#allocation12_spill]] %s7552_s7 }
   0xb   :  { %7594 = sst [smem:[#allocation13_spill]] %s7553_s8 }
   0xc   :  { %7595 = sst [smem:[#allocation14_spill]] %s7554_s13 }
   0xd   :  { %s7596_s11 = sld [smem:[#allocation3_spill]] }
   0xe   :  { %s7597_s9 = sld [smem:[#allocation4_spill]] }
   0xf   :  { %s7598_s30 = sld [smem:[#allocation6_spill]] }
  0x10   :  { %s7599_s28 = sld [smem:[#allocation5_spill]] }
  0x11   :  { %s7600_s0 = sld [smem:[#allocation7_spill]] }
  0x12   :  { %s7601_s1 = sld [smem:[#allocation8_spill]] }
  0x13   :  { %v103_v1 = vld [vmem:[%s7596_s11 + $0x78] sm:$0xff]  ;;  %v102_v2 = vld [vmem:[%s7596_s11 + $0x70] sm:$0xff]  ;;  %v101_v3 = vld [vmem:[%s7596_s11 + $0x68] sm:$0xff]  ;;  %s7602_s2 = sld [smem:[#allocation9_spill]] }
  0x14   :  { %124 = vmatpush1.msra.mxu0 %v103_v1  ;;  %v100_v4 = vld [vmem:[%s7596_s11 + $0x60] sm:$0xff]  ;;  %v99_v5 = vld [vmem:[%s7596_s11 + $0x58] sm:$0xff]  ;;  %v98_v6 = vld [vmem:[%s7596_s11 + $0x50] sm:$0xff]  ;;  %s7606_s7 = sld [smem:[#allocation13_spill]] }
  0x15   :  { %125 = vmatprep.subr.mxu0 %v6410_v0  ;;  %v87_v7 = vld [vmem:[%s7597_s9 + $0x8] sm:$0xff]  ;;  %v96_v9 = vld [vmem:[%s7596_s11 + $0x40] sm:$0xff]  ;;  %v95_v10 = vld [vmem:[%s7596_s11 + $0x38] sm:$0xff]  ;;  %s7607_s13 = sld [smem:[#allocation14_spill]] }
  0x16   :  { %126 = vmatpush1.msra.mxu0 %v102_v2  ;;  %5566 = vmatprep.mubr.msk.f32.mxu0 %vm119_vm0, %v87_v7  ;;  %v97_v8 = vld [vmem:[%s7596_s11 + $0x48] sm:$0xff]  ;;  %v94_v11 = vld [vmem:[%s7596_s11 + $0x30] sm:$0xff]  ;;  %v92_v13 = vld [vmem:[%s7596_s11 + $0x20] sm:$0xff] }
  0x17   :  { %127 = vmatprep.subr.mxu0 %v6410_v0  ;;  %v93_v12 = vld [vmem:[%s7596_s11 + $0x28] sm:$0xff]  ;;  %v91_v14 = vld [vmem:[%s7596_s11 + $0x18] sm:$0xff]  ;;  %v90_v15 = vld [vmem:[%s7596_s11 + $0x10] sm:$0xff] }
  0x18   :  { %128 = vmatpush1.msra.mxu0 %v101_v3  ;;  %v89_v16 = vld [vmem:[%s7596_s11 + $0x8] sm:$0xff]  ;;  %v88_v17 = vld [vmem:[%s7596_s11] sm:$0xff]  ;;  %v111_v18 = vld [vmem:[%s7596_s11 + $0xb8] sm:$0xff] }
  0x19   :  { %129 = vmatprep.subr.mxu0 %v6410_v0  ;;  %v110_v19 = vld [vmem:[%s7596_s11 + $0xb0] sm:$0xff]  ;;  %v109_v20 = vld [vmem:[%s7596_s11 + $0xa8] sm:$0xff]  ;;  %v108_v21 = vld [vmem:[%s7596_s11 + $0xa0] sm:$0xff] }
  0x1a   :  { %130 = vmatpush1.msra.mxu0 %v100_v4  ;;  %v107_v22 = vld [vmem:[%s7596_s11 + $0x98] sm:$0xff]  ;;  %v106_v23 = vld [vmem:[%s7596_s11 + $0x90] sm:$0xff]  ;;  %v105_v24 = vld [vmem:[%s7596_s11 + $0x88] sm:$0xff] }
  0x1b   :  { %131 = vmatprep.subr.mxu0 %v6410_v0  ;;  %v104_v25 = vld [vmem:[%s7596_s11 + $0x80] sm:$0xff]  ;;  %s7578_s11 = smov 104  }
  0x1c   :  { %132 = vmatpush1.msra.mxu0 %v99_v5  ;;  %v86_v26 = vld [vmem:[%s7597_s9] sm:$0xff] }
  0x1d   :  { %133 = vmatprep.subr.mxu0 %v6410_v0  ;;  %v193_v27 = vld [vmem:[%s7598_s30] sm:$0x1f]  ;;  %s7603_s30 = sld [smem:[#allocation10_spill]] }
  0x1e   :  { %134 = vmatpush1.msra.mxu0 %v98_v6  ;;  %v194_v28 = vld [vmem:[%s7599_s28] sm:$0x1]  ;;  %v199_v31 = vrot.slane %v193_v27, 1  ;;  %v205_v32 = vrot.slane %v193_v27, 5 }
  0x1f   :  { %135 = vmatprep.subr.mxu0 %v6410_v0  ;;  %v195_v29 = vadd.f32 %v194_v28, %v193_v27  ;;  %v5565_v30 = vld [vmem:[%s7600_s0] ss:$0 sm:$0xff] }
  0x20   :  { %136 = vmatpush1.msra.mxu0 %v97_v8  ;;  %v5567_v59 = vld [vmem:[%s7601_s1] ss:$0 sm:$0xff]  ;;  %s7604_s1 = sld [smem:[#allocation11_spill]] }
  0x21   :  { %137 = vmatprep.subr.mxu0 %v6410_v0  ;;  %197 = vst.msk [vmem:[#allocation2] sm:$0x1] %vm196_vm1, %v195_v29  ;;  %204 = vst.msk [vmem:[#allocation2 + $0x5] sm:$0x1] %vm196_vm1, %v195_v29  ;;  %v5568_v61 = vld [vmem:[%s7602_s2] ss:$0 sm:$0xff] }
  0x22   :  { %138 = vmatpush1.msra.mxu0 %v96_v9  ;;  %s7605_s2 = sld [smem:[#allocation12_spill]] }
  0x23   :  { %139 = vmatprep.subr.mxu0 %v6410_v0 }
  0x24   :  { %140 = vmatpush1.msra.mxu0 %v95_v10 }
  0x25   :  { %141 = vmatprep.subr.mxu0 %v6410_v0 }
  0x26   :  { %142 = vmatpush1.msra.mxu0 %v94_v11 }
  0x27   :  { %143 = vmatprep.subr.mxu0 %v6410_v0 }
  0x28   :  { %144 = vmatpush1.msra.mxu0 %v93_v12  ;;  %v5569_v29 = vld [vmem:[%s7605_s2] ss:$0 sm:$0xff] }
  0x29   :  { %145 = vmatprep.subr.mxu0 %v6410_v0 }
  0x2a   :  { %146 = vmatpush1.msra.mxu0 %v92_v13 }
  0x2b   :  { %147 = vmatprep.subr.mxu0 %v6410_v0 }
  0x2c   :  { %148 = vmatpush1.msra.mxu0 %v91_v14 }
  0x2d   :  { %149 = vmatprep.subr.mxu0 %v6410_v0 }
  0x2e   :  { %150 = vmatpush1.msra.mxu0 %v90_v15 }
  0x2f   :  { %151 = vmatprep.subr.mxu0 %v6410_v0 }
  0x30   :  { %152 = vmatpush1.msra.mxu0 %v89_v16 }
  0x31   :  { %153 = vmatprep.subr.mxu0 %v6410_v0 }
  0x32   :  { %154 = vmatpush1.msra.mxu0 %v88_v17  ;;  %v306_v17 = vld [vmem:[%s7603_s30 + $0x18] sm:$0xff] }
  0x33   :  { %171 = vmatprep.subr.mxu0 %v6410_v0  ;;  %5913 = vmatprep.subr.mxu1 %v306_v17 }
  0x34   :  { %172 = vmatpush2.msra.mxu0 %v111_v18  ;;  %v305_v18 = vld [vmem:[%s7603_s30 + $0x10] sm:$0xff]  ;;  %5914 = vmatpush3.msra.mxu1 %v306_v17 }
  0x35   :  { %173 = vmatprep.subr.mxu0 %v6410_v0  ;;  %5915 = vmatprep.subr.mxu1 %v305_v18 }
  0x36   :  { %174 = vmatpush2.msra.mxu0 %v110_v19  ;;  %v304_v19 = vld [vmem:[%s7603_s30 + $0x8] sm:$0xff]  ;;  %5916 = vmatpush3.msra.mxu1 %v305_v18 }
  0x37   :  { %175 = vmatprep.subr.mxu0 %v6410_v0  ;;  %5917 = vmatprep.subr.mxu1 %v304_v19 }
  0x38   :  { %176 = vmatpush2.msra.mxu0 %v109_v20  ;;  %5918 = vmatpush3.msra.mxu1 %v304_v19  ;;  %v303_v20 = vld [vmem:[%s7603_s30] sm:$0xff] }
  0x39   :  { %177 = vmatprep.subr.mxu0 %v6410_v0  ;;  %5919 = vmatprep.subr.mxu1 %v303_v20 }
  0x3a   :  { %178 = vmatpush2.msra.mxu0 %v108_v21  ;;  %5920 = vmatpush3.msra.mxu1 %v303_v20  ;;  %v398_v21 = vld [vmem:[%s7604_s1 + $0x18] sm:$0xff] }
  0x3b   :  { %179 = vmatprep.subr.mxu0 %v6410_v0  ;;  %5924 = vmatprep.subr.mxu1 %v398_v21 }
  0x3c   :  { %180 = vmatpush2.msra.mxu0 %v107_v22 }
  0x3d   :  { %181 = vmatprep.subr.mxu0 %v6410_v0 }
  0x3e   :  { %182 = vmatpush2.msra.mxu0 %v106_v23 }
  0x3f   :  { %183 = vmatprep.subr.mxu0 %v6410_v0 }
  0x40   :  { %184 = vmatpush2.msra.mxu0 %v105_v24 }
  0x41   :  { %185 = vmatprep.subr.mxu0 %v6410_v0 }
  0x42   :  { %186 = vmatpush2.msra.mxu0 %v104_v25 }
  0x43   :  { %188 = vmatmul.mubr.f32.vlgmr.msra.gmra.mxu0 %v86_v26  ;;  %5976 = vmatprep.subr.mxu0 %v6410_v0 }
  0x44   :  { %5978 = vmatprep.mubr.msk.f32.mxu0 %vm6411_vm6, %v6410_v0 }
 0x103   :  { %v189_v33 = vpop.f32.mrf.mxu0 }
 0x104   :  { %v190_v34 = vadd.f32 %v5565_v30, %v189_v33 }
 0x105   :  { %v191_v35 = vpop.f32.mrf.mxu0 }
 0x106   :  { %v201_v36 = vadd.f32 %v199_v31, %v190_v34  ;;  %v207_v37 = vadd.f32 %v205_v32, %v190_v34  ;;  %v5570_v31 = vld [vmem:[%s7606_s7] ss:$0 sm:$0xff] }
 0x108   :  { %203 = vst.msk [vmem:[#allocation2 + $0x1] sm:$0xf] %vm202_vm2, %v201_v36 }
 0x109   :  { %209 = vst.msk [vmem:[#allocation2 + $0x2] sm:$0xf0] %vm208_vm3, %v207_v37 }
 0x110   :  { %v210_v38 = vld [vmem:[#allocation2] sm:$0xff]  ;;  %v211_v40 = vld [vmem:[#allocation2 + $0x8] sm:$0x3] }
 0x111   :  { %v215_v39 = vsel %vm214_vm4, %v210_v38, 0.0  ;;  %v219_v41 = vsel %vm218_vm5, %v211_v40, 0.0 }
 0x112   :  { %216 = vadd.xlane.f32.xlu0 %v215_v39  ;;  %v396_v39 = vld [vmem:[%s7604_s1 + $0x8] sm:$0xff] }
 0x116   :  { %220 = vadd.xlane.f32.xlu0 %v219_v41  ;;  %v484_v41 = vld [vmem:[%s7607_s13 + $0x18] sm:$0xff] }
 0x19b   :  { %v217_v42 = vpop.xlane.xlu0 %216 }
 0x19c   :  { %v223_v43 = vmul.f32 0.03125, %v217_v42  ;;  %v483_v42 = vld [vmem:[%s7607_s13 + $0x10] sm:$0xff] }
 0x19e   :  { %v225_v44 = vsub.f32 %v210_v38, %v223_v43  ;;  %v397_v38 = vld [vmem:[%s7604_s1 + $0x10] sm:$0xff]  ;;  %v482_v43 = vld [vmem:[%s7607_s13 + $0x8] sm:$0xff] }
 0x19f   :  { %v221_v45 = vpop.xlane.xlu0 %220 }
 0x1a0   :  { %v224_v46 = vmul.f32 0.03125, %v221_v45  ;;  %v227_v47 = vmul.f32 %v225_v44, %v225_v44  ;;  %v5571_v45 = vld [vmem:[%s7555_s10] ss:$0 sm:$0xff] }
 0x1a2   :  { %v226_v48 = vsub.f32 %v211_v40, %v224_v46  ;;  %v229_v49 = vsel %vm214_vm4, %v227_v47, 0.0  ;;  %v395_v40 = vld [vmem:[%s7604_s1] sm:$0xff] }
 0x1a3   :  { %230 = vadd.xlane.f32.xlu1 %v229_v49 }
 0x1a4   :  { %v228_v50 = vmul.f32 %v226_v48, %v226_v48 }
 0x1a6   :  { %v232_v51 = vsel %vm218_vm5, %v228_v50, 0.0  ;;  %v5574_v50 = vld [vmem:[%s7556_s12] ss:$0 sm:$0xff] }
 0x1a7   :  { %233 = vadd.xlane.f32.xlu1 %v232_v51 }
 0x22c   :  { %v231_v52 = vpop.xlane.xlu1 %230 }
 0x22d   :  { %v235_v53 = vmul.f32 0.03125, %v231_v52 }
 0x22f   :  { %v237_v54 = vadd.f32 1e-05, %v235_v53 }
 0x230   :  { %v234_v55 = vpop.xlane.xlu1 %233 }
 0x231   :  { %6314 = vrsqrt.f32 %v237_v54  ;;  %v236_v56 = vmul.f32 0.03125, %v234_v55  ;;  %v5577_v55 = vld [vmem:[%s7557_s14] ss:$0 sm:$0xff] }
 0x233   :  { %v238_v57 = vadd.f32 1e-05, %v236_v56 }
 0x235   :  { %6316 = vrsqrt.f32 %v238_v57 }
 0x23e   :  { %v6315_v58 = vpop.eup %6314 }
 0x23f   :  { %v241_v60 = vmul.f32 %v6315_v58, %v225_v44  ;;  %v481_v44 = vld [vmem:[%s7607_s13] sm:$0xff] }
 0x241   :  { %v249_v62 = vmul.f32 %v5567_v59, %v241_v60 }
 0x242   :  { %v6317_v63 = vpop.eup %6316 }
 0x243   :  { %v6678_v1 = vadd.f32 %v5568_v61, %v249_v62  ;;  %v242_v2 = vmul.f32 %v6317_v63, %v226_v48 }
 0x245   :  { %v261_v3 = vsel %vm214_vm4, %v6678_v1, 0.0  ;;  %v250_v4 = vmul.f32 %v5567_v59, %v242_v2 }
 0x246   :  { %262 = vadd.xlane.f32.xlu0 %v261_v3 }
 0x247   :  { %v6682_v5 = vadd.f32 %v5568_v61, %v250_v4 }
 0x249   :  { %v264_v6 = vsel %vm218_vm5, %v6682_v5, 0.0 }
 0x24a   :  { %265 = vadd.xlane.f32.xlu1 %v264_v6 }
 0x2cf   :  { %v263_v7 = vpop.xlane.xlu0 %262 }
 0x2d0   :  { %v267_v8 = vmul.f32 0.03125, %v263_v7 }
 0x2d2   :  { %v269_v9 = vsub.f32 %v6678_v1, %v267_v8 }
 0x2d3   :  { %v266_v10 = vpop.xlane.xlu1 %265 }
 0x2d4   :  { %v268_v11 = vmul.f32 0.03125, %v266_v10  ;;  %v271_v12 = vmul.f32 %v269_v9, %v269_v9 }
 0x2d6   :  { %v270_v13 = vsub.f32 %v6682_v5, %v268_v11  ;;  %v273_v14 = vsel %vm214_vm4, %v271_v12, 0.0 }
 0x2d7   :  { %274 = vadd.xlane.f32.xlu0 %v273_v14 }
 0x2d8   :  { %v272_v15 = vmul.f32 %v270_v13, %v270_v13 }
 0x2da   :  { %v276_v16 = vsel %vm218_vm5, %v272_v15, 0.0 }
 0x2db   :  { %277 = vadd.xlane.f32.xlu1 %v276_v16 }
 0x360   :  { %v275_v22 = vpop.xlane.xlu0 %274 }
 0x361   :  { %v279_v23 = vmul.f32 0.03125, %v275_v22 }
 0x363   :  { %v281_v24 = vadd.f32 1e-05, %v279_v23 }
 0x364   :  { %v278_v25 = vpop.xlane.xlu1 %277 }
 0x365   :  { %6318 = vrsqrt.f32 %v281_v24  ;;  %v280_v26 = vmul.f32 0.03125, %v278_v25 }
 0x367   :  { %v282_v27 = vadd.f32 1e-05, %v280_v26 }
 0x369   :  { %6320 = vrsqrt.f32 %v282_v27 }
 0x372   :  { %v6319_v28 = vpop.eup %6318 }
 0x373   :  { %v285_v30 = vmul.f32 %v6319_v28, %v269_v9 }
 0x375   :  { %v293_v32 = vmul.f32 %v5569_v29, %v285_v30 }
 0x376   :  { %v6321_v33 = vpop.eup %6320 }
 0x377   :  { %v286_v34 = vmul.f32 %v6321_v33, %v270_v13  ;;  %v301_v35 = vadd.f32 %v5570_v31, %v293_v32 }
 0x379   :  { %v294_v36 = vmul.f32 %v5569_v29, %v286_v34  ;;  %5921 = vmatprep.mubr.msk.f32.mxu1 %vm214_vm4, %v301_v35 }
 0x37b   :  { %v302_v37 = vadd.f32 %v5570_v31, %v294_v36 }
 0x37d   :  { %5922 = vmatmul.mubr.msk.f32.vlgmr.msra.gmra.mxu1 %vm214_vm4, %v302_v37 }
 0x37e   :  { %5925 = vmatpush3.msra.mxu1 %v398_v21  ;;  %5932 = vmatprep.mubr.msk.f32.mxu1 %vm214_vm4, %v301_v35 }
 0x37f   :  { %5926 = vmatprep.subr.mxu1 %v397_v38 }
 0x380   :  { %5927 = vmatpush3.msra.mxu1 %v397_v38 }
 0x381   :  { %5928 = vmatprep.subr.mxu1 %v396_v39 }
 0x382   :  { %5929 = vmatpush3.msra.mxu1 %v396_v39 }
 0x383   :  { %5930 = vmatprep.subr.mxu1 %v395_v40 }
 0x384   :  { %5931 = vmatpush3.msra.mxu1 %v395_v40 }
 0x385   :  { %5933 = vmatmul.mubr.msk.f32.vlgmr.msra.gmra.mxu1 %vm214_vm4, %v302_v37  ;;  %5935 = vmatprep.subr.mxu1 %v484_v41 }
 0x386   :  { %5936 = vmatpush3.msra.mxu1 %v484_v41  ;;  %5943 = vmatprep.mubr.msk.f32.mxu1 %vm214_vm4, %v301_v35 }
 0x387   :  { %5937 = vmatprep.subr.mxu1 %v483_v42 }
 0x388   :  { %5938 = vmatpush3.msra.mxu1 %v483_v42 }
 0x389   :  { %5939 = vmatprep.subr.mxu1 %v482_v43 }
 0x38a   :  { %5940 = vmatpush3.msra.mxu1 %v482_v43 }
 0x38b   :  { %5941 = vmatprep.subr.mxu1 %v481_v44 }
 0x38c   :  { %5942 = vmatpush3.msra.mxu1 %v481_v44 }
 0x38d   :  { %5944 = vmatmul.mubr.msk.f32.vlgmr.msra.gmra.mxu1 %vm214_vm4, %v302_v37  ;;  %5946 = vmatprep.subr.mxu1 %v6410_v0 }
 0x38e   :  { %5948 = vmatprep.mubr.msk.f32.mxu1 %vm6411_vm6, %v6410_v0 }
 0x43d   :  { %v5923_v46 = vpop.f32.mrf.mxu1 }
 0x43e   :  { %v6746_v47 = vadd.f32 %v5923_v46, %v5571_v45 }
 0x43f   :  { %v386_v48 = vpop.f32.mrf.mxu1 }
 0x440   :  { %v6748_v49 = vadd.f32 %v5571_v45, %v386_v48 }
 0x442   :  { %573 = vrot.lane.b32.xlu1 %v6748_v49, %s7582_s29 }
 0x445   :  { %v5934_v51 = vpop.f32.mrf.mxu1 }
 0x446   :  { %v6755_v52 = vadd.f32 %v5934_v51, %v5574_v50 }
 0x447   :  { %v472_v53 = vpop.f32.mrf.mxu1 }
 0x448   :  { %v6757_v54 = vadd.f32 %v5574_v50, %v472_v53 }
 0x44a   :  { %580 = vrot.lane.b32.xlu0 %v6757_v54, %s7582_s29  ;;  %5947 = vmatpush3.xpose.msk.msra.mxu1 %vm593_vm7, %v6757_v54 }
 0x44b   :  { %582 = vrot.lane.b32.xlu1 %v6757_v54, %s7580_s3  ;;  %5951 = vmatprep.subr.mxu1 %v6410_v0 }
 0x44d   :  { %v5945_v56 = vpop.f32.mrf.mxu1  ;;  %5949 = vmatmul.mubr.msk.f32.vlgmr.msra.gmra.mxu1 %vm593_vm7, %v6748_v49 }
 0x44e   :  { %v6771_v57 = vadd.f32 %v5945_v56, %v5577_v55  ;;  %584 = vrot.lane.b32.xlu0 %v6757_v54, %s7578_s11  ;;  %5953 = vmatprep.mubr.msk.f32.mxu1 %vm6411_vm6, %v6410_v0  ;;  %v6864_v56 = vld [vmem:[%s7558_s15] sm:$0xff] }
 0x44f   :  { %575 = vrot.lane.b32.xlu1 %v6748_v49, %s7580_s3  ;;  %v558_v62 = vpop.f32.mrf.mxu1 }
 0x450   :  { %v6808_v2 = vadd.f32 %v5577_v55, %v558_v62 }
 0x453   :  { %577 = vrot.lane.b32.xlu1 %v6748_v49, %s7578_s11 }
 0x4b4   :  { %v6781_v58 = vpop.permute.xlu1 %573 }
 0x4bc   :  { %v6783_v59 = vpop.permute.xlu0 %580 }
 0x4bd   :  { %v6785_v60 = vpop.permute.xlu1 %582  ;;  %5952 = vmatpush3.xpose.msk.msra.mxu1 %vm593_vm7, %v6783_v59 }
 0x4be   :  { %5956 = vmatprep.subr.mxu1 %v6410_v0 }
 0x4c0   :  { %5954 = vmatmul.mubr.msk.f32.vlgmr.msra.gmra.mxu1 %vm593_vm7, %v6781_v58  ;;  %v6799_v63 = vpop.permute.xlu0 %584 }
 0x4c1   :  { %v6792_v61 = vpop.permute.xlu1 %575  ;;  %5957 = vmatpush3.xpose.msk.msra.mxu1 %vm593_vm7, %v6785_v60  ;;  %5958 = vmatprep.mubr.msk.f32.mxu1 %vm6411_vm6, %v6410_v0 }
 0x4c2   :  { %5961 = vmatprep.subr.mxu1 %v6410_v0 }
 0x4c4   :  { %5959 = vmatmul.mubr.msk.f32.vlgmr.msra.gmra.mxu1 %vm593_vm7, %v6792_v61 }
 0x4c5   :  { %5962 = vmatpush3.xpose.msk.msra.mxu1 %vm593_vm7, %v6799_v63  ;;  %5963 = vmatprep.mubr.msk.f32.mxu1 %vm6411_vm6, %v6410_v0  ;;  %v6810_v3 = vpop.permute.xlu1 %577 }
 0x4c6   :  { %5966 = vmatprep.subr.mxu1 %v6410_v0 }
 0x4c8   :  { %5964 = vmatmul.mubr.msk.f32.vlgmr.msra.gmra.mxu1 %vm593_vm7, %v6810_v3 }
 0x4c9   :  { %5967 = vmatpush3.msk.msra.mxu1 %vm943_vm8, %v6808_v2  ;;  %5968 = vmatprep.mubr.msk.f32.mxu1 %vm6411_vm6, %v6410_v0 }
 0x4ca   :  { %5971 = vmatprep.subr.mxu1 %v6410_v0 }
 0x50d   :  { %v664_v4 = vpop.f32.mrf.mxu1 }
 0x50e   :  { %v890_v6 = vmul.f32 0.35355338, %v664_v4 }
 0x50f   :  { %v5950_v7 = vpop.f32.mrf.mxu1 }
 0x510   :  { %v895_v8 = vsel %vm894_vm9, %v890_v6, -inf }
 0x511   :  { %896 = vmax.xlane.f32.xlu0 %v895_v8  ;;  %v6882_v8 = vld [vmem:[%s7558_s15 + $0x8] sm:$0xff] }
 0x580   :  { %v738_v9 = vpop.f32.mrf.mxu1 }
 0x581   :  { %v891_v10 = vmul.f32 0.35355338, %v738_v9  ;;  %v6889_v9 = vld [vmem:[%s7558_s15 + $0x10] sm:$0xff] }
 0x582   :  { %v5955_v11 = vpop.f32.mrf.mxu1 }
 0x583   :  { %v898_v12 = vsel %vm894_vm9, %v891_v10, -inf }
 0x584   :  { %899 = vmax.xlane.f32.xlu1 %v898_v12  ;;  %v812_v13 = vpop.f32.mrf.mxu1 }
 0x585   :  { %v892_v14 = vmul.f32 0.35355338, %v812_v13 }
 0x586   :  { %v5960_v15 = vpop.f32.mrf.mxu1 }
 0x587   :  { %v901_v16 = vsel %vm894_vm9, %v892_v14, -inf }
 0x588   :  { %902 = vmax.xlane.f32.xlu0 %v901_v16  ;;  %v886_v17 = vpop.f32.mrf.mxu1  ;;  %v1570_v16 = vrot.slane %v6757_v54, 5 }
 0x589   :  { %v893_v18 = vmul.f32 0.35355338, %v886_v17 }
 0x58a   :  { %v5965_v19 = vpop.f32.mrf.mxu1 }
 0x58b   :  { %v904_v20 = vsel %vm894_vm9, %v893_v18, -inf  ;;  %v1571_v19 = vrot.slane %v6755_v52, 5 }
 0x58c   :  { %905 = vmax.xlane.f32.xlu0 %v904_v20 }
 0x58d   :  { %v1572_v54 = vsel %vm1566_vm11, %v1570_v16, %v1571_v19 }
 0x59a   :  { %v897_v21 = vpop.xlane.xlu0 %896 }
 0x59b   :  { %v907_v22 = vsub.f32 %v890_v6, %v897_v21  ;;  %v1567_v21 = vrot.slane %v6748_v49, 5 }
 0x59d   :  { %v911_v23 = vmul.f32 1.442695, %v907_v22 }
 0x59f   :  { %6322 = vpow2.f32 %v911_v23 }
 0x5ac   :  { %v6323_v24 = vpop.eup %6322 }
 0x5ad   :  { %v919_v25 = vsel %vm894_vm9, %v6323_v24, 0.0 }
 0x5ae   :  { %920 = vadd.xlane.f32.xlu0 %v919_v25 }
 0x60d   :  { %v900_v26 = vpop.xlane.xlu1 %899 }
 0x60e   :  { %v908_v27 = vsub.f32 %v891_v10, %v900_v26 }
 0x610   :  { %v913_v28 = vmul.f32 1.442695, %v908_v27 }
 0x611   :  { %v903_v29 = vpop.xlane.xlu0 %902 }
 0x612   :  { %6324 = vpow2.f32 %v913_v28  ;;  %v909_v30 = vsub.f32 %v892_v14, %v903_v29  ;;  %v6899_v14 = vld [vmem:[%s7558_s15 + $0x18] sm:$0xff]  ;;  %v1935_v28 = vrot.slane %v6808_v2, 5 }
 0x614   :  { %v915_v31 = vmul.f32 1.442695, %v909_v30 }
 0x615   :  { %v906_v36 = vpop.xlane.xlu0 %905 }
 0x616   :  { %6326 = vpow2.f32 %v915_v31  ;;  %v910_v38 = vsub.f32 %v893_v18, %v906_v36  ;;  %v1650_v31 = vrot.slane %v6783_v59, 5 }
 0x618   :  { %v917_v39 = vmul.f32 1.442695, %v910_v38 }
 0x61f   :  { %v6325_v32 = vpop.eup %6324 }
 0x620   :  { %v922_v33 = vsel %vm894_vm9, %v6325_v32, 0.0 }
 0x621   :  { %923 = vadd.xlane.f32.xlu1 %v922_v33 }
 0x623   :  { %v6327_v34 = vpop.eup %6326 }
 0x624   :  { %v925_v35 = vsel %vm894_vm9, %v6327_v34, 0.0 }
 0x625   :  { %926 = vadd.xlane.f32.xlu0 %v925_v35 }
 0x632   :  { %589 = vrot.lane.b32.xlu1 %v6808_v2, %s7580_s3 }
 0x637   :  { %v921_v37 = vpop.xlane.xlu0 %920 }
 0x638   :  { %6328 = vrcp.f32 %v921_v37  ;;  %v1647_v37 = vrot.slane %v6781_v58, 5 }
 0x639   :  { %6330 = vpow2.f32 %v917_v39  ;;  %v1810_v39 = vrot.slane %v6799_v63, 5 }
 0x63b   :  { %587 = vrot.lane.b32.xlu0 %v6808_v2, %s7582_s29 }
 0x63f   :  { %1555 = vrot.lane.b32.xlu0 %v6755_v52, %s7580_s3 }
 0x643   :  { %1557 = vrot.lane.b32.xlu0 %v6755_v52, %s7578_s11 }
 0x645   :  { %v6329_v40 = vpop.eup %6328 }
 0x646   :  { %v935_v41 = vmul.f32 %v6329_v40, %v6323_v24  ;;  %v6331_v42 = vpop.eup %6330  ;;  %v1568_v24 = vrot.slane %v6746_v47, 5 }
 0x647   :  { %1550 = vrot.lane.b32.xlu0 %v6746_v47, %s7578_s11  ;;  %v928_v43 = vsel %vm894_vm9, %v6331_v42, 0.0 }
 0x648   :  { %5969 = vmatmul.mubr.msk.f32.vlgmr.msra.gmra.mxu1 %vm939_vm10, %v935_v41  ;;  %v1569_v49 = vsel %vm1566_vm11, %v1567_v21, %v1568_v24 }
 0x649   :  { %5973 = vmatprep.mubr.msk.f32.mxu1 %vm6411_vm6, %v6410_v0 }
 0x656   :  { %929 = vadd.xlane.f32.xlu1 %v928_v43 }
 0x667   :  { %591 = vrot.lane.b32.xlu1 %v6808_v2, %s7578_s11 }
 0x66b   :  { %1553 = vrot.lane.b32.xlu1 %v6755_v52, %s7582_s29  ;;  %v1730_v52 = vrot.slane %v6785_v60, 5  ;;  %v1936_v60 = vrot.slane %v6771_v57, 5 }
 0x66d   :  { %v1937_v30 = vsel %vm1566_vm11, %v1935_v28, %v1936_v60 }
 0x66f   :  { %1546 = vrot.lane.b32.xlu1 %v6746_v47, %s7582_s29 }
 0x673   :  { %1548 = vrot.lane.b32.xlu1 %v6746_v47, %s7580_s3  ;;  %v1727_v47 = vrot.slane %v6792_v61, 5 }
 0x6aa   :  { %v924_v44 = vpop.xlane.xlu1 %923 }
 0x6ab   :  { %6332 = vrcp.f32 %v924_v44 }
 0x6ae   :  { %v6848_v45 = vpop.permute.xlu1 %589  ;;  %v927_v46 = vpop.xlane.xlu0 %926 }
 0x6af   :  { %6334 = vrcp.f32 %v927_v46  ;;  %5977 = vmatpush3.msk.msra.mxu0 %vm943_vm8, %v6848_v45 }
 0x6b0   :  { %5986 = vmatprep.subr.mxu0 %v6410_v0 }
 0x6b2   :  { %v6853_v48 = vpop.permute.xlu0 %587 }
 0x6b3   :  { %5972 = vmatpush3.msk.msra.mxu1 %vm943_vm8, %v6853_v48 }
 0x6b4   :  { %5981 = vmatprep.subr.mxu1 %v6410_v0 }
 0x6b6   :  { %v1556_v17 = vpop.permute.xlu0 %1555 }
 0x6b7   :  { %v1731_v22 = vrot.slane %v1556_v17, 5 }
 0x6b8   :  { %v6333_v50 = vpop.eup %6332 }
 0x6b9   :  { %v936_v51 = vmul.f32 %v6333_v50, %v6325_v32  ;;  %v1732_v27 = vsel %vm1566_vm11, %v1730_v52, %v1731_v22 }
 0x6ba   :  { %v1558_v61 = vpop.permute.xlu0 %1557 }
 0x6bb   :  { %5974 = vmatmul.mubr.msk.f32.vlgmr.msra.gmra.mxu1 %vm939_vm10, %v936_v51 }
 0x6bc   :  { %v6335_v53 = vpop.eup %6334  ;;  %5983 = vmatprep.mubr.msk.f32.mxu1 %vm6411_vm6, %v6410_v0 }
 0x6bd   :  { %v937_v55 = vmul.f32 %v6335_v53, %v6327_v34  ;;  %v1811_v34 = vrot.slane %v1558_v61, 5 }
 0x6be   :  { %v1551_v35 = vpop.permute.xlu0 %1550 }
 0x6bf   :  { %5979 = vmatmul.mubr.msk.f32.vlgmr.msra.gmra.mxu0 %vm939_vm10, %v937_v55  ;;  %v1808_v59 = vrot.slane %v1551_v35, 5  ;;  %v1812_v41 = vsel %vm1566_vm11, %v1810_v39, %v1811_v34 }
 0x6c0   :  { %5987 = vmatpush3.msra.mxu0 %v6864_v56  ;;  %5988 = vmatprep.mubr.msk.f32.mxu0 %vm6411_vm6, %v6410_v0 }
 0x6c1   :  { %5996 = vmatprep.subr.mxu0 %v6410_v0 }
 0x6df   :  { %v930_v62 = vpop.xlane.xlu1 %929 }
 0x6e0   :  { %6336 = vrcp.f32 %v930_v62 }
 0x6e3   :  { %v6871_v4 = vpop.permute.xlu1 %591 }
 0x6e4   :  { %5982 = vmatpush3.msk.msra.mxu1 %vm943_vm8, %v6871_v4 }
 0x6e5   :  { %5991 = vmatprep.subr.mxu1 %v6410_v0 }
 0x6e7   :  { %v1554_v12 = vpop.permute.xlu1 %1553 }
 0x6e8   :  { %v1651_v2 = vrot.slane %v1554_v12, 5  ;;  %v6961_v12 = vld [vmem:[%s7559_s16] ss:$0 sm:$0xff] }
 0x6ea   :  { %v1652_v36 = vsel %vm1566_vm11, %v1650_v31, %v1651_v2 }
 0x6eb   :  { %v1547_v13 = vpop.permute.xlu1 %1546 }
 0x6ec   :  { %v1648_v32 = vrot.slane %v1547_v13, 5 }
 0x6ed   :  { %v6337_v6 = vpop.eup %6336 }
 0x6ee   :  { %v938_v7 = vmul.f32 %v6337_v6, %v6331_v42  ;;  %v1649_v40 = vsel %vm1566_vm11, %v1647_v37, %v1648_v32  ;;  %v1807_v42 = vrot.slane %v6810_v3, 5 }
 0x6ef   :  { %v1549_v23 = vpop.permute.xlu1 %1548 }
 0x6f0   :  { %5984 = vmatmul.mubr.msk.f32.vlgmr.msra.gmra.mxu1 %vm939_vm10, %v938_v7  ;;  %v1728_v26 = vrot.slane %v1549_v23, 5  ;;  %v1809_v58 = vsel %vm1566_vm11, %v1807_v42, %v1808_v59 }
 0x6f1   :  { %5993 = vmatprep.mubr.msk.f32.mxu1 %vm6411_vm6, %v6410_v0  ;;  %5992 = vmatpush3.msra.mxu1 %v6882_v8 }
 0x6f2   :  { %6001 = vmatprep.subr.mxu1 %v6410_v0  ;;  %v1729_v29 = vsel %vm1566_vm11, %v1727_v47, %v1728_v26  ;;  %v2013_v47 = vrot.slane %v6853_v48, 5 }
 0x708   :  { %v1012_v10 = vpop.f32.mrf.mxu1 }
 0x709   :  { %5989 = vmatmul.mubr.msk.f32.vlgmr.msra.gmra.mxu0 %vm593_vm7, %v1012_v10 }
 0x70a   :  { %v5970_v11 = vpop.f32.mrf.mxu1  ;;  %5997 = vmatpush3.msra.mxu0 %v6889_v9  ;;  %5998 = vmatprep.mubr.msk.f32.mxu0 %vm6411_vm6, %v6410_v0 }
 0x70b   :  { %6006 = vmatprep.subr.mxu0 %v6410_v0 }
 0x77b   :  { %v1087_v15 = vpop.f32.mrf.mxu1 }
 0x77c   :  { %5994 = vmatmul.mubr.msk.f32.vlgmr.msra.gmra.mxu1 %vm593_vm7, %v1087_v15 }
 0x77d   :  { %v5975_v18 = vpop.f32.mrf.mxu1  ;;  %6002 = vmatpush3.msra.mxu1 %v6899_v14  ;;  %6003 = vmatprep.mubr.msk.f32.mxu1 %vm6411_vm6, %v6410_v0 }
 0x77e   :  { %6011 = vmatprep.subr.mxu1 %v6410_v0 }
 0x77f   :  { %v1162_v20 = vpop.f32.mrf.mxu0 }
 0x780   :  { %5999 = vmatmul.mubr.msk.f32.vlgmr.msra.gmra.mxu0 %vm593_vm7, %v1162_v20 }
 0x781   :  { %6007 = vmatpush3.xpose.msk.msra.mxu0 %vm593_vm7, %v1572_v54  ;;  %v5980_v25 = vpop.f32.mrf.mxu0  ;;  %6008 = vmatprep.mubr.msk.f32.mxu0 %vm6411_vm6, %v6410_v0 }
 0x782   :  { %6016 = vmatprep.subr.mxu0 %v6410_v0 }
 0x784   :  { %6009 = vmatmul.mubr.msk.f32.vlgmr.msra.gmra.mxu0 %vm593_vm7, %v1569_v49 }
 0x785   :  { %6017 = vmatpush3.xpose.msk.msra.mxu0 %vm593_vm7, %v1732_v27  ;;  %6018 = vmatprep.mubr.msk.f32.mxu0 %vm6411_vm6, %v6410_v0 }
 0x786   :  { %6026 = vmatprep.subr.mxu0 %v6410_v0 }
 0x788   :  { %6019 = vmatmul.mubr.msk.f32.vlgmr.msra.gmra.mxu0 %vm593_vm7, %v1729_v29 }
 0x789   :  { %6027 = vmatpush3.msk.msra.mxu0 %vm943_vm8, %v1937_v30  ;;  %6028 = vmatprep.mubr.msk.f32.mxu0 %vm6411_vm6, %v6410_v0 }
 0x78a   :  { %6036 = vmatprep.subr.mxu0 %v6410_v0 }
 0x7b0   :  { %v1237_v33 = vpop.f32.mrf.mxu1 }
 0x7b1   :  { %6004 = vmatmul.mubr.msk.f32.vlgmr.msra.gmra.mxu1 %vm593_vm7, %v1237_v33 }
 0x7b2   :  { %6012 = vmatpush3.xpose.msk.msra.mxu1 %vm593_vm7, %v1652_v36  ;;  %v5985_v38 = vpop.f32.mrf.mxu1  ;;  %6013 = vmatprep.mubr.msk.f32.mxu1 %vm6411_vm6, %v6410_v0 }
 0x7b3   :  { %6021 = vmatprep.subr.mxu1 %v6410_v0 }
 0x7b5   :  { %6014 = vmatmul.mubr.msk.f32.vlgmr.msra.gmra.mxu1 %vm593_vm7, %v1649_v40 }
 0x7b6   :  { %6022 = vmatpush3.xpose.msk.msra.mxu1 %vm593_vm7, %v1812_v41  ;;  %6023 = vmatprep.mubr.msk.f32.mxu1 %vm6411_vm6, %v6410_v0 }
 0x7b7   :  { %6031 = vmatprep.subr.mxu1 %v6410_v0 }
 0x7b9   :  { %6024 = vmatmul.mubr.msk.f32.vlgmr.msra.gmra.mxu1 %vm593_vm7, %v1809_v58 }
 0x7ba   :  { %6033 = vmatprep.mubr.msk.f32.mxu1 %vm6411_vm6, %v6410_v0 }
 0x7c9   :  { %v1310_v63 = vpop.f32.mrf.mxu0 }
 0x7cb   :  { %v5990_v43 = vpop.f32.mrf.mxu0 }
 0x83c   :  { %v1383_v44 = vpop.f32.mrf.mxu1 }
 0x83d   :  { %v1533_v10 = vadd.f32 %v1383_v44, %v1310_v63 }
 0x83e   :  { %v5995_v46 = vpop.f32.mrf.mxu1 }
 0x840   :  { %v1456_v50 = vpop.f32.mrf.mxu0 }
 0x841   :  { %v1534_v11 = vadd.f32 %v1533_v10, %v1456_v50 }
 0x842   :  { %v6000_v3 = vpop.f32.mrf.mxu0 }
 0x844   :  { %v1643_v51 = vpop.f32.mrf.mxu0 }
 0x845   :  { %v1887_v53 = vmul.f32 0.35355338, %v1643_v51 }
 0x846   :  { %v6010_v55 = vpop.f32.mrf.mxu0 }
 0x847   :  { %v1891_v62 = vsel %vm894_vm9, %v1887_v53, -inf }
 0x848   :  { %1892 = vmax.xlane.f32.xlu1 %v1891_v62  ;;  %v1803_v6 = vpop.f32.mrf.mxu0 }
 0x849   :  { %v1889_v21 = vmul.f32 0.35355338, %v1803_v6  ;;  %v2169_v6 = vrot.slane %v6871_v4, 5 }
 0x84a   :  { %v6020_v7 = vpop.f32.mrf.mxu0 }
 0x84b   :  { %v1897_v25 = vsel %vm894_vm9, %v1889_v21, -inf }
 0x859   :  { %1560 = vrot.lane.b32.xlu1 %v6771_v57, %s7582_s29 }
 0x871   :  { %v1529_v13 = vpop.f32.mrf.mxu1 }
 0x872   :  { %v1535_v15 = vadd.f32 %v1534_v11, %v1529_v13 }
 0x873   :  { %v6005_v16 = vpop.f32.mrf.mxu1 }
 0x874   :  { %v1542_v17 = vadd.f32 %v6961_v12, %v1535_v15 }
 0x875   :  { %v1723_v18 = vpop.f32.mrf.mxu1 }
 0x876   :  { %1544 = vst.msk [vmem:[#allocation2] sm:$0x1f] %vm1543_vm12, %v1542_v17  ;;  %v1888_v19 = vmul.f32 0.35355338, %v1723_v18 }
 0x877   :  { %v6015_v20 = vpop.f32.mrf.mxu1 }
 0x878   :  { %v1894_v22 = vsel %vm894_vm9, %v1888_v19, -inf }
 0x879   :  { %1895 = vmax.xlane.f32.xlu0 %v1894_v22  ;;  %v1883_v23 = vpop.f32.mrf.mxu1 }
 0x87a   :  { %v1890_v24 = vmul.f32 0.35355338, %v1883_v23 }
 0x87b   :  { %v6025_v54 = vpop.f32.mrf.mxu1 }
 0x87c   :  { %v1900_v52 = vsel %vm894_vm9, %v1890_v24, -inf }
 0x87d   :  { %1898 = vmax.xlane.f32.xlu0 %v1897_v25 }
 0x881   :  { %1901 = vmax.xlane.f32.xlu0 %v1900_v52 }
 0x8d1   :  { %v1893_v26 = vpop.xlane.xlu1 %1892 }
 0x8d2   :  { %v1903_v49 = vsub.f32 %v1887_v53, %v1893_v26  ;;  %v2091_v53 = vrot.slane %v6848_v45, 5 }
 0x8d4   :  { %v1907_v27 = vmul.f32 1.442695, %v1903_v49 }
 0x8d5   :  { %v1561_v28 = vpop.permute.xlu1 %1560 }
 0x8d6   :  { %6338 = vpow2.f32 %v1907_v27  ;;  %v2014_v60 = vrot.slane %v1561_v28, 5 }
 0x8d8   :  { %v2015_v29 = vsel %vm1566_vm11, %v2013_v47, %v2014_v60 }
 0x8d9   :  { %6032 = vmatpush3.msk.msra.mxu1 %vm943_vm8, %v2015_v29 }
 0x8da   :  { %6041 = vmatprep.subr.mxu1 %v6410_v0 }
 0x8e3   :  { %v6339_v30 = vpop.eup %6338 }
 0x8e4   :  { %v1915_v61 = vsel %vm894_vm9, %v6339_v30, 0.0 }
 0x8e5   :  { %1916 = vadd.xlane.f32.xlu1 %v1915_v61 }
 0x902   :  { %v1896_v2 = vpop.xlane.xlu0 %1895 }
 0x903   :  { %v1904_v31 = vsub.f32 %v1888_v19, %v1896_v2 }
 0x905   :  { %v1909_v32 = vmul.f32 1.442695, %v1904_v31 }
 0x906   :  { %v1899_v33 = vpop.xlane.xlu0 %1898 }
 0x907   :  { %6340 = vpow2.f32 %v1909_v32  ;;  %v1905_v34 = vsub.f32 %v1889_v21, %v1899_v33 }
 0x909   :  { %v1911_v35 = vmul.f32 1.442695, %v1905_v34 }
 0x90a   :  { %v1902_v48 = vpop.xlane.xlu0 %1901 }
 0x90b   :  { %6342 = vpow2.f32 %v1911_v35  ;;  %v1906_v36 = vsub.f32 %v1890_v24, %v1902_v48 }
 0x90d   :  { %v1913_v37 = vmul.f32 1.442695, %v1906_v36 }
 0x90f   :  { %6344 = vpow2.f32 %v1913_v37  ;;  %v2595_v37 = vld [vmem:[%s7560_s19 + $0x18] sm:$0xff] }
 0x914   :  { %v6341_v38 = vpop.eup %6340 }
 0x915   :  { %v1918_v39 = vsel %vm894_vm9, %v6341_v38, 0.0 }
 0x916   :  { %1919 = vadd.xlane.f32.xlu0 %v1918_v39  ;;  %v2593_v39 = vld [vmem:[%s7560_s19 + $0x8] sm:$0xff] }
 0x918   :  { %v6343_v59 = vpop.eup %6342 }
 0x919   :  { %v1921_v40 = vsel %vm894_vm9, %v6343_v59, 0.0 }
 0x91a   :  { %1922 = vadd.xlane.f32.xlu1 %v1921_v40 }
 0x91c   :  { %v6345_v41 = vpop.eup %6344 }
 0x91d   :  { %v1924_v42 = vsel %vm894_vm9, %v6345_v41, 0.0 }
 0x91e   :  { %1925 = vadd.xlane.f32.xlu0 %v1924_v42 }
 0x92b   :  { %1564 = vrot.lane.b32.xlu1 %v6771_v57, %s7578_s11 }
 0x934   :  { %1562 = vrot.lane.b32.xlu0 %v6771_v57, %s7580_s3 }
 0x96e   :  { %v1917_v58 = vpop.xlane.xlu1 %1916 }
 0x96f   :  { %6346 = vrcp.f32 %v1917_v58 }
 0x97c   :  { %v6347_v63 = vpop.eup %6346 }
 0x97d   :  { %v1931_v43 = vmul.f32 %v6347_v63, %v6339_v30 }
 0x97f   :  { %6029 = vmatmul.mubr.msk.f32.vlgmr.msra.gmra.mxu0 %vm939_vm10, %v1931_v43 }
 0x980   :  { %6038 = vmatprep.mubr.msk.f32.mxu0 %vm6411_vm6, %v6410_v0 }
 0x99f   :  { %v1920_v44 = vpop.xlane.xlu0 %1919 }
 0x9a0   :  { %6348 = vrcp.f32 %v1920_v44 }
 0x9a3   :  { %v1923_v46 = vpop.xlane.xlu1 %1922 }
 0x9a4   :  { %6350 = vrcp.f32 %v1923_v46  ;;  %v5621_v46 = vld [vmem:[%s7561_s17] ss:$0 sm:$0xff] }
 0x9a7   :  { %v1926_v50 = vpop.xlane.xlu0 %1925  ;;  %v1565_v3 = vpop.permute.xlu1 %1564 }
 0x9a8   :  { %6352 = vrcp.f32 %v1926_v50  ;;  %v2170_v57 = vrot.slane %v1565_v3, 5 }
 0x9aa   :  { %v2171_v11 = vsel %vm1566_vm11, %v2169_v6, %v2170_v57 }
 0x9ab   :  { %v1563_v51 = vpop.permute.xlu0 %1562 }
 0x9ac   :  { %v2092_v55 = vrot.slane %v1563_v51, 5  ;;  %v5622_v51 = vld [vmem:[%s7562_s18] ss:$0 sm:$0xff] }
 0x9ad   :  { %v6349_v62 = vpop.eup %6348 }
 0x9ae   :  { %v2093_v7 = vsel %vm1566_vm11, %v2091_v53, %v2092_v55  ;;  %v1932_v10 = vmul.f32 %v6349_v62, %v6341_v38  ;;  %v2594_v38 = vld [vmem:[%s7560_s19 + $0x10] sm:$0xff] }
 0x9af   :  { %6037 = vmatpush3.msk.msra.mxu0 %vm943_vm8, %v2093_v7  ;;  %v2709_v7 = vld [vmem:[%s7563_s21 + $0x38] sm:$0xff] }
 0x9b0   :  { %6034 = vmatmul.mubr.msk.f32.vlgmr.msra.gmra.mxu1 %vm939_vm10, %v1932_v10  ;;  %6046 = vmatprep.subr.mxu0 %v6410_v0  ;;  %v2708_v10 = vld [vmem:[%s7563_s21 + $0x30] sm:$0xff] }
 0x9b1   :  { %v6351_v13 = vpop.eup %6350  ;;  %6042 = vmatpush3.msk.msra.mxu1 %vm943_vm8, %v2171_v11  ;;  %6043 = vmatprep.mubr.msk.f32.mxu1 %vm6411_vm6, %v6410_v0  ;;  %v2707_v11 = vld [vmem:[%s7563_s21 + $0x28] sm:$0xff] }
 0x9b2   :  { %v1933_v45 = vmul.f32 %v6351_v13, %v6343_v59  ;;  %6051 = vmatprep.subr.mxu1 %v6410_v0  ;;  %v2592_v59 = vld [vmem:[%s7560_s19] sm:$0xff] }
 0x9b3   :  { %v2706_v13 = vld [vmem:[%s7563_s21 + $0x20] sm:$0xff] }
 0x9b4   :  { %6039 = vmatmul.mubr.msk.f32.vlgmr.msra.gmra.mxu0 %vm939_vm10, %v1933_v45  ;;  %v2705_v45 = vld [vmem:[%s7563_s21 + $0x18] sm:$0xff] }
 0x9b5   :  { %v6353_v4 = vpop.eup %6352  ;;  %6047 = vmatpush3.msra.mxu0 %v6864_v56  ;;  %6048 = vmatprep.mubr.msk.f32.mxu0 %vm6411_vm6, %v6410_v0 }
 0x9b6   :  { %v1934_v15 = vmul.f32 %v6353_v4, %v6345_v41  ;;  %6056 = vmatprep.subr.mxu0 %v6410_v0  ;;  %v2704_v4 = vld [vmem:[%s7563_s21 + $0x10] sm:$0xff] }
 0x9b8   :  { %6044 = vmatmul.mubr.msk.f32.vlgmr.msra.gmra.mxu1 %vm939_vm10, %v1934_v15  ;;  %v2703_v15 = vld [vmem:[%s7563_s21 + $0x8] sm:$0xff] }
 0x9b9   :  { %6052 = vmatpush3.msra.mxu1 %v6882_v8  ;;  %6053 = vmatprep.mubr.msk.f32.mxu1 %vm6411_vm6, %v6410_v0 }
 0x9ba   :  { %6061 = vmatprep.subr.mxu1 %v6410_v0 }
 0xa3f   :  { %v2009_v16 = vpop.f32.mrf.mxu0 }
 0xa40   :  { %6049 = vmatmul.mubr.msk.f32.vlgmr.msra.gmra.mxu0 %vm593_vm7, %v2009_v16  ;;  %v2702_v16 = vld [vmem:[%s7563_s21] sm:$0xff] }
 0xa41   :  { %v6030_v17 = vpop.f32.mrf.mxu0  ;;  %6057 = vmatpush3.msra.mxu0 %v6889_v9  ;;  %6058 = vmatprep.mubr.msk.f32.mxu0 %vm6411_vm6, %v6410_v0 }
 0xa42   :  { %v5623_v17 = vld [vmem:[%s7564_s20] ss:$0 sm:$0xff] }
 0xa70   :  { %v2087_v56 = vpop.f32.mrf.mxu1 }
 0xa71   :  { %6054 = vmatmul.mubr.msk.f32.vlgmr.msra.gmra.mxu1 %vm593_vm7, %v2087_v56 }
 0xa72   :  { %v6035_v18 = vpop.f32.mrf.mxu1  ;;  %6062 = vmatpush3.msra.mxu1 %v6899_v14  ;;  %6063 = vmatprep.mubr.msk.f32.mxu1 %vm6411_vm6, %v6410_v0 }
 0xa73   :  { %6066 = vmatprep.subr.mxu1 %v2595_v37 }
 0xa74   :  { %v2165_v8 = vpop.f32.mrf.mxu0 }
 0xa75   :  { %6059 = vmatmul.mubr.msk.f32.vlgmr.msra.gmra.mxu0 %vm593_vm7, %v2165_v8 }
 0xa76   :  { %v6040_v19 = vpop.f32.mrf.mxu0 }
 0xa78   :  { %v2243_v20 = vpop.f32.mrf.mxu1 }
 0xa79   :  { %6064 = vmatmul.mubr.msk.f32.vlgmr.msra.gmra.mxu1 %vm593_vm7, %v2243_v20 }
 0xa7a   :  { %v6045_v9 = vpop.f32.mrf.mxu1  ;;  %6067 = vmatpush3.msra.mxu1 %v2595_v37 }
 0xa7b   :  { %6068 = vmatprep.subr.mxu1 %v2594_v38 }
 0xa7c   :  { %6069 = vmatpush3.msra.mxu1 %v2594_v38 }
 0xa7d   :  { %6070 = vmatprep.subr.mxu1 %v2593_v39 }
 0xa7e   :  { %6071 = vmatpush3.msra.mxu1 %v2593_v39 }
 0xa7f   :  { %6072 = vmatprep.subr.mxu1 %v2592_v59 }
 0xa80   :  { %6073 = vmatpush3.msra.mxu1 %v2592_v59 }
 0xa81   :  { %6077 = vmatprep.subr.mxu1 %v2709_v7 }
 0xb00   :  { %v2316_v21 = vpop.f32.mrf.mxu0 }
 0xb02   :  { %v6050_v22 = vpop.f32.mrf.mxu0 }
 0xb31   :  { %v2389_v23 = vpop.f32.mrf.mxu1 }
 0xb32   :  { %v2539_v25 = vadd.f32 %v2389_v23, %v2316_v21 }
 0xb33   :  { %v6055_v54 = vpop.f32.mrf.mxu1 }
 0xb35   :  { %v2462_v24 = vpop.f32.mrf.mxu0 }
 0xb36   :  { %v2540_v26 = vadd.f32 %v2539_v25, %v2462_v24 }
 0xb37   :  { %v6060_v52 = vpop.f32.mrf.mxu0 }
 0xb39   :  { %v2535_v14 = vpop.f32.mrf.mxu1 }
 0xb3a   :  { %v2541_v49 = vadd.f32 %v2540_v26, %v2535_v14 }
 0xb3b   :  { %v6065_v27 = vpop.f32.mrf.mxu1 }
 0xb3c   :  { %v2542_v28 = vadd.f32 %v6961_v12, %v2541_v49 }
 0xb3e   :  { %2543 = vst.msk [vmem:[#allocation2 + $0x5] sm:$0x1f] %vm1543_vm12, %v2542_v28 }
 0xb45   :  { %v2545_v47 = vld [vmem:[#allocation2 + $0x8] sm:$0x3]  ;;  %v2544_v60 = vld [vmem:[#allocation2] sm:$0xff] }
 0xb46   :  { %v7017_v29 = vadd.f32 %v2545_v47, %v6682_v5  ;;  %v7020_v30 = vadd.f32 %v2544_v60, %v6678_v1 }
 0xb48   :  { %v2553_v61 = vsel %vm218_vm5, %v7017_v29, 0.0  ;;  %v2550_v2 = vsel %vm214_vm4, %v7020_v30, 0.0 }
 0xb49   :  { %2554 = vadd.xlane.f32.xlu0 %v2553_v61  ;;  %2551 = vadd.xlane.f32.xlu1 %v2550_v2 }
 0xbd2   :  { %v2555_v31 = vpop.xlane.xlu0 %2554  ;;  %v2552_v12 = vpop.xlane.xlu1 %2551 }
 0xbd3   :  { %v2557_v32 = vmul.f32 0.03125, %v2555_v31  ;;  %v2556_v33 = vmul.f32 0.03125, %v2552_v12  ;;  %v5626_v31 = vld [vmem:[%s7565_s22] ss:$0 sm:$0xff] }
 0xbd5   :  { %v2559_v34 = vsub.f32 %v7017_v29, %v2557_v32  ;;  %v2558_v5 = vsub.f32 %v7020_v30, %v2556_v33 }
 0xbd7   :  { %v2561_v35 = vmul.f32 %v2559_v34, %v2559_v34  ;;  %v2560_v48 = vmul.f32 %v2558_v5, %v2558_v5 }
 0xbd9   :  { %v2565_v1 = vsel %vm218_vm5, %v2561_v35, 0.0  ;;  %v2562_v36 = vsel %vm214_vm4, %v2560_v48, 0.0 }
 0xbda   :  { %2566 = vadd.xlane.f32.xlu1 %v2565_v1  ;;  %2563 = vadd.xlane.f32.xlu0 %v2562_v36 }
 0xc63   :  { %v2564_v40 = vpop.xlane.xlu0 %2563  ;;  %v2567_v41 = vpop.xlane.xlu1 %2566 }
 0xc64   :  { %v2568_v42 = vmul.f32 0.03125, %v2564_v40  ;;  %v2569_v58 = vmul.f32 0.03125, %v2567_v41 }
 0xc66   :  { %v2570_v63 = vadd.f32 1e-05, %v2568_v42  ;;  %v2571_v43 = vadd.f32 1e-05, %v2569_v58  ;;  %v5636_v58 = vld [vmem:[%s7603_s30 + $0x38] sm:$0xff] }
 0xc67   :  { %6096 = vmatprep.subr.mxu0 %v5636_v58 }
 0xc68   :  { %6354 = vrsqrt.f32 %v2570_v63  ;;  %v5652_v63 = vld [vmem:[%s7607_s13 + $0x38] sm:$0xff]  ;;  %6097 = vmatpush3.msra.mxu0 %v5636_v58 }
 0xc69   :  { %6356 = vrsqrt.f32 %v2571_v43  ;;  %v5635_v43 = vld [vmem:[%s7603_s30 + $0x30] sm:$0xff] }
 0xc6a   :  { %6098 = vmatprep.subr.mxu0 %v5635_v43 }
 0xc6b   :  { %6099 = vmatpush3.msra.mxu0 %v5635_v43 }
 0xc75   :  { %v6355_v44 = vpop.eup %6354 }
 0xc76   :  { %v6357_v50 = vpop.eup %6356  ;;  %v2574_v3 = vmul.f32 %v6355_v44, %v2558_v5  ;;  %v5651_v44 = vld [vmem:[%s7607_s13 + $0x30] sm:$0xff] }
 0xc77   :  { %v2575_v53 = vmul.f32 %v6357_v50, %v2559_v34  ;;  %v5650_v50 = vld [vmem:[%s7607_s13 + $0x28] sm:$0xff] }
 0xc78   :  { %v2582_v57 = vmul.f32 %v5621_v46, %v2574_v3  ;;  %v5633_v3 = vld [vmem:[%s7603_s30 + $0x20] sm:$0xff] }
 0xc79   :  { %v2583_v55 = vmul.f32 %v5621_v46, %v2575_v53  ;;  %v5634_v46 = vld [vmem:[%s7603_s30 + $0x28] sm:$0xff]  ;;  %v5644_v53 = vld [vmem:[%s7604_s1 + $0x38] sm:$0xff] }
 0xc7a   :  { %v2590_v62 = vadd.f32 %v5622_v51, %v2582_v57  ;;  %6100 = vmatprep.subr.mxu0 %v5634_v46 }
 0xc7b   :  { %v2591_v6 = vadd.f32 %v5622_v51, %v2583_v55  ;;  %v5649_v51 = vld [vmem:[%s7607_s13 + $0x20] sm:$0xff]  ;;  %6101 = vmatpush3.msra.mxu0 %v5634_v46 }
 0xc7c   :  { %6074 = vmatprep.mubr.msk.f32.mxu1 %vm214_vm4, %v2590_v62  ;;  %6102 = vmatprep.subr.mxu0 %v5633_v3 }
 0xc7d   :  { %6075 = vmatmul.mubr.msk.f32.vlgmr.msra.gmra.mxu1 %vm214_vm4, %v2591_v6  ;;  %6103 = vmatpush3.msra.mxu0 %v5633_v3 }
 0xc7e   :  { %6078 = vmatpush3.msra.mxu1 %v2709_v7  ;;  %6107 = vmatprep.subr.mxu0 %v5644_v53 }
 0xc7f   :  { %6079 = vmatprep.subr.mxu1 %v2708_v10 }
 0xc80   :  { %6080 = vmatpush3.msra.mxu1 %v2708_v10 }
 0xc81   :  { %6081 = vmatprep.subr.mxu1 %v2707_v11 }
 0xc82   :  { %6082 = vmatpush3.msra.mxu1 %v2707_v11 }
 0xc83   :  { %6083 = vmatprep.subr.mxu1 %v2706_v13 }
 0xc84   :  { %6084 = vmatpush3.msra.mxu1 %v2706_v13  ;;  %v5631_v13 = vld [vmem:[%s7605_s2 + $0x1] ss:$0 sm:$0xff] }
 0xc85   :  { %6085 = vmatprep.subr.mxu1 %v2705_v45 }
 0xc86   :  { %6086 = vmatpush3.msra.mxu1 %v2705_v45 }
 0xc87   :  { %6087 = vmatprep.subr.mxu1 %v2704_v4 }
 0xc88   :  { %6088 = vmatpush3.msra.mxu1 %v2704_v4 }
 0xc89   :  { %6089 = vmatprep.subr.mxu1 %v2703_v15 }
 0xc8a   :  { %6090 = vmatpush3.msra.mxu1 %v2703_v15  ;;  %v5632_v15 = vld [vmem:[%s7606_s7 + $0x1] ss:$0 sm:$0xff] }
 0xc8b   :  { %6091 = vmatprep.subr.mxu1 %v2702_v16 }
 0xc8c   :  { %6092 = vmatpush3.msra.mxu1 %v2702_v16 }
 0xc8d   :  { %6118 = vmatprep.subr.mxu1 %v5652_v63 }
 0xd3d   :  { %v6076_v56 = vpop.f32.mrf.mxu1 }
 0xd3e   :  { %v2681_v18 = vadd.f32 %v6076_v56, %v5623_v17 }
 0xd3f   :  { %v2675_v8 = vpop.f32.mrf.mxu1 }
 0xd40   :  { %v2685_v19 = vmul.f32 %v2681_v18, %v2681_v18  ;;  %v2676_v20 = vadd.f32 %v5623_v17, %v2675_v8 }
 0xd42   :  { %v2687_v9 = vmul.f32 %v2685_v19, %v2681_v18  ;;  %v2684_v21 = vmul.f32 %v2676_v20, %v2676_v20  ;;  %v5643_v19 = vld [vmem:[%s7604_s1 + $0x30] sm:$0xff] }
 0xd44   :  { %v2689_v22 = vmul.f32 0.044715, %v2687_v9  ;;  %v2686_v23 = vmul.f32 %v2684_v21, %v2676_v20  ;;  %v5641_v9 = vld [vmem:[%s7604_s1 + $0x20] sm:$0xff] }
 0xd45   :  { %v5638_v21 = vld [vmem:[%s7555_s10 + $0x1] ss:$0 sm:$0xff]  ;;  %s7609_s10 = smov 112  }
 0xd46   :  { %v2691_v54 = vadd.f32 %v2689_v22, %v2681_v18  ;;  %v2688_v24 = vmul.f32 0.044715, %v2686_v23  ;;  %v5654_v22 = vld [vmem:[%s7557_s14 + $0x1] ss:$0 sm:$0xff] }
 0xd48   :  { %v2693_v25 = vmul.f32 0.7978846, %v2691_v54  ;;  %v2690_v52 = vadd.f32 %v2688_v24, %v2676_v20 }
 0xd4a   :  { %6358 = vtanh.f32 %v2693_v25  ;;  %v2692_v26 = vmul.f32 0.7978846, %v2690_v52 }
 0xd4c   :  { %6360 = vtanh.f32 %v2692_v26 }
 0xd57   :  { %v6359_v14 = vpop.eup %6358 }
 0xd58   :  { %v2697_v49 = vadd.f32 1.0, %v6359_v14  ;;  %v5646_v14 = vld [vmem:[%s7556_s12 + $0x1] ss:$0 sm:$0xff]  ;;  %s7610_s12 = smov 104  }
 0xd59   :  { %v6361_v27 = vpop.eup %6360 }
 0xd5a   :  { %v2696_v28 = vadd.f32 1.0, %v6361_v27  ;;  %v2699_v47 = vmul.f32 0.5, %v2697_v49 }
 0xd5c   :  { %v2698_v60 = vmul.f32 0.5, %v2696_v28  ;;  %v2701_v2 = vmul.f32 %v2699_v47, %v2681_v18 }
 0xd5e   :  { %v2700_v61 = vmul.f32 %v2698_v60, %v2676_v20  ;;  %v5642_v20 = vld [vmem:[%s7604_s1 + $0x28] sm:$0xff]  ;;  %s7608_s1 = smov 120  }
 0xd60   :  { %6093 = vmatprep.mubr.msk.f32.mxu1 %vm119_vm0, %v2700_v61 }
 0xd61   :  { %6094 = vmatmul.mubr.msk.f32.vlgmr.msra.gmra.mxu1 %vm119_vm0, %v2701_v2 }
 0xd62   :  { %6119 = vmatpush3.msra.mxu1 %v5652_v63 }
 0xd63   :  { %6120 = vmatprep.subr.mxu1 %v5651_v44 }
 0xd64   :  { %6121 = vmatpush3.msra.mxu1 %v5651_v44 }
 0xd65   :  { %6122 = vmatprep.subr.mxu1 %v5650_v50 }
 0xd66   :  { %6123 = vmatpush3.msra.mxu1 %v5650_v50 }
 0xd67   :  { %6124 = vmatprep.subr.mxu1 %v5649_v51 }
 0xd68   :  { %6125 = vmatpush3.msra.mxu1 %v5649_v51 }
 0xd69   :  { %6134 = vmatprep.subr.mxu1 %v6410_v0 }
 0xe21   :  { %v6095_v12 = vpop.f32.mrf.mxu1 }
 0xe22   :  { %v2795_v32 = vadd.f32 %v6095_v12, %v5626_v31 }
 0xe23   :  { %v2789_v33 = vpop.f32.mrf.mxu1 }
 0xe24   :  { %v7083_v34 = vadd.f32 %v2795_v32, %v7017_v29  ;;  %v2790_v5 = vadd.f32 %v5626_v31, %v2789_v33 }
 0xe26   :  { %v7086_v35 = vadd.f32 %v2790_v5, %v7020_v30  ;;  %v2807_v48 = vsel %vm218_vm5, %v7083_v34, 0.0 }
 0xe27   :  { %2808 = vadd.xlane.f32.xlu1 %v2807_v48 }
 0xe28   :  { %v2804_v1 = vsel %vm214_vm4, %v7086_v35, 0.0 }
 0xe29   :  { %2805 = vadd.xlane.f32.xlu0 %v2804_v1 }
 0xeb0   :  { %v2809_v36 = vpop.xlane.xlu1 %2808 }
 0xeb1   :  { %v2811_v37 = vmul.f32 0.03125, %v2809_v36 }
 0xeb2   :  { %v2806_v38 = vpop.xlane.xlu0 %2805 }
 0xeb3   :  { %v2813_v39 = vsub.f32 %v7083_v34, %v2811_v37  ;;  %v2810_v59 = vmul.f32 0.03125, %v2806_v38 }
 0xeb5   :  { %v2812_v29 = vsub.f32 %v7086_v35, %v2810_v59  ;;  %v2815_v40 = vmul.f32 %v2813_v39, %v2813_v39 }
 0xeb7   :  { %v2819_v30 = vsel %vm218_vm5, %v2815_v40, 0.0  ;;  %v2814_v41 = vmul.f32 %v2812_v29, %v2812_v29 }
 0xeb8   :  { %2820 = vadd.xlane.f32.xlu1 %v2819_v30 }
 0xeb9   :  { %v2816_v42 = vsel %vm214_vm4, %v2814_v41, 0.0 }
 0xeba   :  { %2817 = vadd.xlane.f32.xlu0 %v2816_v42 }
 0xf41   :  { %v2821_v57 = vpop.xlane.xlu1 %2820 }
 0xf42   :  { %v2823_v55 = vmul.f32 0.03125, %v2821_v57 }
 0xf43   :  { %v2818_v62 = vpop.xlane.xlu0 %2817 }
 0xf44   :  { %v2825_v6 = vadd.f32 1e-05, %v2823_v55  ;;  %v2822_v7 = vmul.f32 0.03125, %v2818_v62 }
 0xf46   :  { %6362 = vrsqrt.f32 %v2825_v6  ;;  %v2824_v10 = vadd.f32 1e-05, %v2822_v7 }
 0xf48   :  { %6364 = vrsqrt.f32 %v2824_v10 }
 0xf53   :  { %v6363_v11 = vpop.eup %6362 }
 0xf54   :  { %v2829_v45 = vmul.f32 %v6363_v11, %v2813_v39 }
 0xf55   :  { %v6365_v4 = vpop.eup %6364 }
 0xf56   :  { %v2828_v16 = vmul.f32 %v6365_v4, %v2812_v29  ;;  %v2837_v17 = vmul.f32 %v5631_v13, %v2829_v45 }
 0xf58   :  { %v2836_v56 = vmul.f32 %v5631_v13, %v2828_v16  ;;  %v2845_v18 = vadd.f32 %v5632_v15, %v2837_v17 }
 0xf5a   :  { %v2844_v8 = vadd.f32 %v5632_v15, %v2836_v56 }
 0xf5c   :  { %6104 = vmatprep.mubr.msk.f32.mxu0 %vm214_vm4, %v2844_v8  ;;  %6126 = vmatprep.mubr.msk.f32.mxu1 %vm214_vm4, %v2844_v8 }
 0xf5d   :  { %6105 = vmatmul.mubr.msk.f32.vlgmr.msra.gmra.mxu0 %vm214_vm4, %v2845_v18  ;;  %6127 = vmatmul.mubr.msk.f32.vlgmr.msra.gmra.mxu1 %vm214_vm4, %v2845_v18 }
 0xf5e   :  { %6108 = vmatpush3.msra.mxu0 %v5644_v53  ;;  %6115 = vmatprep.mubr.msk.f32.mxu0 %vm214_vm4, %v2844_v8 }
 0xf5f   :  { %6109 = vmatprep.subr.mxu0 %v5643_v19  ;;  %6136 = vmatprep.mubr.msk.f32.mxu1 %vm6411_vm6, %v6410_v0 }
 0xf60   :  { %6110 = vmatpush3.msra.mxu0 %v5643_v19 }
 0xf61   :  { %6111 = vmatprep.subr.mxu0 %v5642_v20 }
 0xf62   :  { %6112 = vmatpush3.msra.mxu0 %v5642_v20 }
 0xf63   :  { %6113 = vmatprep.subr.mxu0 %v5641_v9 }
 0xf64   :  { %6114 = vmatpush3.msra.mxu0 %v5641_v9 }
 0xf65   :  { %6116 = vmatmul.mubr.msk.f32.vlgmr.msra.gmra.mxu0 %vm214_vm4, %v2845_v18  ;;  %6129 = vmatprep.subr.mxu0 %v6410_v0 }
 0xf66   :  { %6131 = vmatprep.mubr.msk.f32.mxu0 %vm6411_vm6, %v6410_v0 }
0x101d   :  { %v6106_v23 = vpop.f32.mrf.mxu0  ;;  %v6128_v54 = vpop.f32.mrf.mxu1 }
0x101e   :  { %v7156_v24 = vadd.f32 %v6106_v23, %v5638_v21  ;;  %v7158_v25 = vadd.f32 %v6128_v54, %v5654_v22 }
0x101f   :  { %v2931_v52 = vpop.f32.mrf.mxu0  ;;  %v3107_v2 = vpop.f32.mrf.mxu1 }
0x1020   :  { %v7160_v26 = vadd.f32 %v5638_v21, %v2931_v52  ;;  %v7200_v12 = vadd.f32 %v5654_v22, %v3107_v2 }
0x1022   :  { %3124 = vrot.lane.b32.xlu1 %v7160_v26, %s7608_s1 }
0x1025   :  { %v6117_v49 = vpop.f32.mrf.mxu0 }
0x1026   :  { %v7167_v27 = vadd.f32 %v6117_v49, %v5646_v14 }
0x1027   :  { %v3019_v28 = vpop.f32.mrf.mxu0 }
0x1028   :  { %v7169_v47 = vadd.f32 %v5646_v14, %v3019_v28  ;;  %v7268_v28 = vld [vmem:[%s7558_s15 + $0x20] sm:$0xff] }
0x102a   :  { %3131 = vrot.lane.b32.xlu0 %v7169_v47, %s7608_s1  ;;  %6130 = vmatpush3.xpose.msk.msra.mxu0 %vm593_vm7, %v7169_v47 }
0x102b   :  { %3133 = vrot.lane.b32.xlu1 %v7169_v47, %s7609_s10  ;;  %6139 = vmatprep.subr.mxu0 %v6410_v0 }
0x102d   :  { %6132 = vmatmul.mubr.msk.f32.vlgmr.msra.gmra.mxu0 %vm593_vm7, %v7160_v26 }
0x102e   :  { %3126 = vrot.lane.b32.xlu0 %v7160_v26, %s7609_s10  ;;  %6141 = vmatprep.mubr.msk.f32.mxu0 %vm6411_vm6, %v6410_v0 }
0x102f   :  { %3135 = vrot.lane.b32.xlu1 %v7169_v47, %s7610_s12 }
0x1033   :  { %3128 = vrot.lane.b32.xlu1 %v7160_v26, %s7610_s12 }
0x1094   :  { %v7188_v60 = vpop.permute.xlu1 %3124 }
0x109c   :  { %v7190_v61 = vpop.permute.xlu0 %3131 }
0x109d   :  { %v7192_v31 = vpop.permute.xlu1 %3133  ;;  %6135 = vmatpush3.xpose.msk.msra.mxu1 %vm593_vm7, %v7190_v61 }
0x109e   :  { %6140 = vmatpush3.xpose.msk.msra.mxu0 %vm593_vm7, %v7192_v31  ;;  %6144 = vmatprep.subr.mxu1 %v6410_v0 }
0x109f   :  { %6149 = vmatprep.subr.mxu0 %v6410_v0 }
0x10a0   :  { %v7202_v32 = vpop.permute.xlu0 %3126  ;;  %6137 = vmatmul.mubr.msk.f32.vlgmr.msra.gmra.mxu1 %vm593_vm7, %v7188_v60 }
0x10a1   :  { %v7206_v33 = vpop.permute.xlu1 %3135  ;;  %6142 = vmatmul.mubr.msk.f32.vlgmr.msra.gmra.mxu0 %vm593_vm7, %v7202_v32  ;;  %6146 = vmatprep.mubr.msk.f32.mxu1 %vm6411_vm6, %v6410_v0 }
0x10a2   :  { %6145 = vmatpush3.xpose.msk.msra.mxu1 %vm593_vm7, %v7206_v33  ;;  %6150 = vmatpush3.msk.msra.mxu0 %vm943_vm8, %v7200_v12 }
0x10a3   :  { %6151 = vmatprep.mubr.msk.f32.mxu0 %vm6411_vm6, %v6410_v0  ;;  %6159 = vmatprep.subr.mxu0 %v6410_v0 }
0x10a4   :  { %6154 = vmatprep.subr.mxu1 %v6410_v0 }
0x10a5   :  { %v7220_v5 = vpop.permute.xlu1 %3128 }
0x10a6   :  { %6147 = vmatmul.mubr.msk.f32.vlgmr.msra.gmra.mxu1 %vm593_vm7, %v7220_v5 }
0x10a7   :  { %6156 = vmatprep.mubr.msk.f32.mxu1 %vm6411_vm6, %v6410_v0 }
0x10ed   :  { %v3214_v48 = vpop.f32.mrf.mxu0 }
0x10ee   :  { %v3440_v1 = vmul.f32 0.35355338, %v3214_v48 }
0x10ef   :  { %v6133_v36 = vpop.f32.mrf.mxu0 }
0x10f0   :  { %v3444_v37 = vsel %vm894_vm9, %v3440_v1, -inf }
0x10f1   :  { %3445 = vmax.xlane.f32.xlu0 %v3444_v37  ;;  %v7289_v37 = vld [vmem:[%s7558_s15 + $0x28] sm:$0xff] }
0x1160   :  { %v3288_v38 = vpop.f32.mrf.mxu1 }
0x1161   :  { %v3441_v39 = vmul.f32 0.35355338, %v3288_v38  ;;  %v3362_v59 = vpop.f32.mrf.mxu0  ;;  %v7296_v38 = vld [vmem:[%s7558_s15 + $0x30] sm:$0xff] }
0x1162   :  { %v3442_v29 = vmul.f32 0.35355338, %v3362_v59  ;;  %v6138_v40 = vpop.f32.mrf.mxu1 }
0x1163   :  { %v6143_v30 = vpop.f32.mrf.mxu0  ;;  %v3447_v41 = vsel %vm894_vm9, %v3441_v39, -inf }
0x1164   :  { %3448 = vmax.xlane.f32.xlu1 %v3447_v41  ;;  %v3450_v42 = vsel %vm894_vm9, %v3442_v29, -inf  ;;  %v4115_v30 = vrot.slane %v7169_v47, 5 }
0x1165   :  { %3451 = vmax.xlane.f32.xlu0 %v3450_v42  ;;  %v7307_v42 = vld [vmem:[%s7558_s15 + $0x38] sm:$0xff] }
0x1166   :  { %v3436_v58 = vpop.f32.mrf.mxu1 }
0x1167   :  { %v3443_v63 = vmul.f32 0.35355338, %v3436_v58  ;;  %v4116_v58 = vrot.slane %v7167_v27, 5 }
0x1168   :  { %v6148_v43 = vpop.f32.mrf.mxu1 }
0x1169   :  { %v3453_v44 = vsel %vm894_vm9, %v3443_v63, -inf  ;;  %v4117_v47 = vsel %vm1566_vm11, %v4115_v30, %v4116_v58 }
0x116a   :  { %3454 = vmax.xlane.f32.xlu0 %v3453_v44  ;;  %v4112_v44 = vrot.slane %v7160_v26, 5 }
0x117a   :  { %v3446_v46 = vpop.xlane.xlu0 %3445 }
0x117b   :  { %v3456_v50 = vsub.f32 %v3440_v1, %v3446_v46 }
0x117d   :  { %v3460_v3 = vmul.f32 1.442695, %v3456_v50 }
0x117f   :  { %6366 = vpow2.f32 %v3460_v3 }
0x118c   :  { %v6367_v51 = vpop.eup %6366 }
0x118d   :  { %v3468_v53 = vsel %vm894_vm9, %v6367_v51, 0.0 }
0x118e   :  { %3469 = vadd.xlane.f32.xlu0 %v3468_v53  ;;  %v4275_v53 = vrot.slane %v7192_v31, 5  ;;  %v4481_v31 = vrot.slane %v7158_v25, 5 }
0x11ed   :  { %v3449_v57 = vpop.xlane.xlu1 %3448 }
0x11ee   :  { %v3457_v55 = vsub.f32 %v3441_v39, %v3449_v57  ;;  %v3452_v62 = vpop.xlane.xlu0 %3451 }
0x11ef   :  { %v3458_v6 = vsub.f32 %v3442_v29, %v3452_v62  ;;  %v4272_v62 = vrot.slane %v7202_v32, 5 }
0x11f0   :  { %v3462_v7 = vmul.f32 1.442695, %v3457_v55  ;;  %v4480_v55 = vrot.slane %v7200_v12, 5 }
0x11f1   :  { %v3464_v10 = vmul.f32 1.442695, %v3458_v6 }
0x11f2   :  { %6368 = vpow2.f32 %v3462_v7  ;;  %v4482_v7 = vsel %vm1566_vm11, %v4480_v55, %v4481_v31 }
0x11f3   :  { %6370 = vpow2.f32 %v3464_v10  ;;  %v3455_v15 = vpop.xlane.xlu0 %3454  ;;  %v4195_v10 = vrot.slane %v7190_v61, 5 }
0x11f4   :  { %v3459_v17 = vsub.f32 %v3443_v63, %v3455_v15 }
0x11f6   :  { %v3466_v56 = vmul.f32 1.442695, %v3459_v17 }
0x11ff   :  { %v6369_v11 = vpop.eup %6368 }
0x1200   :  { %v6371_v13 = vpop.eup %6370  ;;  %v3471_v45 = vsel %vm894_vm9, %v6369_v11, 0.0 }
0x1201   :  { %3472 = vadd.xlane.f32.xlu1 %v3471_v45  ;;  %v3474_v4 = vsel %vm894_vm9, %v6371_v13, 0.0 }
0x1202   :  { %3475 = vadd.xlane.f32.xlu0 %v3474_v4 }
0x1212   :  { %3140 = vrot.lane.b32.xlu1 %v7200_v12, %s7609_s10 }
0x1217   :  { %v3470_v16 = vpop.xlane.xlu0 %3469 }
0x1218   :  { %6372 = vrcp.f32 %v3470_v16  ;;  %3138 = vrot.lane.b32.xlu0 %v7200_v12, %s7608_s1  ;;  %v4192_v16 = vrot.slane %v7188_v60, 5 }
0x1219   :  { %6374 = vpow2.f32 %v3466_v56  ;;  %v4355_v56 = vrot.slane %v7206_v33, 5 }
0x121c   :  { %4101 = vrot.lane.b32.xlu0 %v7167_v27, %s7609_s10 }
0x1220   :  { %4103 = vrot.lane.b32.xlu0 %v7167_v27, %s7610_s12 }
0x1224   :  { %4096 = vrot.lane.b32.xlu0 %v7156_v24, %s7610_s12 }
0x1225   :  { %v6373_v18 = vpop.eup %6372 }
0x1226   :  { %v3484_v8 = vmul.f32 %v6373_v18, %v6367_v51  ;;  %v6375_v19 = vpop.eup %6374  ;;  %v4113_v51 = vrot.slane %v7156_v24, 5 }
0x1227   :  { %v3477_v20 = vsel %vm894_vm9, %v6375_v19, 0.0 }
0x1228   :  { %6152 = vmatmul.mubr.msk.f32.vlgmr.msra.gmra.mxu0 %vm939_vm10, %v3484_v8  ;;  %v4114_v57 = vsel %vm1566_vm11, %v4112_v44, %v4113_v51 }
0x1229   :  { %6161 = vmatprep.mubr.msk.f32.mxu0 %vm6411_vm6, %v6410_v0 }
0x1236   :  { %3478 = vadd.xlane.f32.xlu1 %v3477_v20 }
0x1247   :  { %3142 = vrot.lane.b32.xlu1 %v7200_v12, %s7610_s12 }
0x124b   :  { %4099 = vrot.lane.b32.xlu1 %v7167_v27, %s7608_s1 }
0x124f   :  { %4092 = vrot.lane.b32.xlu1 %v7156_v24, %s7608_s1 }
0x1253   :  { %4094 = vrot.lane.b32.xlu1 %v7156_v24, %s7609_s10 }
0x128a   :  { %v3473_v9 = vpop.xlane.xlu1 %3472 }
0x128b   :  { %6376 = vrcp.f32 %v3473_v9  ;;  %v3476_v21 = vpop.xlane.xlu0 %3475 }
0x128c   :  { %6378 = vrcp.f32 %v3476_v21 }
0x128e   :  { %v7255_v22 = vpop.permute.xlu1 %3140 }
0x128f   :  { %6160 = vmatpush3.msk.msra.mxu0 %vm943_vm8, %v7255_v22  ;;  %v7259_v23 = vpop.permute.xlu0 %3138 }
0x1290   :  { %6155 = vmatpush3.msk.msra.mxu1 %vm943_vm8, %v7259_v23  ;;  %6169 = vmatprep.subr.mxu0 %v6410_v0 }
0x1291   :  { %6164 = vmatprep.subr.mxu1 %v6410_v0 }
0x1293   :  { %v4102_v41 = vpop.permute.xlu0 %4101 }
0x1294   :  { %v4276_v46 = vrot.slane %v4102_v41, 5 }
0x1296   :  { %v4277_v24 = vsel %vm1566_vm11, %v4275_v53, %v4276_v46 }
0x1297   :  { %v4104_v12 = vpop.permute.xlu0 %4103 }
0x1298   :  { %v6377_v54 = vpop.eup %6376  ;;  %v4356_v45 = vrot.slane %v4104_v12, 5 }
0x1299   :  { %v6379_v52 = vpop.eup %6378  ;;  %v3485_v14 = vmul.f32 %v6377_v54, %v6369_v11 }
0x129a   :  { %v3486_v49 = vmul.f32 %v6379_v52, %v6371_v13  ;;  %v4357_v8 = vsel %vm1566_vm11, %v4355_v56, %v4356_v45 }
0x129b   :  { %6157 = vmatmul.mubr.msk.f32.vlgmr.msra.gmra.mxu1 %vm939_vm10, %v3485_v14  ;;  %v4097_v4 = vpop.permute.xlu0 %4096 }
0x129c   :  { %6162 = vmatmul.mubr.msk.f32.vlgmr.msra.gmra.mxu0 %vm939_vm10, %v3486_v49  ;;  %6166 = vmatprep.mubr.msk.f32.mxu1 %vm6411_vm6, %v6410_v0  ;;  %v4353_v61 = vrot.slane %v4097_v4, 5 }
0x129d   :  { %6170 = vmatpush3.msra.mxu0 %v7268_v28  ;;  %6171 = vmatprep.mubr.msk.f32.mxu0 %vm6411_vm6, %v6410_v0 }
0x129e   :  { %6179 = vmatprep.subr.mxu0 %v6410_v0 }
0x12bf   :  { %v3479_v2 = vpop.xlane.xlu1 %3478 }
0x12c0   :  { %6380 = vrcp.f32 %v3479_v2 }
0x12c3   :  { %v7278_v48 = vpop.permute.xlu1 %3142 }
0x12c4   :  { %6165 = vmatpush3.msk.msra.mxu1 %vm943_vm8, %v7278_v48 }
0x12c5   :  { %6174 = vmatprep.subr.mxu1 %v6410_v0 }
0x12c7   :  { %v4100_v29 = vpop.permute.xlu1 %4099 }
0x12c8   :  { %v4196_v32 = vrot.slane %v4100_v29, 5  ;;  %v7368_v29 = vld [vmem:[%s7559_s16 + $0x1] ss:$0 sm:$0xff] }
0x12ca   :  { %v4197_v15 = vsel %vm1566_vm11, %v4195_v10, %v4196_v32 }
0x12cb   :  { %v4093_v40 = vpop.permute.xlu1 %4092 }
0x12cc   :  { %v4193_v11 = vrot.slane %v4093_v40, 5 }
0x12cd   :  { %v6381_v1 = vpop.eup %6380 }
0x12ce   :  { %v3487_v36 = vmul.f32 %v6381_v1, %v6375_v19  ;;  %v4194_v18 = vsel %vm1566_vm11, %v4192_v16, %v4193_v11  ;;  %v4352_v19 = vrot.slane %v7220_v5, 5 }
0x12cf   :  { %v4095_v50 = vpop.permute.xlu1 %4094 }
0x12d0   :  { %6167 = vmatmul.mubr.msk.f32.vlgmr.msra.gmra.mxu1 %vm939_vm10, %v3487_v36  ;;  %v4273_v26 = vrot.slane %v4095_v50, 5  ;;  %v4354_v60 = vsel %vm1566_vm11, %v4352_v19, %v4353_v61 }
0x12d1   :  { %6176 = vmatprep.mubr.msk.f32.mxu1 %vm6411_vm6, %v6410_v0  ;;  %6175 = vmatpush3.msra.mxu1 %v7289_v37 }
0x12d2   :  { %6184 = vmatprep.subr.mxu1 %v6410_v0  ;;  %v4274_v6 = vsel %vm1566_vm11, %v4272_v62, %v4273_v26  ;;  %v4558_v62 = vrot.slane %v7259_v23, 5 }
0x12e8   :  { %v3559_v39 = vpop.f32.mrf.mxu0 }
0x12e9   :  { %6172 = vmatmul.mubr.msk.f32.vlgmr.msra.gmra.mxu0 %vm593_vm7, %v3559_v39 }
0x12ea   :  { %v6153_v59 = vpop.f32.mrf.mxu0  ;;  %6180 = vmatpush3.msra.mxu0 %v7296_v38  ;;  %6181 = vmatprep.mubr.msk.f32.mxu0 %vm6411_vm6, %v6410_v0 }
0x12eb   :  { %6189 = vmatprep.subr.mxu0 %v6410_v0 }
0x135b   :  { %v3634_v63 = vpop.f32.mrf.mxu1 }
0x135c   :  { %v3709_v43 = vpop.f32.mrf.mxu0  ;;  %6177 = vmatmul.mubr.msk.f32.vlgmr.msra.gmra.mxu1 %vm593_vm7, %v3634_v63 }
0x135d   :  { %v6158_v3 = vpop.f32.mrf.mxu1  ;;  %6182 = vmatmul.mubr.msk.f32.vlgmr.msra.gmra.mxu0 %vm593_vm7, %v3709_v43  ;;  %6185 = vmatpush3.msra.mxu1 %v7307_v42 }
0x135e   :  { %6190 = vmatpush3.xpose.msk.msra.mxu0 %vm593_vm7, %v4117_v47  ;;  %v6163_v27 = vpop.f32.mrf.mxu0  ;;  %6191 = vmatprep.mubr.msk.f32.mxu0 %vm6411_vm6, %v6410_v0 }
0x135f   :  { %6199 = vmatprep.subr.mxu0 %v6410_v0  ;;  %6186 = vmatprep.mubr.msk.f32.mxu1 %vm6411_vm6, %v6410_v0 }
0x1360   :  { %6194 = vmatprep.subr.mxu1 %v6410_v0 }
0x1361   :  { %6192 = vmatmul.mubr.msk.f32.vlgmr.msra.gmra.mxu0 %vm593_vm7, %v4114_v57 }
0x1362   :  { %6200 = vmatpush3.xpose.msk.msra.mxu0 %vm593_vm7, %v4277_v24  ;;  %6201 = vmatprep.mubr.msk.f32.mxu0 %vm6411_vm6, %v6410_v0 }
0x1363   :  { %6209 = vmatprep.subr.mxu0 %v6410_v0 }
0x1365   :  { %6202 = vmatmul.mubr.msk.f32.vlgmr.msra.gmra.mxu0 %vm593_vm7, %v4274_v6 }
0x1366   :  { %6210 = vmatpush3.msk.msra.mxu0 %vm943_vm8, %v4482_v7  ;;  %6211 = vmatprep.mubr.msk.f32.mxu0 %vm6411_vm6, %v6410_v0 }
0x1367   :  { %6219 = vmatprep.subr.mxu0 %v6410_v0 }
0x1390   :  { %v3784_v13 = vpop.f32.mrf.mxu1 }
0x1391   :  { %6187 = vmatmul.mubr.msk.f32.vlgmr.msra.gmra.mxu1 %vm593_vm7, %v3784_v13 }
0x1392   :  { %6195 = vmatpush3.xpose.msk.msra.mxu1 %vm593_vm7, %v4197_v15  ;;  %v6168_v17 = vpop.f32.mrf.mxu1  ;;  %6196 = vmatprep.mubr.msk.f32.mxu1 %vm6411_vm6, %v6410_v0 }
0x1393   :  { %6204 = vmatprep.subr.mxu1 %v6410_v0 }
0x1395   :  { %6197 = vmatmul.mubr.msk.f32.vlgmr.msra.gmra.mxu1 %vm593_vm7, %v4194_v18 }
0x1396   :  { %6205 = vmatpush3.xpose.msk.msra.mxu1 %vm593_vm7, %v4357_v8  ;;  %6206 = vmatprep.mubr.msk.f32.mxu1 %vm6411_vm6, %v6410_v0 }
0x1397   :  { %6214 = vmatprep.subr.mxu1 %v6410_v0 }
0x1399   :  { %6207 = vmatmul.mubr.msk.f32.vlgmr.msra.gmra.mxu1 %vm593_vm7, %v4354_v60 }
0x139a   :  { %6216 = vmatprep.mubr.msk.f32.mxu1 %vm6411_vm6, %v6410_v0 }
0x13a9   :  { %v3857_v33 = vpop.f32.mrf.mxu0 }
0x13ab   :  { %v6173_v20 = vpop.f32.mrf.mxu0 }
0x141c   :  { %v3930_v9 = vpop.f32.mrf.mxu1 }
0x141d   :  { %v4003_v21 = vpop.f32.mrf.mxu0  ;;  %v4080_v39 = vadd.f32 %v3930_v9, %v3857_v33 }
0x141e   :  { %v6178_v54 = vpop.f32.mrf.mxu1 }
0x141f   :  { %v6183_v5 = vpop.f32.mrf.mxu0  ;;  %v4081_v59 = vadd.f32 %v4080_v39, %v4003_v21 }
0x1421   :  { %v4188_v52 = vpop.f32.mrf.mxu0 }
0x1422   :  { %v4432_v14 = vmul.f32 0.35355338, %v4188_v52 }
0x1423   :  { %v6193_v49 = vpop.f32.mrf.mxu0 }
0x1424   :  { %v4436_v2 = vsel %vm894_vm9, %v4432_v14, -inf }
0x1425   :  { %4437 = vmax.xlane.f32.xlu1 %v4436_v2  ;;  %v4348_v1 = vpop.f32.mrf.mxu0 }
0x1426   :  { %v4434_v46 = vmul.f32 0.35355338, %v4348_v1  ;;  %v4714_v1 = vrot.slane %v7278_v48, 5 }
0x1427   :  { %v6203_v36 = vpop.f32.mrf.mxu0 }
0x1428   :  { %v4442_v27 = vsel %vm894_vm9, %v4434_v46, -inf }
0x1436   :  { %4106 = vrot.lane.b32.xlu1 %v7158_v25, %s7608_s1 }
0x1451   :  { %v4076_v40 = vpop.f32.mrf.mxu1 }
0x1452   :  { %v4082_v30 = vadd.f32 %v4081_v59, %v4076_v40 }
0x1453   :  { %v6188_v41 = vpop.f32.mrf.mxu1 }
0x1454   :  { %v4089_v58 = vadd.f32 %v7368_v29, %v4082_v30 }
0x1455   :  { %v4268_v63 = vpop.f32.mrf.mxu1 }
0x1456   :  { %4090 = vst.msk [vmem:[#allocation2] sm:$0x1f] %vm1543_vm12, %v4089_v58  ;;  %v4433_v43 = vmul.f32 0.35355338, %v4268_v63 }
0x1457   :  { %v6198_v44 = vpop.f32.mrf.mxu1 }
0x1458   :  { %v4439_v50 = vsel %vm894_vm9, %v4433_v43, -inf }
0x1459   :  { %4440 = vmax.xlane.f32.xlu0 %v4439_v50  ;;  %v4428_v3 = vpop.f32.mrf.mxu1 }
0x145a   :  { %v4435_v51 = vmul.f32 0.35355338, %v4428_v3 }
0x145b   :  { %v6208_v47 = vpop.f32.mrf.mxu1 }
0x145c   :  { %v4445_v53 = vsel %vm894_vm9, %v4435_v51, -inf }
0x145d   :  { %4443 = vmax.xlane.f32.xlu0 %v4442_v27 }
0x1461   :  { %4446 = vmax.xlane.f32.xlu0 %v4445_v53 }
0x14ae   :  { %v4438_v26 = vpop.xlane.xlu1 %4437 }
0x14af   :  { %v4448_v57 = vsub.f32 %v4432_v14, %v4438_v26  ;;  %v4636_v14 = vrot.slane %v7255_v22, 5 }
0x14b1   :  { %v4452_v24 = vmul.f32 1.442695, %v4448_v57 }
0x14b2   :  { %v4107_v55 = vpop.permute.xlu1 %4106 }
0x14b3   :  { %6382 = vpow2.f32 %v4452_v24  ;;  %v4559_v31 = vrot.slane %v4107_v55, 5 }
0x14b5   :  { %v4560_v6 = vsel %vm1566_vm11, %v4558_v62, %v4559_v31 }
0x14b6   :  { %6215 = vmatpush3.msk.msra.mxu1 %vm943_vm8, %v4560_v6 }
0x14b7   :  { %6224 = vmatprep.subr.mxu1 %v6410_v0 }
0x14c0   :  { %v6383_v7 = vpop.eup %6382 }
0x14c1   :  { %v4460_v12 = vsel %vm894_vm9, %v6383_v7, 0.0 }
0x14c2   :  { %4461 = vadd.xlane.f32.xlu1 %v4460_v12 }
0x14e2   :  { %v4441_v32 = vpop.xlane.xlu0 %4440 }
0x14e3   :  { %v4449_v10 = vsub.f32 %v4433_v43, %v4441_v32 }
0x14e5   :  { %v4454_v11 = vmul.f32 1.442695, %v4449_v10 }
0x14e6   :  { %v4444_v13 = vpop.xlane.xlu0 %4443 }
0x14e7   :  { %6384 = vpow2.f32 %v4454_v11  ;;  %v4450_v45 = vsub.f32 %v4434_v46, %v4444_v13 }
0x14e9   :  { %v4456_v4 = vmul.f32 1.442695, %v4450_v45 }
0x14ea   :  { %v4447_v23 = vpop.xlane.xlu0 %4446 }
0x14eb   :  { %6386 = vpow2.f32 %v4456_v4  ;;  %v4451_v15 = vsub.f32 %v4435_v51, %v4447_v23 }
0x14ed   :  { %v4458_v16 = vmul.f32 1.442695, %v4451_v15  ;;  %v5710_v15 = vld [vmem:[%s7560_s19 + $0x38] sm:$0xff] }
0x14ef   :  { %6388 = vpow2.f32 %v4458_v16  ;;  %v5709_v16 = vld [vmem:[%s7560_s19 + $0x30] sm:$0xff] }
0x14f4   :  { %v6385_v17 = vpop.eup %6384 }
0x14f5   :  { %v4463_v56 = vsel %vm894_vm9, %v6385_v17, 0.0 }
0x14f6   :  { %4464 = vadd.xlane.f32.xlu0 %v4463_v56  ;;  %v5707_v56 = vld [vmem:[%s7560_s19 + $0x20] sm:$0xff] }
0x14f8   :  { %v6387_v61 = vpop.eup %6386 }
0x14f9   :  { %v4466_v18 = vsel %vm894_vm9, %v6387_v61, 0.0 }
0x14fa   :  { %4467 = vadd.xlane.f32.xlu1 %v4466_v18 }
0x14fc   :  { %v6389_v8 = vpop.eup %6388 }
0x14fd   :  { %v4469_v19 = vsel %vm894_vm9, %v6389_v8, 0.0 }
0x14fe   :  { %4470 = vadd.xlane.f32.xlu0 %v4469_v19 }
0x150b   :  { %4110 = vrot.lane.b32.xlu1 %v7158_v25, %s7610_s12 }
0x1514   :  { %4108 = vrot.lane.b32.xlu0 %v7158_v25, %s7609_s10 }
0x154b   :  { %v4462_v60 = vpop.xlane.xlu1 %4461 }
0x154c   :  { %6390 = vrcp.f32 %v4462_v60 }
0x1559   :  { %v6391_v33 = vpop.eup %6390 }
0x155a   :  { %v4476_v20 = vmul.f32 %v6391_v33, %v6383_v7 }
0x155c   :  { %6212 = vmatmul.mubr.msk.f32.vlgmr.msra.gmra.mxu0 %vm939_vm10, %v4476_v20 }
0x155d   :  { %6221 = vmatprep.mubr.msk.f32.mxu0 %vm6411_vm6, %v6410_v0 }
0x157f   :  { %v4465_v9 = vpop.xlane.xlu0 %4464 }
0x1580   :  { %6392 = vrcp.f32 %v4465_v9  ;;  %v5705_v9 = vld [vmem:[%s7561_s17 + $0x1] ss:$0 sm:$0xff] }
0x1583   :  { %v4468_v21 = vpop.xlane.xlu1 %4467 }
0x1584   :  { %6394 = vrcp.f32 %v4468_v21 }
0x1587   :  { %v4471_v54 = vpop.xlane.xlu0 %4470  ;;  %v4111_v5 = vpop.permute.xlu1 %4110 }
0x1588   :  { %6396 = vrcp.f32 %v4471_v54  ;;  %v4715_v25 = vrot.slane %v4111_v5, 5  ;;  %v5706_v5 = vld [vmem:[%s7562_s18 + $0x1] ss:$0 sm:$0xff] }
0x158a   :  { %v4716_v59 = vsel %vm1566_vm11, %v4714_v1, %v4715_v25  ;;  %v5722_v1 = vld [vmem:[%s7563_s21 + $0x78] sm:$0xff] }
0x158b   :  { %v4109_v52 = vpop.permute.xlu0 %4108 }
0x158c   :  { %v4637_v49 = vrot.slane %v4109_v52, 5 }
0x158d   :  { %v6393_v2 = vpop.eup %6392 }
0x158e   :  { %v4638_v36 = vsel %vm1566_vm11, %v4636_v14, %v4637_v49  ;;  %v4477_v39 = vmul.f32 %v6393_v2, %v6385_v17  ;;  %v5708_v17 = vld [vmem:[%s7560_s19 + $0x28] sm:$0xff] }
0x158f   :  { %6220 = vmatpush3.msk.msra.mxu0 %vm943_vm8, %v4638_v36  ;;  %v5721_v36 = vld [vmem:[%s7563_s21 + $0x70] sm:$0xff] }
0x1590   :  { %6217 = vmatmul.mubr.msk.f32.vlgmr.msra.gmra.mxu1 %vm939_vm10, %v4477_v39  ;;  %6229 = vmatprep.subr.mxu0 %v6410_v0  ;;  %v5720_v39 = vld [vmem:[%s7563_s21 + $0x68] sm:$0xff] }
0x1591   :  { %v6395_v40 = vpop.eup %6394  ;;  %6225 = vmatpush3.msk.msra.mxu1 %vm943_vm8, %v4716_v59  ;;  %6226 = vmatprep.mubr.msk.f32.mxu1 %vm6411_vm6, %v6410_v0  ;;  %v5719_v59 = vld [vmem:[%s7563_s21 + $0x60] sm:$0xff] }
0x1592   :  { %v4478_v22 = vmul.f32 %v6395_v40, %v6387_v61  ;;  %6234 = vmatprep.subr.mxu1 %v6410_v0  ;;  %v5718_v40 = vld [vmem:[%s7563_s21 + $0x58] sm:$0xff] }
0x1594   :  { %6222 = vmatmul.mubr.msk.f32.vlgmr.msra.gmra.mxu0 %vm939_vm10, %v4478_v22  ;;  %v5717_v22 = vld [vmem:[%s7563_s21 + $0x50] sm:$0xff] }
0x1595   :  { %v6397_v48 = vpop.eup %6396  ;;  %6230 = vmatpush3.msra.mxu0 %v7268_v28  ;;  %6231 = vmatprep.mubr.msk.f32.mxu0 %vm6411_vm6, %v6410_v0 }
0x1596   :  { %v4479_v30 = vmul.f32 %v6397_v48, %v6389_v8  ;;  %6239 = vmatprep.subr.mxu0 %v6410_v0  ;;  %v5716_v48 = vld [vmem:[%s7563_s21 + $0x48] sm:$0xff] }
0x1598   :  { %6227 = vmatmul.mubr.msk.f32.vlgmr.msra.gmra.mxu1 %vm939_vm10, %v4479_v30  ;;  %v5715_v30 = vld [vmem:[%s7563_s21 + $0x40] sm:$0xff] }
0x1599   :  { %6235 = vmatpush3.msra.mxu1 %v7289_v37  ;;  %6236 = vmatprep.mubr.msk.f32.mxu1 %vm6411_vm6, %v6410_v0 }
0x159a   :  { %6244 = vmatprep.subr.mxu1 %v6410_v0 }
0x161c   :  { %v4554_v41 = vpop.f32.mrf.mxu0 }
0x161d   :  { %6232 = vmatmul.mubr.msk.f32.vlgmr.msra.gmra.mxu0 %vm593_vm7, %v4554_v41  ;;  %v5712_v41 = vld [vmem:[%s7564_s20 + $0x1] ss:$0 sm:$0xff] }
0x161e   :  { %v6213_v58 = vpop.f32.mrf.mxu0  ;;  %6240 = vmatpush3.msra.mxu0 %v7296_v38  ;;  %6241 = vmatprep.mubr.msk.f32.mxu0 %vm6411_vm6, %v6410_v0 }
0x161f   :  { %6249 = vmatprep.subr.mxu0 %v5710_v15 }
0x1650   :  { %v4632_v28 = vpop.f32.mrf.mxu1 }
0x1651   :  { %6237 = vmatmul.mubr.msk.f32.vlgmr.msra.gmra.mxu1 %vm593_vm7, %v4632_v28 }
0x1652   :  { %v6218_v63 = vpop.f32.mrf.mxu1  ;;  %6245 = vmatpush3.msra.mxu1 %v7307_v42  ;;  %6246 = vmatprep.mubr.msk.f32.mxu1 %vm6411_vm6, %v6410_v0 }
0x1653   :  { %6260 = vmatprep.subr.mxu1 %v5722_v1 }
0x1654   :  { %v4710_v37 = vpop.f32.mrf.mxu0 }
0x1655   :  { %6242 = vmatmul.mubr.msk.f32.vlgmr.msra.gmra.mxu0 %vm593_vm7, %v4710_v37 }
0x1656   :  { %v6223_v43 = vpop.f32.mrf.mxu0  ;;  %6250 = vmatpush3.msra.mxu0 %v5710_v15  ;;  %v5468_v15 = vld [vmem:[%s7567_s25 + $0x38] sm:$0xff] }
0x1657   :  { %6251 = vmatprep.subr.mxu0 %v5709_v16 }
0x1658   :  { %v4788_v44 = vpop.f32.mrf.mxu1  ;;  %6252 = vmatpush3.msra.mxu0 %v5709_v16  ;;  %v5467_v16 = vld [vmem:[%s7567_s25 + $0x30] sm:$0xff] }
0x1659   :  { %6247 = vmatmul.mubr.msk.f32.vlgmr.msra.gmra.mxu1 %vm593_vm7, %v4788_v44  ;;  %6253 = vmatprep.subr.mxu0 %v5708_v17 }
0x165a   :  { %v6228_v38 = vpop.f32.mrf.mxu1  ;;  %6254 = vmatpush3.msra.mxu0 %v5708_v17  ;;  %6261 = vmatpush3.msra.mxu1 %v5722_v1  ;;  %v5464_v17 = vld [vmem:[%s7567_s25 + $0x18] sm:$0xff] }
0x165b   :  { %6255 = vmatprep.subr.mxu0 %v5707_v56  ;;  %6262 = vmatprep.subr.mxu1 %v5721_v36 }
0x165c   :  { %6256 = vmatpush3.msra.mxu0 %v5707_v56  ;;  %6263 = vmatpush3.msra.mxu1 %v5721_v36  ;;  %v5463_v56 = vld [vmem:[%s7567_s25 + $0x10] sm:$0xff] }
0x165d   :  { %6264 = vmatprep.subr.mxu1 %v5720_v39 }
0x165e   :  { %6265 = vmatpush3.msra.mxu1 %v5720_v39 }
0x165f   :  { %6266 = vmatprep.subr.mxu1 %v5719_v59 }
0x1660   :  { %6267 = vmatpush3.msra.mxu1 %v5719_v59 }
0x1661   :  { %6268 = vmatprep.subr.mxu1 %v5718_v40 }
0x1662   :  { %6269 = vmatpush3.msra.mxu1 %v5718_v40 }
0x1663   :  { %6270 = vmatprep.subr.mxu1 %v5717_v22 }
0x1664   :  { %6271 = vmatpush3.msra.mxu1 %v5717_v22 }
0x1665   :  { %6272 = vmatprep.subr.mxu1 %v5716_v48 }
0x1666   :  { %6273 = vmatpush3.msra.mxu1 %v5716_v48 }
0x1667   :  { %6274 = vmatprep.subr.mxu1 %v5715_v30 }
0x1668   :  { %6275 = vmatpush3.msra.mxu1 %v5715_v30 }
0x16dd   :  { %v4861_v46 = vpop.f32.mrf.mxu0 }
0x16df   :  { %v6233_v50 = vpop.f32.mrf.mxu0 }
0x1711   :  { %v4934_v3 = vpop.f32.mrf.mxu1 }
0x1712   :  { %v5084_v27 = vadd.f32 %v4934_v3, %v4861_v46 }
0x1713   :  { %v6238_v47 = vpop.f32.mrf.mxu1 }
0x1715   :  { %v5007_v51 = vpop.f32.mrf.mxu0 }
0x1716   :  { %v5085_v26 = vadd.f32 %v5084_v27, %v5007_v51 }
0x1717   :  { %v6243_v53 = vpop.f32.mrf.mxu0 }
0x1719   :  { %v5080_v42 = vpop.f32.mrf.mxu1 }
0x171a   :  { %v5086_v57 = vadd.f32 %v5085_v26, %v5080_v42 }
0x171b   :  { %v6248_v24 = vpop.f32.mrf.mxu1 }
0x171c   :  { %v5087_v0 = vadd.f32 %v7368_v29, %v5086_v57 }
0x171e   :  { %5088 = vst.msk [vmem:[#allocation2 + $0x5] sm:$0x1f] %vm1543_vm12, %v5087_v0 }
0x1725   :  { %v5090_v55 = vld [vmem:[#allocation2 + $0x8] sm:$0x3]  ;;  %v5089_v62 = vld [vmem:[#allocation2] sm:$0xff] }
0x1726   :  { %v7424_v31 = vadd.f32 %v5090_v55, %v7083_v34  ;;  %v7427_v6 = vadd.f32 %v5089_v62, %v7086_v35 }
0x1728   :  { %v5100_v7 = vsel %vm218_vm5, %v7424_v31, 0.0  ;;  %v5097_v12 = vsel %vm214_vm4, %v7427_v6, 0.0 }
0x1729   :  { %5101 = vadd.xlane.f32.xlu0 %v5100_v7  ;;  %5098 = vadd.xlane.f32.xlu1 %v5097_v12  ;;  %v5354_v12 = vld [vmem:[%s7566_s23 + $0x18] sm:$0xff] }
0x172a   :  { %6279 = vmatprep.subr.mxu0 %v5354_v12 }
0x17b2   :  { %v5102_v32 = vpop.xlane.xlu0 %5101  ;;  %v5099_v29 = vpop.xlane.xlu1 %5098 }
0x17b3   :  { %v5104_v10 = vmul.f32 0.03125, %v5102_v32  ;;  %v5103_v11 = vmul.f32 0.03125, %v5099_v29  ;;  %v5353_v32 = vld [vmem:[%s7566_s23 + $0x10] sm:$0xff]  ;;  %v5352_v29 = vld [vmem:[%s7566_s23 + $0x8] sm:$0xff] }
0x17b5   :  { %v5106_v13 = vsub.f32 %v7424_v31, %v5104_v10  ;;  %v5105_v34 = vsub.f32 %v7427_v6, %v5103_v11  ;;  %v5351_v10 = vld [vmem:[%s7566_s23] sm:$0xff] }
0x17b6   :  { %v5724_v11 = vld [vmem:[%s7565_s22 + $0x1] ss:$0 sm:$0xff] }
0x17b7   :  { %v5108_v45 = vmul.f32 %v5106_v13, %v5106_v13  ;;  %v5107_v4 = vmul.f32 %v5105_v34, %v5105_v34 }
0x17b9   :  { %v5112_v35 = vsel %vm218_vm5, %v5108_v45, 0.0  ;;  %v5109_v23 = vsel %vm214_vm4, %v5107_v4, 0.0 }
0x17ba   :  { %5113 = vadd.xlane.f32.xlu1 %v5112_v35  ;;  %5110 = vadd.xlane.f32.xlu0 %v5109_v23 }
0x1843   :  { %v5111_v61 = vpop.xlane.xlu0 %5110  ;;  %v5114_v18 = vpop.xlane.xlu1 %5113 }
0x1844   :  { %v5115_v8 = vmul.f32 0.03125, %v5111_v61  ;;  %v5116_v19 = vmul.f32 0.03125, %v5114_v18  ;;  %v5462_v61 = vld [vmem:[%s7567_s25 + $0x8] sm:$0xff]  ;;  %v5461_v18 = vld [vmem:[%s7567_s25] sm:$0xff] }
0x1846   :  { %v5117_v60 = vadd.f32 1e-05, %v5115_v8  ;;  %v5118_v33 = vadd.f32 1e-05, %v5116_v19  ;;  %v5727_v8 = vld [vmem:[%s7568_s24] ss:$0 sm:$0xff] }
0x1848   :  { %6398 = vrsqrt.f32 %v5117_v60 }
0x1849   :  { %6400 = vrsqrt.f32 %v5118_v33 }
0x1855   :  { %v6399_v20 = vpop.eup %6398 }
0x1856   :  { %v6401_v21 = vpop.eup %6400  ;;  %v5121_v54 = vmul.f32 %v6399_v20, %v5105_v34 }
0x1857   :  { %v5122_v52 = vmul.f32 %v6401_v21, %v5106_v13 }
0x1858   :  { %v5129_v14 = vmul.f32 %v5705_v9, %v5121_v54 }
0x1859   :  { %v5130_v25 = vmul.f32 %v5705_v9, %v5122_v52 }
0x185a   :  { %v5137_v49 = vadd.f32 %v5706_v5, %v5129_v14 }
0x185b   :  { %v5138_v2 = vadd.f32 %v5706_v5, %v5130_v25 }
0x185c   :  { %6257 = vmatprep.mubr.msk.f32.mxu0 %vm214_vm4, %v5137_v49 }
0x185d   :  { %6258 = vmatmul.mubr.msk.f32.vlgmr.msra.gmra.mxu0 %vm214_vm4, %v5138_v2 }
0x185e   :  { %6280 = vmatpush3.msra.mxu0 %v5354_v12 }
0x185f   :  { %6281 = vmatprep.subr.mxu0 %v5353_v32 }
0x1860   :  { %6282 = vmatpush3.msra.mxu0 %v5353_v32 }
0x1861   :  { %6283 = vmatprep.subr.mxu0 %v5352_v29 }
0x1862   :  { %6284 = vmatpush3.msra.mxu0 %v5352_v29 }
0x1863   :  { %6285 = vmatprep.subr.mxu0 %v5351_v10 }
0x1864   :  { %6286 = vmatpush3.msra.mxu0 %v5351_v10 }
0x1865   :  { %6290 = vmatprep.subr.mxu0 %v5468_v15 }
0x191d   :  { %v6259_v58 = vpop.f32.mrf.mxu0 }
0x191e   :  { %v5230_v28 = vadd.f32 %v6259_v58, %v5712_v41  ;;  %v5730_v58 = vld [vmem:[%s7569_s26] ss:$0 sm:$0xff] }
0x191f   :  { %v5224_v63 = vpop.f32.mrf.mxu0 }
0x1920   :  { %v5234_v37 = vmul.f32 %v5230_v28, %v5230_v28  ;;  %v5225_v43 = vadd.f32 %v5712_v41, %v5224_v63 }
0x1922   :  { %v5236_v44 = vmul.f32 %v5234_v37, %v5230_v28  ;;  %v5233_v38 = vmul.f32 %v5225_v43, %v5225_v43 }
0x1924   :  { %v5238_v46 = vmul.f32 0.044715, %v5236_v44  ;;  %v5235_v50 = vmul.f32 %v5233_v38, %v5225_v43 }
0x1926   :  { %v5240_v3 = vadd.f32 %v5238_v46, %v5230_v28  ;;  %v5237_v47 = vmul.f32 0.044715, %v5235_v50 }
0x1928   :  { %v5242_v51 = vmul.f32 0.7978846, %v5240_v3  ;;  %v5239_v27 = vadd.f32 %v5237_v47, %v5225_v43 }
0x192a   :  { %6402 = vtanh.f32 %v5242_v51  ;;  %v5241_v53 = vmul.f32 0.7978846, %v5239_v27 }
0x192c   :  { %6404 = vtanh.f32 %v5241_v53 }
0x1937   :  { %v6403_v26 = vpop.eup %6402 }
0x1938   :  { %v5246_v42 = vadd.f32 1.0, %v6403_v26 }
0x1939   :  { %v6405_v57 = vpop.eup %6404 }
0x193a   :  { %v5245_v24 = vadd.f32 1.0, %v6405_v57  ;;  %v5248_v0 = vmul.f32 0.5, %v5246_v42 }
0x193c   :  { %v5247_v55 = vmul.f32 0.5, %v5245_v24  ;;  %v5250_v7 = vmul.f32 %v5248_v0, %v5230_v28 }
0x193e   :  { %v5249_v62 = vmul.f32 %v5247_v55, %v5225_v43 }
0x1940   :  { %6276 = vmatprep.mubr.msk.f32.mxu1 %vm119_vm0, %v5249_v62 }
0x1941   :  { %6277 = vmatmul.mubr.msk.f32.vlgmr.msra.gmra.mxu1 %vm119_vm0, %v5250_v7 }
0x1a01   :  { %v6278_v13 = vpop.f32.mrf.mxu1 }
0x1a02   :  { %v5346_v34 = vadd.f32 %v6278_v13, %v5724_v11 }
0x1a03   :  { %v5340_v45 = vpop.f32.mrf.mxu1 }
0x1a04   :  { %v5341_v4 = vadd.f32 %v5724_v11, %v5340_v45  ;;  %v5350_v23 = vadd.f32 %v5346_v34, %v7424_v31  ;;  %v5466_v31 = vld [vmem:[%s7567_s25 + $0x28] sm:$0xff] }
0x1a06   :  { %v5349_v35 = vadd.f32 %v5341_v4, %v7427_v6  ;;  %v5465_v6 = vld [vmem:[%s7567_s25 + $0x20] sm:$0xff] }
0x1a08   :  { %6287 = vmatprep.mubr.msk.f32.mxu0 %vm214_vm4, %v5349_v35 }
0x1a09   :  { %6288 = vmatmul.mubr.msk.f32.vlgmr.msra.gmra.mxu0 %vm214_vm4, %v5350_v23 }
0x1a0a   :  { %6291 = vmatpush3.msra.mxu0 %v5468_v15 }
0x1a0b   :  { %6292 = vmatprep.subr.mxu0 %v5467_v16 }
0x1a0c   :  { %6293 = vmatpush3.msra.mxu0 %v5467_v16 }
0x1a0d   :  { %6294 = vmatprep.subr.mxu0 %v5466_v31 }
0x1a0e   :  { %6295 = vmatpush3.msra.mxu0 %v5466_v31 }
0x1a0f   :  { %6296 = vmatprep.subr.mxu0 %v5465_v6 }
0x1a10   :  { %6297 = vmatpush3.msra.mxu0 %v5465_v6 }
0x1a11   :  { %6298 = vmatprep.subr.mxu0 %v5464_v17 }
0x1a12   :  { %6299 = vmatpush3.msra.mxu0 %v5464_v17 }
0x1a13   :  { %6300 = vmatprep.subr.mxu0 %v5463_v56 }
0x1a14   :  { %6301 = vmatpush3.msra.mxu0 %v5463_v56 }
0x1a15   :  { %6302 = vmatprep.subr.mxu0 %v5462_v61 }
0x1a16   :  { %6303 = vmatpush3.msra.mxu0 %v5462_v61 }
0x1a17   :  { %6304 = vmatprep.subr.mxu0 %v5461_v18 }
0x1a18   :  { %6305 = vmatpush3.msra.mxu0 %v5461_v18 }
0x1ac9   :  { %v6289_v19 = vpop.f32.mrf.mxu0 }
0x1aca   :  { %v5440_v60 = vadd.f32 %v6289_v19, %v5727_v8 }
0x1acb   :  { %v5434_v33 = vpop.f32.mrf.mxu0 }
0x1acc   :  { %v5444_v20 = vmul.f32 %v5440_v60, %v5440_v60  ;;  %v5435_v9 = vadd.f32 %v5727_v8, %v5434_v33 }
0x1ace   :  { %v5446_v21 = vmul.f32 %v5444_v20, %v5440_v60  ;;  %v5443_v54 = vmul.f32 %v5435_v9, %v5435_v9 }
0x1ad0   :  { %v5448_v5 = vmul.f32 0.044715, %v5446_v21  ;;  %v5445_v52 = vmul.f32 %v5443_v54, %v5435_v9 }
0x1ad2   :  { %v5450_v14 = vadd.f32 %v5448_v5, %v5440_v60  ;;  %v5447_v25 = vmul.f32 0.044715, %v5445_v52 }
0x1ad4   :  { %v5452_v49 = vmul.f32 0.7978846, %v5450_v14  ;;  %v5449_v2 = vadd.f32 %v5447_v25, %v5435_v9 }
0x1ad6   :  { %6406 = vtanh.f32 %v5452_v49  ;;  %v5451_v1 = vmul.f32 0.7978846, %v5449_v2 }
0x1ad8   :  { %6408 = vtanh.f32 %v5451_v1 }
0x1ae3   :  { %v6407_v36 = vpop.eup %6406 }
0x1ae4   :  { %v5456_v39 = vadd.f32 1.0, %v6407_v36 }
0x1ae5   :  { %v6409_v59 = vpop.eup %6408 }
0x1ae6   :  { %v5455_v40 = vadd.f32 1.0, %v6409_v59  ;;  %v5458_v22 = vmul.f32 0.5, %v5456_v39 }
0x1ae8   :  { %v5457_v48 = vmul.f32 0.5, %v5455_v40  ;;  %v5460_v41 = vmul.f32 %v5458_v22, %v5440_v60 }
0x1aea   :  { %v5459_v30 = vmul.f32 %v5457_v48, %v5435_v9 }
0x1aec   :  { %6306 = vmatprep.mubr.msk.f32.mxu0 %vm119_vm0, %v5459_v30 }
0x1aed   :  { %6307 = vmatmul.mubr.msk.f32.vlgmr.msra.gmra.mxu0 %vm119_vm0, %v5460_v41 }
0x1bad   :  { %v6308_v28 = vpop.f32.mrf.mxu0 }
0x1bae   :  { %v5554_v63 = vadd.f32 %v6308_v28, %v5730_v58 }
0x1baf   :  { %v5548_v37 = vpop.f32.mrf.mxu0 }
0x1bb0   :  { %5560 = vst.msk [vmem:[%s7570_s27 + $0x8] sm:$0x3] %vm5559_vm13, %v5554_v63  ;;  %v5549_v43 = vadd.f32 %v5730_v58, %v5548_v37 }
0x1bb2   :  { %5558 = vst.msk [vmem:[%s7570_s27] sm:$0xff] %vm5557_vm14, %v5549_v43 }

</bundles_post_ra>
